<compile_context>
chip_gen: v7x
topology: tpu7x:2x2x1
jax: 0.10.0
libtpu: 0.0.40
codegen_flags: <defaults>
</compile_context>

<pallas_src>
import jax
import jax.numpy as jnp
from jax.experimental import pallas as pl
from jax.experimental.pallas import tpu as pltpu


# ----------------------------------------------------------------------------
# Fused per-paragraph kernel: multi-layer BiLSTM + masked attention + pooling
# ----------------------------------------------------------------------------
def _make_para_encoder_kernel(num_layers, T, B, H):
    G = 4 * H

    def kernel(*args):
        # in refs: x, query, lens, then 4 weight refs per layer
        x_ref, q_ref, len_ref = args[0], args[1], args[2]
        w_refs = args[3:3 + 4 * num_layers]
        o_ref = args[3 + 4 * num_layers]
        gx_scr, yf_scr, yb_scr = args[4 + 4 * num_layers:]

        x = x_ref[0]                                           # (T*B, Din), time-major

        for l in range(num_layers):
            wih_ref, whh_f_ref, whh_b_ref, b_ref = w_refs[4 * l: 4 * l + 4]

            # Hoisted input projection for BOTH directions + bias: one big MXU matmul per
            # layer instead of one tiny matmul per time step.  gx_scr: (T*B, 8H).
            gx_scr[...] = (jnp.dot(x, wih_ref[...], preferred_element_type=jnp.float32)
                           + b_ref[...])

            whh_f = whh_f_ref[...]                             # (H, 4H), VMEM-resident
            whh_b = whh_b_ref[...]

            def cell(gates, c):
                # PyTorch gate order i, f, g, o
                i = jax.nn.sigmoid(gates[:, 0 * H:1 * H])
                f = jax.nn.sigmoid(gates[:, 1 * H:2 * H])
                g = jnp.tanh(gates[:, 2 * H:3 * H])
                o = jax.nn.sigmoid(gates[:, 3 * H:4 * H])
                c_new = f * c + i * g
                return o * jnp.tanh(c_new), c_new

            def step(t, carry):
                hf, cf, hb, cb = carry
                tb = T - 1 - t                                 # backward direction time index
                gx_f = gx_scr[pl.ds(t * B, B), :G]             # precomputed x-projection (fwd)
                gx_b = gx_scr[pl.ds(tb * B, B), G:]            # precomputed x-projection (bwd)
                hf, cf = cell(
                    gx_f + jnp.dot(hf, whh_f, preferred_element_type=jnp.float32), cf)
                hb, cb = cell(
                    gx_b + jnp.dot(hb, whh_b, preferred_element_type=jnp.float32), cb)
                yf_scr[t] = hf                                 # stays in VMEM, never hits HBM
                yb_scr[tb] = hb
                return hf, cf, hb, cb

            z = jnp.zeros((B, H), jnp.float32)
            jax.lax.fori_loop(0, T, step, (z, z, z, z), unroll=True)

            if l + 1 < num_layers:
                # inter-layer input = concat(fwd, bwd) over feature dim, still VMEM-only
                x = jnp.concatenate([yf_scr[...], yb_scr[...]],
                                    axis=-1).reshape(T * B, 2 * H)

        # ---- masked dot-product attention + context pooling (all in VMEM) ----
        yf = yf_scr[...]                                       # (T, B, H)
        yb = yb_scr[...]                                       # (T, B, H)
        q = q_ref[...]                                         # (B, 2H)
        qf = q[:, :H]
        qb = q[:, H:]
        # scores[t, b] = y[t, b, :] . q[b, :], split by direction (concat never materialized)
        s = (jnp.sum(yf * qf[None, :, :], axis=-1)
             + jnp.sum(yb * qb[None, :, :], axis=-1))          # (T, B)
        t_idx = jax.lax.broadcasted_iota(jnp.int32, (T, B), 0)
        valid = t_idx < len_ref[0]                             # (T, B) from per-para lengths
        s = jnp.where(valid, s, -1e30)
        s = s - jnp.max(s, axis=0, keepdims=True)              # stable softmax over time
        e = jnp.exp(s)
        a = e / jnp.sum(e, axis=0, keepdims=True)              # (T, B)
        cf = jnp.sum(a[:, :, None] * yf, axis=0)               # (B, H)
        cb = jnp.sum(a[:, :, None] * yb, axis=0)               # (B, H)
        # single lane-dense (B, 2H = 128) store per paragraph
        o_ref[0] = jnp.concatenate([cf, cb], axis=-1).astype(o_ref.dtype)

    return kernel


# ----------------------------------------------------------------------------
# Wrapper: full ParaEncoder forward (eval mode)
# ----------------------------------------------------------------------------
def pack_lstm_params(lstm_params):
    """Pack per-direction transposed weights into the kernel layout ONCE at init.

    Input per layer: ((wih_f^T, whh_f^T, b_f), (wih_b^T, whh_b^T, b_b)) with shapes
    (Din,4H)/(H,4H)/(1,4H).  Output per layer: (wih_cat (Din,8H), whh_f (H,4H),
    whh_b (H,4H), b_cat (1,8H)).
    """
    packed = []
    for (wih_f, whh_f, b_f), (wih_b, whh_b, b_b) in lstm_params:
        packed.append((jnp.concatenate([wih_f, wih_b], axis=1),
                       whh_f, whh_b,
                       jnp.concatenate([b_f, b_b], axis=1)))
    return packed


def para_encoder_forward(inputs, target_query_state, paraset_len_mask, packed_params):
    """inputs: (B, P, T, E), target_query_state: (B, 2H), paraset_len_mask: (B, P) lengths.

    packed_params: output of pack_lstm_params (weights pre-transposed & pre-concatenated).
    Returns (B, P, 2H).
    """
    B, P, T, E = inputs.shape
    H = packed_params[0][1].shape[0]
    D = 2 * H
    G = 4 * H
    num_layers = len(packed_params)

    # Dropout(p=0.2) on the LSTM input is identity in eval mode.
    # TODO(synk): training-mode dropout would use pltpu.prng_seed / pltpu.prng_random_bits.
    x = jnp.transpose(inputs, (1, 2, 0, 3)).reshape(P, T * B, E)   # time-major per paragraph
    lens = paraset_len_mask.T.reshape(P, 1, B).astype(jnp.int32)   # (P, 1, B)

    rep2 = lambda p: (0, 0)
    w_args, w_specs = [], []
    for (wih, whh_f, whh_b, b) in packed_params:
        w_args += [wih, whh_f, whh_b, b]
        w_specs += [pl.BlockSpec(wih.shape, rep2),
                    pl.BlockSpec(whh_f.shape, rep2),
                    pl.BlockSpec(whh_b.shape, rep2),
                    pl.BlockSpec(b.shape, rep2)]

    kernel = _make_para_encoder_kernel(num_layers, T, B, H)
    ctx = pl.pallas_call(
        kernel,
        out_shape=jax.ShapeDtypeStruct((P, B, D), jnp.float32),
        grid=(P,),
        in_specs=[
            pl.BlockSpec((1, T * B, E), lambda p: (p, 0, 0)),      # per-paragraph input block
            pl.BlockSpec((B, D), lambda p: (0, 0)),                # query, resident
            pl.BlockSpec((1, 1, B), lambda p: (p, 0, 0)),          # per-paragraph lengths
        ] + w_specs,                                               # weights, resident
        out_specs=pl.BlockSpec((1, B, D), lambda p: (p, 0, 0)),
        scratch_shapes=[
            pltpu.VMEM((T * B, 2 * G), jnp.float32),               # hoisted gate projections
            pltpu.VMEM((T, B, H), jnp.float32),                    # forward-direction outputs
            pltpu.VMEM((T, B, H), jnp.float32),                    # backward-direction outputs
        ],
        compiler_params=pltpu.CompilerParams(
            dimension_semantics=("parallel",)),                    # paragraph axis independent
    )(x, target_query_state, lens, *w_args)
    return jnp.transpose(ctx, (1, 0, 2))                           # (B, P, 2H)


# ----------------------------------------------------------------------------
# Pure-JAX reference (same math, no Pallas) for the correctness check
# ----------------------------------------------------------------------------
def _ref_lstm_dir(x_tbe, wih_t, whh_t, b, reverse=False):
    B = x_tbe.shape[1]
    H = whh_t.shape[0]

    def step(carry, xt):
        h, c = carry
        g = xt @ wih_t + h @ whh_t + b
        i, f, gg, o = jnp.split(g, 4, axis=-1)
        c = jax.nn.sigmoid(f) * c + jax.nn.sigmoid(i) * jnp.tanh(gg)
        h = jax.nn.sigmoid(o) * jnp.tanh(c)
        return (h, c), h

    init = (jnp.zeros((B, H), jnp.float32), jnp.zeros((B, H), jnp.float32))
    _, ys = jax.lax.scan(step, init, x_tbe, reverse=reverse)
    return ys                                        # (T, B, H), time-aligned with input


def _ref_forward(inputs, query, lens, lstm_params):
    B, P, T, E = inputs.shape
    ctxs = []
    for p in range(P):
        h = inputs[:, p]                             # (B, T, Din)
        for (fwd, bwd) in lstm_params:
            xt = jnp.transpose(h, (1, 0, 2))         # (T, B, Din)
            yf = _ref_lstm_dir(xt, *fwd, reverse=False)
            yb = _ref_lstm_dir(xt, *bwd, reverse=True)
            h = jnp.transpose(jnp.concatenate([yf, yb], axis=-1), (1, 0, 2))
        s = jnp.einsum('btd,bd->bt', h, query)
        valid = jnp.arange(T)[None, :] < lens[:, p][:, None]
        s = jnp.where(valid, s, -1e30)
        a = jax.nn.softmax(s, axis=-1)
        ctxs.append(jnp.einsum('bt,btd->bd', a, h))
    return jnp.stack(ctxs, axis=1)                   # (B, P, 2H)


def _init_lstm_layer(key, in_dim, hidden):
    ks = jax.random.split(key, 6)
    bound = 1.0 / jnp.sqrt(jnp.float32(hidden))

    def u(k, shape):
        return jax.random.uniform(k, shape, jnp.float32, -bound, bound)

    # Weights stored pre-transposed (W^T layout); biases combined (b_ih + b_hh equivalent).
    fwd = (u(ks[0], (in_dim, 4 * hidden)), u(ks[1], (hidden, 4 * hidden)), u(ks[2], (1, 4 * hidden)))
    bwd = (u(ks[3], (in_dim, 4 * hidden)), u(ks[4], (hidden, 4 * hidden)), u(ks[5], (1, 4 * hidden)))
    return (fwd, bwd)


if __name__ == "__main__":
    # Small shapes consistent with the module's forward.
    batch, num_para, seq_len = 2, 2, 8
    embedding_dim, hidden_size, num_layers = 32, 64, 1   # 2H = 128 -> lane-dense context

    key = jax.random.PRNGKey(0)
    k_in, k_q, k_p = jax.random.split(key, 3)

    inputs = jax.random.normal(k_in, (batch, num_para, seq_len, embedding_dim), jnp.float32)
    target_query_state = jax.random.normal(k_q, (batch, 2 * hidden_size), jnp.float32)
    paraset_len_mask = jnp.array([[seq_len, 5], [3, seq_len]], dtype=jnp.int32)   # (B, P), >= 1

    lstm_params = []
    in_dim = embedding_dim
    kk = k_p
    for _ in range(num_layers):
        kk, sub = jax.random.split(kk)
        lstm_params.append(_init_lstm_layer(sub, in_dim, hidden_size))
        in_dim = 2 * hidden_size

    packed_params = pack_lstm_params(lstm_params)     # done once at init, never per call

    out = para_encoder_forward(inputs, target_query_state, paraset_len_mask, packed_params)
    out = jax.block_until_ready(out)

    ref = _ref_forward(inputs, target_query_state, paraset_len_mask, lstm_params)
    assert out.shape == (batch, num_para, 2 * hidden_size)
    assert jnp.allclose(out, ref, atol=1e-4, rtol=1e-4), float(jnp.max(jnp.abs(out - ref)))

    print("KERNEL_OK")
</pallas_src>

<mosaic_0001>
module attributes {stable_mosaic.version = 11 : i64} {
  func.func @kernel(%arg0: i32, %arg1: memref<1x16x32xf32, #tpu.memory_space<vmem>>, %arg2: memref<2x128xf32, #tpu.memory_space<vmem>>, %arg3: memref<1x1x2xi32, #tpu.memory_space<vmem>>, %arg4: memref<32x512xf32, #tpu.memory_space<vmem>>, %arg5: memref<64x256xf32, #tpu.memory_space<vmem>>, %arg6: memref<64x256xf32, #tpu.memory_space<vmem>>, %arg7: memref<1x512xf32, #tpu.memory_space<vmem>>, %arg8: memref<1x2x128xf32, #tpu.memory_space<vmem>>, %arg9: memref<16x512xf32, #tpu.memory_space<vmem>>, %arg10: memref<8x2x64xf32, #tpu.memory_space<vmem>>, %arg11: memref<8x2x64xf32, #tpu.memory_space<vmem>>) attributes {dimension_semantics = [#tpu.dimension_semantics<parallel>], iteration_bounds = array<i64: 2>, scalar_prefetch = 0 : i64, scratch_operands = 3 : i64, tpu.core_type = #tpu.core_type<tc>, window_params = [{transform_indices = @transform_0, window_bounds = array<i64: 1, 16, 32>}, {pipeline_mode = #tpu.pipeline_mode<synchronous>, transform_indices = @transform_1, window_bounds = array<i64: 2, 128>}, {transform_indices = @transform_2, window_bounds = array<i64: 1, 1, 2>}, {pipeline_mode = #tpu.pipeline_mode<synchronous>, transform_indices = @transform_3, window_bounds = array<i64: 32, 512>}, {pipeline_mode = #tpu.pipeline_mode<synchronous>, transform_indices = @transform_4, window_bounds = array<i64: 64, 256>}, {pipeline_mode = #tpu.pipeline_mode<synchronous>, transform_indices = @transform_5, window_bounds = array<i64: 64, 256>}, {pipeline_mode = #tpu.pipeline_mode<synchronous>, transform_indices = @transform_6, window_bounds = array<i64: 1, 512>}, {transform_indices = @transform_7, window_bounds = array<i64: 1, 2, 128>}]} {
    %c0 = arith.constant 0 : index
    %c0_0 = arith.constant 0 : index
    %c0_1 = arith.constant 0 : index
    %0 = vector.load %arg1[%c0, %c0_0, %c0_1] : memref<1x16x32xf32, #tpu.memory_space<vmem>>, vector<1x16x32xf32>
    %1 = vector.shape_cast %0 : vector<1x16x32xf32> to vector<16x32xf32>
    %c0_2 = arith.constant 0 : index
    %c0_3 = arith.constant 0 : index
    %2 = vector.load %arg4[%c0_2, %c0_3] : memref<32x512xf32, #tpu.memory_space<vmem>>, vector<32x512xf32>
    %cst = arith.constant dense<0.000000e+00> : vector<16x512xf32>
    %3 = tpu.matmul %1, %2, %cst {dimension_numbers = #tpu.dot_dimension_numbers<[1], [0], [0], [1], [0, 0, 1, 1], [], []>} : vector<16x32xf32>, vector<32x512xf32>, vector<16x512xf32> -> vector<16x512xf32>
    %c0_4 = arith.constant 0 : index
    %c0_5 = arith.constant 0 : index
    %4 = vector.load %arg7[%c0_4, %c0_5] : memref<1x512xf32, #tpu.memory_space<vmem>>, vector<1x512xf32>
    %5 = vector.broadcast %4 : vector<1x512xf32> to vector<16x512xf32>
    %6 = arith.addf %3, %5 : vector<16x512xf32>
    %c0_6 = arith.constant 0 : index
    %c0_7 = arith.constant 0 : index
    %7 = vector.load %arg9[%c0_6, %c0_7] : memref<16x512xf32, #tpu.memory_space<vmem>>, vector<16x512xf32>
    tpu.vector_store %arg9[%c0_6, %c0_7], %6 {strides = array<i32>} : memref<16x512xf32, #tpu.memory_space<vmem>>, vector<16x512xf32>,
    %c0_8 = arith.constant 0 : index
    %c0_9 = arith.constant 0 : index
    %8 = vector.load %arg5[%c0_8, %c0_9] : memref<64x256xf32, #tpu.memory_space<vmem>>, vector<64x256xf32>
    %c0_10 = arith.constant 0 : index
    %c0_11 = arith.constant 0 : index
    %9 = vector.load %arg6[%c0_10, %c0_11] : memref<64x256xf32, #tpu.memory_space<vmem>>, vector<64x256xf32>
    %cst_12 = arith.constant 0.000000e+00 : f32
    %10 = vector.broadcast %cst_12 : f32 to vector<2x64xf32>
    %c0_i32 = arith.constant 0 : i32
    %c7_i32 = arith.constant 7 : i32
    %11 = arith.subi %c7_i32, %c0_i32 : i32
    %c2_i32 = arith.constant 2 : i32
    %12 = arith.muli %c0_i32, %c2_i32 : i32
    %13 = arith.index_cast %12 : i32 to index
    %c0_13 = arith.constant 0 : index
    %14 = vector.load %arg9[%13, %c0_13] : memref<16x512xf32, #tpu.memory_space<vmem>>, vector<2x256xf32>
    %c2_i32_14 = arith.constant 2 : i32
    %15 = arith.muli %11, %c2_i32_14 : i32
    %16 = arith.index_cast %15 : i32 to index
    %c256 = arith.constant 256 : index
    %17 = vector.load %arg9[%16, %c256] : memref<16x512xf32, #tpu.memory_space<vmem>>, vector<2x256xf32>
    %cst_15 = arith.constant dense<0.000000e+00> : vector<2x256xf32>
    %18 = tpu.matmul %10, %8, %cst_15 {dimension_numbers = #tpu.dot_dimension_numbers<[1], [0], [0], [1], [0, 0, 1, 1], [], []>} : vector<2x64xf32>, vector<64x256xf32>, vector<2x256xf32> -> vector<2x256xf32>
    %19 = arith.addf %14, %18 : vector<2x256xf32>
    %20 = vector.extract_strided_slice %19 {offsets = [0, 0], sizes = [2, 64], strides = [1, 1]} : vector<2x256xf32> to vector<2x64xf32>
    %21 = arith.negf %20 : vector<2x64xf32>
    %22 = math.exp %21 : vector<2x64xf32>
    %cst_16 = arith.constant 1.000000e+00 : f32
    %23 = vector.broadcast %cst_16 : f32 to vector<2x64xf32>
    %24 = arith.addf %23, %22 : vector<2x64xf32>
    %25 = arith.divf %23, %24 : vector<2x64xf32>
    %26 = vector.extract_strided_slice %19 {offsets = [0, 64], sizes = [2, 64], strides = [1, 1]} : vector<2x256xf32> to vector<2x64xf32>
    %27 = arith.negf %26 : vector<2x64xf32>
    %28 = math.exp %27 : vector<2x64xf32>
    %cst_17 = arith.constant 1.000000e+00 : f32
    %29 = vector.broadcast %cst_17 : f32 to vector<2x64xf32>
    %30 = arith.addf %29, %28 : vector<2x64xf32>
    %31 = arith.divf %29, %30 : vector<2x64xf32>
    %32 = vector.extract_strided_slice %19 {offsets = [0, 128], sizes = [2, 64], strides = [1, 1]} : vector<2x256xf32> to vector<2x64xf32>
    %33 = math.tanh %32 : vector<2x64xf32>
    %34 = vector.extract_strided_slice %19 {offsets = [0, 192], sizes = [2, 64], strides = [1, 1]} : vector<2x256xf32> to vector<2x64xf32>
    %35 = arith.negf %34 : vector<2x64xf32>
    %36 = math.exp %35 : vector<2x64xf32>
    %cst_18 = arith.constant 1.000000e+00 : f32
    %37 = vector.broadcast %cst_18 : f32 to vector<2x64xf32>
    %38 = arith.addf %37, %36 : vector<2x64xf32>
    %39 = arith.divf %37, %38 : vector<2x64xf32>
    %40 = arith.mulf %31, %10 : vector<2x64xf32>
    %41 = arith.mulf %25, %33 : vector<2x64xf32>
    %42 = arith.addf %40, %41 : vector<2x64xf32>
    %43 = math.tanh %42 : vector<2x64xf32>
    %44 = arith.mulf %39, %43 : vector<2x64xf32>
    %cst_19 = arith.constant dense<0.000000e+00> : vector<2x256xf32>
    %45 = tpu.matmul %10, %9, %cst_19 {dimension_numbers = #tpu.dot_dimension_numbers<[1], [0], [0], [1], [0, 0, 1, 1], [], []>} : vector<2x64xf32>, vector<64x256xf32>, vector<2x256xf32> -> vector<2x256xf32>
    %46 = arith.addf %17, %45 : vector<2x256xf32>
    %47 = vector.extract_strided_slice %46 {offsets = [0, 0], sizes = [2, 64], strides = [1, 1]} : vector<2x256xf32> to vector<2x64xf32>
    %48 = arith.negf %47 : vector<2x64xf32>
    %49 = math.exp %48 : vector<2x64xf32>
    %cst_20 = arith.constant 1.000000e+00 : f32
    %50 = vector.broadcast %cst_20 : f32 to vector<2x64xf32>
    %51 = arith.addf %50, %49 : vector<2x64xf32>
    %52 = arith.divf %50, %51 : vector<2x64xf32>
    %53 = vector.extract_strided_slice %46 {offsets = [0, 64], sizes = [2, 64], strides = [1, 1]} : vector<2x256xf32> to vector<2x64xf32>
    %54 = arith.negf %53 : vector<2x64xf32>
    %55 = math.exp %54 : vector<2x64xf32>
    %cst_21 = arith.constant 1.000000e+00 : f32
    %56 = vector.broadcast %cst_21 : f32 to vector<2x64xf32>
    %57 = arith.addf %56, %55 : vector<2x64xf32>
    %58 = arith.divf %56, %57 : vector<2x64xf32>
    %59 = vector.extract_strided_slice %46 {offsets = [0, 128], sizes = [2, 64], strides = [1, 1]} : vector<2x256xf32> to vector<2x64xf32>
    %60 = math.tanh %59 : vector<2x64xf32>
    %61 = vector.extract_strided_slice %46 {offsets = [0, 192], sizes = [2, 64], strides = [1, 1]} : vector<2x256xf32> to vector<2x64xf32>
    %62 = arith.negf %61 : vector<2x64xf32>
    %63 = math.exp %62 : vector<2x64xf32>
    %cst_22 = arith.constant 1.000000e+00 : f32
    %64 = vector.broadcast %cst_22 : f32 to vector<2x64xf32>
    %65 = arith.addf %64, %63 : vector<2x64xf32>
    %66 = arith.divf %64, %65 : vector<2x64xf32>
    %67 = arith.mulf %58, %10 : vector<2x64xf32>
    %68 = arith.mulf %52, %60 : vector<2x64xf32>
    %69 = arith.addf %67, %68 : vector<2x64xf32>
    %70 = math.tanh %69 : vector<2x64xf32>
    %71 = arith.mulf %66, %70 : vector<2x64xf32>
    %72 = arith.index_cast %c0_i32 : i32 to index
    %c0_23 = arith.constant 0 : index
    %c0_24 = arith.constant 0 : index
    %73 = vector.load %arg10[%72, %c0_23, %c0_24] : memref<8x2x64xf32, #tpu.memory_space<vmem>>, vector<1x2x64xf32>
    %74 = vector.shape_cast %73 : vector<1x2x64xf32> to vector<2x64xf32>
    %75 = vector.shape_cast %44 : vector<2x64xf32> to vector<1x2x64xf32>
    tpu.vector_store %arg10[%72, %c0_23, %c0_24], %75 {strides = array<i32>} : memref<8x2x64xf32, #tpu.memory_space<vmem>>, vector<1x2x64xf32>,
    %76 = arith.index_cast %11 : i32 to index
    %c0_25 = arith.constant 0 : index
    %c0_26 = arith.constant 0 : index
    %77 = vector.load %arg11[%76, %c0_25, %c0_26] : memref<8x2x64xf32, #tpu.memory_space<vmem>>, vector<1x2x64xf32>
    %78 = vector.shape_cast %77 : vector<1x2x64xf32> to vector<2x64xf32>
    %79 = vector.shape_cast %71 : vector<2x64xf32> to vector<1x2x64xf32>
    tpu.vector_store %arg11[%76, %c0_25, %c0_26], %79 {strides = array<i32>} : memref<8x2x64xf32, #tpu.memory_space<vmem>>, vector<1x2x64xf32>,
    %c1_i32 = arith.constant 1 : i32
    %c7_i32_27 = arith.constant 7 : i32
    %80 = arith.subi %c7_i32_27, %c1_i32 : i32
    %c2_i32_28 = arith.constant 2 : i32
    %81 = arith.muli %c1_i32, %c2_i32_28 : i32
    %82 = arith.index_cast %81 : i32 to index
    %c0_29 = arith.constant 0 : index
    %83 = vector.load %arg9[%82, %c0_29] : memref<16x512xf32, #tpu.memory_space<vmem>>, vector<2x256xf32>
    %c2_i32_30 = arith.constant 2 : i32
    %84 = arith.muli %80, %c2_i32_30 : i32
    %85 = arith.index_cast %84 : i32 to index
    %c256_31 = arith.constant 256 : index
    %86 = vector.load %arg9[%85, %c256_31] : memref<16x512xf32, #tpu.memory_space<vmem>>, vector<2x256xf32>
    %cst_32 = arith.constant dense<0.000000e+00> : vector<2x256xf32>
    %87 = tpu.matmul %44, %8, %cst_32 {dimension_numbers = #tpu.dot_dimension_numbers<[1], [0], [0], [1], [0, 0, 1, 1], [], []>} : vector<2x64xf32>, vector<64x256xf32>, vector<2x256xf32> -> vector<2x256xf32>
    %88 = arith.addf %83, %87 : vector<2x256xf32>
    %89 = vector.extract_strided_slice %88 {offsets = [0, 0], sizes = [2, 64], strides = [1, 1]} : vector<2x256xf32> to vector<2x64xf32>
    %90 = arith.negf %89 : vector<2x64xf32>
    %91 = math.exp %90 : vector<2x64xf32>
    %cst_33 = arith.constant 1.000000e+00 : f32
    %92 = vector.broadcast %cst_33 : f32 to vector<2x64xf32>
    %93 = arith.addf %92, %91 : vector<2x64xf32>
    %94 = arith.divf %92, %93 : vector<2x64xf32>
    %95 = vector.extract_strided_slice %88 {offsets = [0, 64], sizes = [2, 64], strides = [1, 1]} : vector<2x256xf32> to vector<2x64xf32>
    %96 = arith.negf %95 : vector<2x64xf32>
    %97 = math.exp %96 : vector<2x64xf32>
    %cst_34 = arith.constant 1.000000e+00 : f32
    %98 = vector.broadcast %cst_34 : f32 to vector<2x64xf32>
    %99 = arith.addf %98, %97 : vector<2x64xf32>
    %100 = arith.divf %98, %99 : vector<2x64xf32>
    %101 = vector.extract_strided_slice %88 {offsets = [0, 128], sizes = [2, 64], strides = [1, 1]} : vector<2x256xf32> to vector<2x64xf32>
    %102 = math.tanh %101 : vector<2x64xf32>
    %103 = vector.extract_strided_slice %88 {offsets = [0, 192], sizes = [2, 64], strides = [1, 1]} : vector<2x256xf32> to vector<2x64xf32>
    %104 = arith.negf %103 : vector<2x64xf32>
    %105 = math.exp %104 : vector<2x64xf32>
    %cst_35 = arith.constant 1.000000e+00 : f32
    %106 = vector.broadcast %cst_35 : f32 to vector<2x64xf32>
    %107 = arith.addf %106, %105 : vector<2x64xf32>
    %108 = arith.divf %106, %107 : vector<2x64xf32>
    %109 = arith.mulf %100, %42 : vector<2x64xf32>
    %110 = arith.mulf %94, %102 : vector<2x64xf32>
    %111 = arith.addf %109, %110 : vector<2x64xf32>
    %112 = math.tanh %111 : vector<2x64xf32>
    %113 = arith.mulf %108, %112 : vector<2x64xf32>
    %cst_36 = arith.constant dense<0.000000e+00> : vector<2x256xf32>
    %114 = tpu.matmul %71, %9, %cst_36 {dimension_numbers = #tpu.dot_dimension_numbers<[1], [0], [0], [1], [0, 0, 1, 1], [], []>} : vector<2x64xf32>, vector<64x256xf32>, vector<2x256xf32> -> vector<2x256xf32>
    %115 = arith.addf %86, %114 : vector<2x256xf32>
    %116 = vector.extract_strided_slice %115 {offsets = [0, 0], sizes = [2, 64], strides = [1, 1]} : vector<2x256xf32> to vector<2x64xf32>
    %117 = arith.negf %116 : vector<2x64xf32>
    %118 = math.exp %117 : vector<2x64xf32>
    %cst_37 = arith.constant 1.000000e+00 : f32
    %119 = vector.broadcast %cst_37 : f32 to vector<2x64xf32>
    %120 = arith.addf %119, %118 : vector<2x64xf32>
    %121 = arith.divf %119, %120 : vector<2x64xf32>
    %122 = vector.extract_strided_slice %115 {offsets = [0, 64], sizes = [2, 64], strides = [1, 1]} : vector<2x256xf32> to vector<2x64xf32>
    %123 = arith.negf %122 : vector<2x64xf32>
    %124 = math.exp %123 : vector<2x64xf32>
    %cst_38 = arith.constant 1.000000e+00 : f32
    %125 = vector.broadcast %cst_38 : f32 to vector<2x64xf32>
    %126 = arith.addf %125, %124 : vector<2x64xf32>
    %127 = arith.divf %125, %126 : vector<2x64xf32>
    %128 = vector.extract_strided_slice %115 {offsets = [0, 128], sizes = [2, 64], strides = [1, 1]} : vector<2x256xf32> to vector<2x64xf32>
    %129 = math.tanh %128 : vector<2x64xf32>
    %130 = vector.extract_strided_slice %115 {offsets = [0, 192], sizes = [2, 64], strides = [1, 1]} : vector<2x256xf32> to vector<2x64xf32>
    %131 = arith.negf %130 : vector<2x64xf32>
    %132 = math.exp %131 : vector<2x64xf32>
    %cst_39 = arith.constant 1.000000e+00 : f32
    %133 = vector.broadcast %cst_39 : f32 to vector<2x64xf32>
    %134 = arith.addf %133, %132 : vector<2x64xf32>
    %135 = arith.divf %133, %134 : vector<2x64xf32>
    %136 = arith.mulf %127, %69 : vector<2x64xf32>
    %137 = arith.mulf %121, %129 : vector<2x64xf32>
    %138 = arith.addf %136, %137 : vector<2x64xf32>
    %139 = math.tanh %138 : vector<2x64xf32>
    %140 = arith.mulf %135, %139 : vector<2x64xf32>
    %141 = arith.index_cast %c1_i32 : i32 to index
    %c0_40 = arith.constant 0 : index
    %c0_41 = arith.constant 0 : index
    %142 = vector.load %arg10[%141, %c0_40, %c0_41] : memref<8x2x64xf32, #tpu.memory_space<vmem>>, vector<1x2x64xf32>
    %143 = vector.shape_cast %142 : vector<1x2x64xf32> to vector<2x64xf32>
    %144 = vector.shape_cast %113 : vector<2x64xf32> to vector<1x2x64xf32>
    tpu.vector_store %arg10[%141, %c0_40, %c0_41], %144 {strides = array<i32>} : memref<8x2x64xf32, #tpu.memory_space<vmem>>, vector<1x2x64xf32>,
    %145 = arith.index_cast %80 : i32 to index
    %c0_42 = arith.constant 0 : index
    %c0_43 = arith.constant 0 : index
    %146 = vector.load %arg11[%145, %c0_42, %c0_43] : memref<8x2x64xf32, #tpu.memory_space<vmem>>, vector<1x2x64xf32>
    %147 = vector.shape_cast %146 : vector<1x2x64xf32> to vector<2x64xf32>
    %148 = vector.shape_cast %140 : vector<2x64xf32> to vector<1x2x64xf32>
    tpu.vector_store %arg11[%145, %c0_42, %c0_43], %148 {strides = array<i32>} : memref<8x2x64xf32, #tpu.memory_space<vmem>>, vector<1x2x64xf32>,
    %c2_i32_44 = arith.constant 2 : i32
    %c7_i32_45 = arith.constant 7 : i32
    %149 = arith.subi %c7_i32_45, %c2_i32_44 : i32
    %c2_i32_46 = arith.constant 2 : i32
    %150 = arith.muli %c2_i32_44, %c2_i32_46 : i32
    %151 = arith.index_cast %150 : i32 to index
    %c0_47 = arith.constant 0 : index
    %152 = vector.load %arg9[%151, %c0_47] : memref<16x512xf32, #tpu.memory_space<vmem>>, vector<2x256xf32>
    %c2_i32_48 = arith.constant 2 : i32
    %153 = arith.muli %149, %c2_i32_48 : i32
    %154 = arith.index_cast %153 : i32 to index
    %c256_49 = arith.constant 256 : index
    %155 = vector.load %arg9[%154, %c256_49] : memref<16x512xf32, #tpu.memory_space<vmem>>, vector<2x256xf32>
    %cst_50 = arith.constant dense<0.000000e+00> : vector<2x256xf32>
    %156 = tpu.matmul %113, %8, %cst_50 {dimension_numbers = #tpu.dot_dimension_numbers<[1], [0], [0], [1], [0, 0, 1, 1], [], []>} : vector<2x64xf32>, vector<64x256xf32>, vector<2x256xf32> -> vector<2x256xf32>
    %157 = arith.addf %152, %156 : vector<2x256xf32>
    %158 = vector.extract_strided_slice %157 {offsets = [0, 0], sizes = [2, 64], strides = [1, 1]} : vector<2x256xf32> to vector<2x64xf32>
    %159 = arith.negf %158 : vector<2x64xf32>
    %160 = math.exp %159 : vector<2x64xf32>
    %cst_51 = arith.constant 1.000000e+00 : f32
    %161 = vector.broadcast %cst_51 : f32 to vector<2x64xf32>
    %162 = arith.addf %161, %160 : vector<2x64xf32>
    %163 = arith.divf %161, %162 : vector<2x64xf32>
    %164 = vector.extract_strided_slice %157 {offsets = [0, 64], sizes = [2, 64], strides = [1, 1]} : vector<2x256xf32> to vector<2x64xf32>
    %165 = arith.negf %164 : vector<2x64xf32>
    %166 = math.exp %165 : vector<2x64xf32>
    %cst_52 = arith.constant 1.000000e+00 : f32
    %167 = vector.broadcast %cst_52 : f32 to vector<2x64xf32>
    %168 = arith.addf %167, %166 : vector<2x64xf32>
    %169 = arith.divf %167, %168 : vector<2x64xf32>
    %170 = vector.extract_strided_slice %157 {offsets = [0, 128], sizes = [2, 64], strides = [1, 1]} : vector<2x256xf32> to vector<2x64xf32>
    %171 = math.tanh %170 : vector<2x64xf32>
    %172 = vector.extract_strided_slice %157 {offsets = [0, 192], sizes = [2, 64], strides = [1, 1]} : vector<2x256xf32> to vector<2x64xf32>
    %173 = arith.negf %172 : vector<2x64xf32>
    %174 = math.exp %173 : vector<2x64xf32>
    %cst_53 = arith.constant 1.000000e+00 : f32
    %175 = vector.broadcast %cst_53 : f32 to vector<2x64xf32>
    %176 = arith.addf %175, %174 : vector<2x64xf32>
    %177 = arith.divf %175, %176 : vector<2x64xf32>
    %178 = arith.mulf %169, %111 : vector<2x64xf32>
    %179 = arith.mulf %163, %171 : vector<2x64xf32>
    %180 = arith.addf %178, %179 : vector<2x64xf32>
    %181 = math.tanh %180 : vector<2x64xf32>
    %182 = arith.mulf %177, %181 : vector<2x64xf32>
    %cst_54 = arith.constant dense<0.000000e+00> : vector<2x256xf32>
    %183 = tpu.matmul %140, %9, %cst_54 {dimension_numbers = #tpu.dot_dimension_numbers<[1], [0], [0], [1], [0, 0, 1, 1], [], []>} : vector<2x64xf32>, vector<64x256xf32>, vector<2x256xf32> -> vector<2x256xf32>
    %184 = arith.addf %155, %183 : vector<2x256xf32>
    %185 = vector.extract_strided_slice %184 {offsets = [0, 0], sizes = [2, 64], strides = [1, 1]} : vector<2x256xf32> to vector<2x64xf32>
    %186 = arith.negf %185 : vector<2x64xf32>
    %187 = math.exp %186 : vector<2x64xf32>
    %cst_55 = arith.constant 1.000000e+00 : f32
    %188 = vector.broadcast %cst_55 : f32 to vector<2x64xf32>
    %189 = arith.addf %188, %187 : vector<2x64xf32>
    %190 = arith.divf %188, %189 : vector<2x64xf32>
    %191 = vector.extract_strided_slice %184 {offsets = [0, 64], sizes = [2, 64], strides = [1, 1]} : vector<2x256xf32> to vector<2x64xf32>
    %192 = arith.negf %191 : vector<2x64xf32>
    %193 = math.exp %192 : vector<2x64xf32>
    %cst_56 = arith.constant 1.000000e+00 : f32
    %194 = vector.broadcast %cst_56 : f32 to vector<2x64xf32>
    %195 = arith.addf %194, %193 : vector<2x64xf32>
    %196 = arith.divf %194, %195 : vector<2x64xf32>
    %197 = vector.extract_strided_slice %184 {offsets = [0, 128], sizes = [2, 64], strides = [1, 1]} : vector<2x256xf32> to vector<2x64xf32>
    %198 = math.tanh %197 : vector<2x64xf32>
    %199 = vector.extract_strided_slice %184 {offsets = [0, 192], sizes = [2, 64], strides = [1, 1]} : vector<2x256xf32> to vector<2x64xf32>
    %200 = arith.negf %199 : vector<2x64xf32>
    %201 = math.exp %200 : vector<2x64xf32>
    %cst_57 = arith.constant 1.000000e+00 : f32
    %202 = vector.broadcast %cst_57 : f32 to vector<2x64xf32>
    %203 = arith.addf %202, %201 : vector<2x64xf32>
    %204 = arith.divf %202, %203 : vector<2x64xf32>
    %205 = arith.mulf %196, %138 : vector<2x64xf32>
    %206 = arith.mulf %190, %198 : vector<2x64xf32>
    %207 = arith.addf %205, %206 : vector<2x64xf32>
    %208 = math.tanh %207 : vector<2x64xf32>
    %209 = arith.mulf %204, %208 : vector<2x64xf32>
    %210 = arith.index_cast %c2_i32_44 : i32 to index
    %c0_58 = arith.constant 0 : index
    %c0_59 = arith.constant 0 : index
    %211 = vector.load %arg10[%210, %c0_58, %c0_59] : memref<8x2x64xf32, #tpu.memory_space<vmem>>, vector<1x2x64xf32>
    %212 = vector.shape_cast %211 : vector<1x2x64xf32> to vector<2x64xf32>
    %213 = vector.shape_cast %182 : vector<2x64xf32> to vector<1x2x64xf32>
    tpu.vector_store %arg10[%210, %c0_58, %c0_59], %213 {strides = array<i32>} : memref<8x2x64xf32, #tpu.memory_space<vmem>>, vector<1x2x64xf32>,
    %214 = arith.index_cast %149 : i32 to index
    %c0_60 = arith.constant 0 : index
    %c0_61 = arith.constant 0 : index
    %215 = vector.load %arg11[%214, %c0_60, %c0_61] : memref<8x2x64xf32, #tpu.memory_space<vmem>>, vector<1x2x64xf32>
    %216 = vector.shape_cast %215 : vector<1x2x64xf32> to vector<2x64xf32>
    %217 = vector.shape_cast %209 : vector<2x64xf32> to vector<1x2x64xf32>
    tpu.vector_store %arg11[%214, %c0_60, %c0_61], %217 {strides = array<i32>} : memref<8x2x64xf32, #tpu.memory_space<vmem>>, vector<1x2x64xf32>,
    %c3_i32 = arith.constant 3 : i32
    %c7_i32_62 = arith.constant 7 : i32
    %218 = arith.subi %c7_i32_62, %c3_i32 : i32
    %c2_i32_63 = arith.constant 2 : i32
    %219 = arith.muli %c3_i32, %c2_i32_63 : i32
    %220 = arith.index_cast %219 : i32 to index
    %c0_64 = arith.constant 0 : index
    %221 = vector.load %arg9[%220, %c0_64] : memref<16x512xf32, #tpu.memory_space<vmem>>, vector<2x256xf32>
    %c2_i32_65 = arith.constant 2 : i32
    %222 = arith.muli %218, %c2_i32_65 : i32
    %223 = arith.index_cast %222 : i32 to index
    %c256_66 = arith.constant 256 : index
    %224 = vector.load %arg9[%223, %c256_66] : memref<16x512xf32, #tpu.memory_space<vmem>>, vector<2x256xf32>
    %cst_67 = arith.constant dense<0.000000e+00> : vector<2x256xf32>
    %225 = tpu.matmul %182, %8, %cst_67 {dimension_numbers = #tpu.dot_dimension_numbers<[1], [0], [0], [1], [0, 0, 1, 1], [], []>} : vector<2x64xf32>, vector<64x256xf32>, vector<2x256xf32> -> vector<2x256xf32>
    %226 = arith.addf %221, %225 : vector<2x256xf32>
    %227 = vector.extract_strided_slice %226 {offsets = [0, 0], sizes = [2, 64], strides = [1, 1]} : vector<2x256xf32> to vector<2x64xf32>
    %228 = arith.negf %227 : vector<2x64xf32>
    %229 = math.exp %228 : vector<2x64xf32>
    %cst_68 = arith.constant 1.000000e+00 : f32
    %230 = vector.broadcast %cst_68 : f32 to vector<2x64xf32>
    %231 = arith.addf %230, %229 : vector<2x64xf32>
    %232 = arith.divf %230, %231 : vector<2x64xf32>
    %233 = vector.extract_strided_slice %226 {offsets = [0, 64], sizes = [2, 64], strides = [1, 1]} : vector<2x256xf32> to vector<2x64xf32>
    %234 = arith.negf %233 : vector<2x64xf32>
    %235 = math.exp %234 : vector<2x64xf32>
    %cst_69 = arith.constant 1.000000e+00 : f32
    %236 = vector.broadcast %cst_69 : f32 to vector<2x64xf32>
    %237 = arith.addf %236, %235 : vector<2x64xf32>
    %238 = arith.divf %236, %237 : vector<2x64xf32>
    %239 = vector.extract_strided_slice %226 {offsets = [0, 128], sizes = [2, 64], strides = [1, 1]} : vector<2x256xf32> to vector<2x64xf32>
    %240 = math.tanh %239 : vector<2x64xf32>
    %241 = vector.extract_strided_slice %226 {offsets = [0, 192], sizes = [2, 64], strides = [1, 1]} : vector<2x256xf32> to vector<2x64xf32>
    %242 = arith.negf %241 : vector<2x64xf32>
    %243 = math.exp %242 : vector<2x64xf32>
    %cst_70 = arith.constant 1.000000e+00 : f32
    %244 = vector.broadcast %cst_70 : f32 to vector<2x64xf32>
    %245 = arith.addf %244, %243 : vector<2x64xf32>
    %246 = arith.divf %244, %245 : vector<2x64xf32>
    %247 = arith.mulf %238, %180 : vector<2x64xf32>
    %248 = arith.mulf %232, %240 : vector<2x64xf32>
    %249 = arith.addf %247, %248 : vector<2x64xf32>
    %250 = math.tanh %249 : vector<2x64xf32>
    %251 = arith.mulf %246, %250 : vector<2x64xf32>
    %cst_71 = arith.constant dense<0.000000e+00> : vector<2x256xf32>
    %252 = tpu.matmul %209, %9, %cst_71 {dimension_numbers = #tpu.dot_dimension_numbers<[1], [0], [0], [1], [0, 0, 1, 1], [], []>} : vector<2x64xf32>, vector<64x256xf32>, vector<2x256xf32> -> vector<2x256xf32>
    %253 = arith.addf %224, %252 : vector<2x256xf32>
    %254 = vector.extract_strided_slice %253 {offsets = [0, 0], sizes = [2, 64], strides = [1, 1]} : vector<2x256xf32> to vector<2x64xf32>
    %255 = arith.negf %254 : vector<2x64xf32>
    %256 = math.exp %255 : vector<2x64xf32>
    %cst_72 = arith.constant 1.000000e+00 : f32
    %257 = vector.broadcast %cst_72 : f32 to vector<2x64xf32>
    %258 = arith.addf %257, %256 : vector<2x64xf32>
    %259 = arith.divf %257, %258 : vector<2x64xf32>
    %260 = vector.extract_strided_slice %253 {offsets = [0, 64], sizes = [2, 64], strides = [1, 1]} : vector<2x256xf32> to vector<2x64xf32>
    %261 = arith.negf %260 : vector<2x64xf32>
    %262 = math.exp %261 : vector<2x64xf32>
    %cst_73 = arith.constant 1.000000e+00 : f32
    %263 = vector.broadcast %cst_73 : f32 to vector<2x64xf32>
    %264 = arith.addf %263, %262 : vector<2x64xf32>
    %265 = arith.divf %263, %264 : vector<2x64xf32>
    %266 = vector.extract_strided_slice %253 {offsets = [0, 128], sizes = [2, 64], strides = [1, 1]} : vector<2x256xf32> to vector<2x64xf32>
    %267 = math.tanh %266 : vector<2x64xf32>
    %268 = vector.extract_strided_slice %253 {offsets = [0, 192], sizes = [2, 64], strides = [1, 1]} : vector<2x256xf32> to vector<2x64xf32>
    %269 = arith.negf %268 : vector<2x64xf32>
    %270 = math.exp %269 : vector<2x64xf32>
    %cst_74 = arith.constant 1.000000e+00 : f32
    %271 = vector.broadcast %cst_74 : f32 to vector<2x64xf32>
    %272 = arith.addf %271, %270 : vector<2x64xf32>
    %273 = arith.divf %271, %272 : vector<2x64xf32>
    %274 = arith.mulf %265, %207 : vector<2x64xf32>
    %275 = arith.mulf %259, %267 : vector<2x64xf32>
    %276 = arith.addf %274, %275 : vector<2x64xf32>
    %277 = math.tanh %276 : vector<2x64xf32>
    %278 = arith.mulf %273, %277 : vector<2x64xf32>
    %279 = arith.index_cast %c3_i32 : i32 to index
    %c0_75 = arith.constant 0 : index
    %c0_76 = arith.constant 0 : index
    %280 = vector.load %arg10[%279, %c0_75, %c0_76] : memref<8x2x64xf32, #tpu.memory_space<vmem>>, vector<1x2x64xf32>
    %281 = vector.shape_cast %280 : vector<1x2x64xf32> to vector<2x64xf32>
    %282 = vector.shape_cast %251 : vector<2x64xf32> to vector<1x2x64xf32>
    tpu.vector_store %arg10[%279, %c0_75, %c0_76], %282 {strides = array<i32>} : memref<8x2x64xf32, #tpu.memory_space<vmem>>, vector<1x2x64xf32>,
    %283 = arith.index_cast %218 : i32 to index
    %c0_77 = arith.constant 0 : index
    %c0_78 = arith.constant 0 : index
    %284 = vector.load %arg11[%283, %c0_77, %c0_78] : memref<8x2x64xf32, #tpu.memory_space<vmem>>, vector<1x2x64xf32>
    %285 = vector.shape_cast %284 : vector<1x2x64xf32> to vector<2x64xf32>
    %286 = vector.shape_cast %278 : vector<2x64xf32> to vector<1x2x64xf32>
    tpu.vector_store %arg11[%283, %c0_77, %c0_78], %286 {strides = array<i32>} : memref<8x2x64xf32, #tpu.memory_space<vmem>>, vector<1x2x64xf32>,
    %c4_i32 = arith.constant 4 : i32
    %c7_i32_79 = arith.constant 7 : i32
    %287 = arith.subi %c7_i32_79, %c4_i32 : i32
    %c2_i32_80 = arith.constant 2 : i32
    %288 = arith.muli %c4_i32, %c2_i32_80 : i32
    %289 = arith.index_cast %288 : i32 to index
    %c0_81 = arith.constant 0 : index
    %290 = vector.load %arg9[%289, %c0_81] : memref<16x512xf32, #tpu.memory_space<vmem>>, vector<2x256xf32>
    %c2_i32_82 = arith.constant 2 : i32
    %291 = arith.muli %287, %c2_i32_82 : i32
    %292 = arith.index_cast %291 : i32 to index
    %c256_83 = arith.constant 256 : index
    %293 = vector.load %arg9[%292, %c256_83] : memref<16x512xf32, #tpu.memory_space<vmem>>, vector<2x256xf32>
    %cst_84 = arith.constant dense<0.000000e+00> : vector<2x256xf32>
    %294 = tpu.matmul %251, %8, %cst_84 {dimension_numbers = #tpu.dot_dimension_numbers<[1], [0], [0], [1], [0, 0, 1, 1], [], []>} : vector<2x64xf32>, vector<64x256xf32>, vector<2x256xf32> -> vector<2x256xf32>
    %295 = arith.addf %290, %294 : vector<2x256xf32>
    %296 = vector.extract_strided_slice %295 {offsets = [0, 0], sizes = [2, 64], strides = [1, 1]} : vector<2x256xf32> to vector<2x64xf32>
    %297 = arith.negf %296 : vector<2x64xf32>
    %298 = math.exp %297 : vector<2x64xf32>
    %cst_85 = arith.constant 1.000000e+00 : f32
    %299 = vector.broadcast %cst_85 : f32 to vector<2x64xf32>
    %300 = arith.addf %299, %298 : vector<2x64xf32>
    %301 = arith.divf %299, %300 : vector<2x64xf32>
    %302 = vector.extract_strided_slice %295 {offsets = [0, 64], sizes = [2, 64], strides = [1, 1]} : vector<2x256xf32> to vector<2x64xf32>
    %303 = arith.negf %302 : vector<2x64xf32>
    %304 = math.exp %303 : vector<2x64xf32>
    %cst_86 = arith.constant 1.000000e+00 : f32
    %305 = vector.broadcast %cst_86 : f32 to vector<2x64xf32>
    %306 = arith.addf %305, %304 : vector<2x64xf32>
    %307 = arith.divf %305, %306 : vector<2x64xf32>
    %308 = vector.extract_strided_slice %295 {offsets = [0, 128], sizes = [2, 64], strides = [1, 1]} : vector<2x256xf32> to vector<2x64xf32>
    %309 = math.tanh %308 : vector<2x64xf32>
    %310 = vector.extract_strided_slice %295 {offsets = [0, 192], sizes = [2, 64], strides = [1, 1]} : vector<2x256xf32> to vector<2x64xf32>
    %311 = arith.negf %310 : vector<2x64xf32>
    %312 = math.exp %311 : vector<2x64xf32>
    %cst_87 = arith.constant 1.000000e+00 : f32
    %313 = vector.broadcast %cst_87 : f32 to vector<2x64xf32>
    %314 = arith.addf %313, %312 : vector<2x64xf32>
    %315 = arith.divf %313, %314 : vector<2x64xf32>
    %316 = arith.mulf %307, %249 : vector<2x64xf32>
    %317 = arith.mulf %301, %309 : vector<2x64xf32>
    %318 = arith.addf %316, %317 : vector<2x64xf32>
    %319 = math.tanh %318 : vector<2x64xf32>
    %320 = arith.mulf %315, %319 : vector<2x64xf32>
    %cst_88 = arith.constant dense<0.000000e+00> : vector<2x256xf32>
    %321 = tpu.matmul %278, %9, %cst_88 {dimension_numbers = #tpu.dot_dimension_numbers<[1], [0], [0], [1], [0, 0, 1, 1], [], []>} : vector<2x64xf32>, vector<64x256xf32>, vector<2x256xf32> -> vector<2x256xf32>
    %322 = arith.addf %293, %321 : vector<2x256xf32>
    %323 = vector.extract_strided_slice %322 {offsets = [0, 0], sizes = [2, 64], strides = [1, 1]} : vector<2x256xf32> to vector<2x64xf32>
    %324 = arith.negf %323 : vector<2x64xf32>
    %325 = math.exp %324 : vector<2x64xf32>
    %cst_89 = arith.constant 1.000000e+00 : f32
    %326 = vector.broadcast %cst_89 : f32 to vector<2x64xf32>
    %327 = arith.addf %326, %325 : vector<2x64xf32>
    %328 = arith.divf %326, %327 : vector<2x64xf32>
    %329 = vector.extract_strided_slice %322 {offsets = [0, 64], sizes = [2, 64], strides = [1, 1]} : vector<2x256xf32> to vector<2x64xf32>
    %330 = arith.negf %329 : vector<2x64xf32>
    %331 = math.exp %330 : vector<2x64xf32>
    %cst_90 = arith.constant 1.000000e+00 : f32
    %332 = vector.broadcast %cst_90 : f32 to vector<2x64xf32>
    %333 = arith.addf %332, %331 : vector<2x64xf32>
    %334 = arith.divf %332, %333 : vector<2x64xf32>
    %335 = vector.extract_strided_slice %322 {offsets = [0, 128], sizes = [2, 64], strides = [1, 1]} : vector<2x256xf32> to vector<2x64xf32>
    %336 = math.tanh %335 : vector<2x64xf32>
    %337 = vector.extract_strided_slice %322 {offsets = [0, 192], sizes = [2, 64], strides = [1, 1]} : vector<2x256xf32> to vector<2x64xf32>
    %338 = arith.negf %337 : vector<2x64xf32>
    %339 = math.exp %338 : vector<2x64xf32>
    %cst_91 = arith.constant 1.000000e+00 : f32
    %340 = vector.broadcast %cst_91 : f32 to vector<2x64xf32>
    %341 = arith.addf %340, %339 : vector<2x64xf32>
    %342 = arith.divf %340, %341 : vector<2x64xf32>
    %343 = arith.mulf %334, %276 : vector<2x64xf32>
    %344 = arith.mulf %328, %336 : vector<2x64xf32>
    %345 = arith.addf %343, %344 : vector<2x64xf32>
    %346 = math.tanh %345 : vector<2x64xf32>
    %347 = arith.mulf %342, %346 : vector<2x64xf32>
    %348 = arith.index_cast %c4_i32 : i32 to index
    %c0_92 = arith.constant 0 : index
    %c0_93 = arith.constant 0 : index
    %349 = vector.load %arg10[%348, %c0_92, %c0_93] : memref<8x2x64xf32, #tpu.memory_space<vmem>>, vector<1x2x64xf32>
    %350 = vector.shape_cast %349 : vector<1x2x64xf32> to vector<2x64xf32>
    %351 = vector.shape_cast %320 : vector<2x64xf32> to vector<1x2x64xf32>
    tpu.vector_store %arg10[%348, %c0_92, %c0_93], %351 {strides = array<i32>} : memref<8x2x64xf32, #tpu.memory_space<vmem>>, vector<1x2x64xf32>,
    %352 = arith.index_cast %287 : i32 to index
    %c0_94 = arith.constant 0 : index
    %c0_95 = arith.constant 0 : index
    %353 = vector.load %arg11[%352, %c0_94, %c0_95] : memref<8x2x64xf32, #tpu.memory_space<vmem>>, vector<1x2x64xf32>
    %354 = vector.shape_cast %353 : vector<1x2x64xf32> to vector<2x64xf32>
    %355 = vector.shape_cast %347 : vector<2x64xf32> to vector<1x2x64xf32>
    tpu.vector_store %arg11[%352, %c0_94, %c0_95], %355 {strides = array<i32>} : memref<8x2x64xf32, #tpu.memory_space<vmem>>, vector<1x2x64xf32>,
    %c5_i32 = arith.constant 5 : i32
    %c7_i32_96 = arith.constant 7 : i32
    %356 = arith.subi %c7_i32_96, %c5_i32 : i32
    %c2_i32_97 = arith.constant 2 : i32
    %357 = arith.muli %c5_i32, %c2_i32_97 : i32
    %358 = arith.index_cast %357 : i32 to index
    %c0_98 = arith.constant 0 : index
    %359 = vector.load %arg9[%358, %c0_98] : memref<16x512xf32, #tpu.memory_space<vmem>>, vector<2x256xf32>
    %c2_i32_99 = arith.constant 2 : i32
    %360 = arith.muli %356, %c2_i32_99 : i32
    %361 = arith.index_cast %360 : i32 to index
    %c256_100 = arith.constant 256 : index
    %362 = vector.load %arg9[%361, %c256_100] : memref<16x512xf32, #tpu.memory_space<vmem>>, vector<2x256xf32>
    %cst_101 = arith.constant dense<0.000000e+00> : vector<2x256xf32>
    %363 = tpu.matmul %320, %8, %cst_101 {dimension_numbers = #tpu.dot_dimension_numbers<[1], [0], [0], [1], [0, 0, 1, 1], [], []>} : vector<2x64xf32>, vector<64x256xf32>, vector<2x256xf32> -> vector<2x256xf32>
    %364 = arith.addf %359, %363 : vector<2x256xf32>
    %365 = vector.extract_strided_slice %364 {offsets = [0, 0], sizes = [2, 64], strides = [1, 1]} : vector<2x256xf32> to vector<2x64xf32>
    %366 = arith.negf %365 : vector<2x64xf32>
    %367 = math.exp %366 : vector<2x64xf32>
    %cst_102 = arith.constant 1.000000e+00 : f32
    %368 = vector.broadcast %cst_102 : f32 to vector<2x64xf32>
    %369 = arith.addf %368, %367 : vector<2x64xf32>
    %370 = arith.divf %368, %369 : vector<2x64xf32>
    %371 = vector.extract_strided_slice %364 {offsets = [0, 64], sizes = [2, 64], strides = [1, 1]} : vector<2x256xf32> to vector<2x64xf32>
    %372 = arith.negf %371 : vector<2x64xf32>
    %373 = math.exp %372 : vector<2x64xf32>
    %cst_103 = arith.constant 1.000000e+00 : f32
    %374 = vector.broadcast %cst_103 : f32 to vector<2x64xf32>
    %375 = arith.addf %374, %373 : vector<2x64xf32>
    %376 = arith.divf %374, %375 : vector<2x64xf32>
    %377 = vector.extract_strided_slice %364 {offsets = [0, 128], sizes = [2, 64], strides = [1, 1]} : vector<2x256xf32> to vector<2x64xf32>
    %378 = math.tanh %377 : vector<2x64xf32>
    %379 = vector.extract_strided_slice %364 {offsets = [0, 192], sizes = [2, 64], strides = [1, 1]} : vector<2x256xf32> to vector<2x64xf32>
    %380 = arith.negf %379 : vector<2x64xf32>
    %381 = math.exp %380 : vector<2x64xf32>
    %cst_104 = arith.constant 1.000000e+00 : f32
    %382 = vector.broadcast %cst_104 : f32 to vector<2x64xf32>
    %383 = arith.addf %382, %381 : vector<2x64xf32>
    %384 = arith.divf %382, %383 : vector<2x64xf32>
    %385 = arith.mulf %376, %318 : vector<2x64xf32>
    %386 = arith.mulf %370, %378 : vector<2x64xf32>
    %387 = arith.addf %385, %386 : vector<2x64xf32>
    %388 = math.tanh %387 : vector<2x64xf32>
    %389 = arith.mulf %384, %388 : vector<2x64xf32>
    %cst_105 = arith.constant dense<0.000000e+00> : vector<2x256xf32>
    %390 = tpu.matmul %347, %9, %cst_105 {dimension_numbers = #tpu.dot_dimension_numbers<[1], [0], [0], [1], [0, 0, 1, 1], [], []>} : vector<2x64xf32>, vector<64x256xf32>, vector<2x256xf32> -> vector<2x256xf32>
    %391 = arith.addf %362, %390 : vector<2x256xf32>
    %392 = vector.extract_strided_slice %391 {offsets = [0, 0], sizes = [2, 64], strides = [1, 1]} : vector<2x256xf32> to vector<2x64xf32>
    %393 = arith.negf %392 : vector<2x64xf32>
    %394 = math.exp %393 : vector<2x64xf32>
    %cst_106 = arith.constant 1.000000e+00 : f32
    %395 = vector.broadcast %cst_106 : f32 to vector<2x64xf32>
    %396 = arith.addf %395, %394 : vector<2x64xf32>
    %397 = arith.divf %395, %396 : vector<2x64xf32>
    %398 = vector.extract_strided_slice %391 {offsets = [0, 64], sizes = [2, 64], strides = [1, 1]} : vector<2x256xf32> to vector<2x64xf32>
    %399 = arith.negf %398 : vector<2x64xf32>
    %400 = math.exp %399 : vector<2x64xf32>
    %cst_107 = arith.constant 1.000000e+00 : f32
    %401 = vector.broadcast %cst_107 : f32 to vector<2x64xf32>
    %402 = arith.addf %401, %400 : vector<2x64xf32>
    %403 = arith.divf %401, %402 : vector<2x64xf32>
    %404 = vector.extract_strided_slice %391 {offsets = [0, 128], sizes = [2, 64], strides = [1, 1]} : vector<2x256xf32> to vector<2x64xf32>
    %405 = math.tanh %404 : vector<2x64xf32>
    %406 = vector.extract_strided_slice %391 {offsets = [0, 192], sizes = [2, 64], strides = [1, 1]} : vector<2x256xf32> to vector<2x64xf32>
    %407 = arith.negf %406 : vector<2x64xf32>
    %408 = math.exp %407 : vector<2x64xf32>
    %cst_108 = arith.constant 1.000000e+00 : f32
    %409 = vector.broadcast %cst_108 : f32 to vector<2x64xf32>
    %410 = arith.addf %409, %408 : vector<2x64xf32>
    %411 = arith.divf %409, %410 : vector<2x64xf32>
    %412 = arith.mulf %403, %345 : vector<2x64xf32>
    %413 = arith.mulf %397, %405 : vector<2x64xf32>
    %414 = arith.addf %412, %413 : vector<2x64xf32>
    %415 = math.tanh %414 : vector<2x64xf32>
    %416 = arith.mulf %411, %415 : vector<2x64xf32>
    %417 = arith.index_cast %c5_i32 : i32 to index
    %c0_109 = arith.constant 0 : index
    %c0_110 = arith.constant 0 : index
    %418 = vector.load %arg10[%417, %c0_109, %c0_110] : memref<8x2x64xf32, #tpu.memory_space<vmem>>, vector<1x2x64xf32>
    %419 = vector.shape_cast %418 : vector<1x2x64xf32> to vector<2x64xf32>
    %420 = vector.shape_cast %389 : vector<2x64xf32> to vector<1x2x64xf32>
    tpu.vector_store %arg10[%417, %c0_109, %c0_110], %420 {strides = array<i32>} : memref<8x2x64xf32, #tpu.memory_space<vmem>>, vector<1x2x64xf32>,
    %421 = arith.index_cast %356 : i32 to index
    %c0_111 = arith.constant 0 : index
    %c0_112 = arith.constant 0 : index
    %422 = vector.load %arg11[%421, %c0_111, %c0_112] : memref<8x2x64xf32, #tpu.memory_space<vmem>>, vector<1x2x64xf32>
    %423 = vector.shape_cast %422 : vector<1x2x64xf32> to vector<2x64xf32>
    %424 = vector.shape_cast %416 : vector<2x64xf32> to vector<1x2x64xf32>
    tpu.vector_store %arg11[%421, %c0_111, %c0_112], %424 {strides = array<i32>} : memref<8x2x64xf32, #tpu.memory_space<vmem>>, vector<1x2x64xf32>,
    %c6_i32 = arith.constant 6 : i32
    %c7_i32_113 = arith.constant 7 : i32
    %425 = arith.subi %c7_i32_113, %c6_i32 : i32
    %c2_i32_114 = arith.constant 2 : i32
    %426 = arith.muli %c6_i32, %c2_i32_114 : i32
    %427 = arith.index_cast %426 : i32 to index
    %c0_115 = arith.constant 0 : index
    %428 = vector.load %arg9[%427, %c0_115] : memref<16x512xf32, #tpu.memory_space<vmem>>, vector<2x256xf32>
    %c2_i32_116 = arith.constant 2 : i32
    %429 = arith.muli %425, %c2_i32_116 : i32
    %430 = arith.index_cast %429 : i32 to index
    %c256_117 = arith.constant 256 : index
    %431 = vector.load %arg9[%430, %c256_117] : memref<16x512xf32, #tpu.memory_space<vmem>>, vector<2x256xf32>
    %cst_118 = arith.constant dense<0.000000e+00> : vector<2x256xf32>
    %432 = tpu.matmul %389, %8, %cst_118 {dimension_numbers = #tpu.dot_dimension_numbers<[1], [0], [0], [1], [0, 0, 1, 1], [], []>} : vector<2x64xf32>, vector<64x256xf32>, vector<2x256xf32> -> vector<2x256xf32>
    %433 = arith.addf %428, %432 : vector<2x256xf32>
    %434 = vector.extract_strided_slice %433 {offsets = [0, 0], sizes = [2, 64], strides = [1, 1]} : vector<2x256xf32> to vector<2x64xf32>
    %435 = arith.negf %434 : vector<2x64xf32>
    %436 = math.exp %435 : vector<2x64xf32>
    %cst_119 = arith.constant 1.000000e+00 : f32
    %437 = vector.broadcast %cst_119 : f32 to vector<2x64xf32>
    %438 = arith.addf %437, %436 : vector<2x64xf32>
    %439 = arith.divf %437, %438 : vector<2x64xf32>
    %440 = vector.extract_strided_slice %433 {offsets = [0, 64], sizes = [2, 64], strides = [1, 1]} : vector<2x256xf32> to vector<2x64xf32>
    %441 = arith.negf %440 : vector<2x64xf32>
    %442 = math.exp %441 : vector<2x64xf32>
    %cst_120 = arith.constant 1.000000e+00 : f32
    %443 = vector.broadcast %cst_120 : f32 to vector<2x64xf32>
    %444 = arith.addf %443, %442 : vector<2x64xf32>
    %445 = arith.divf %443, %444 : vector<2x64xf32>
    %446 = vector.extract_strided_slice %433 {offsets = [0, 128], sizes = [2, 64], strides = [1, 1]} : vector<2x256xf32> to vector<2x64xf32>
    %447 = math.tanh %446 : vector<2x64xf32>
    %448 = vector.extract_strided_slice %433 {offsets = [0, 192], sizes = [2, 64], strides = [1, 1]} : vector<2x256xf32> to vector<2x64xf32>
    %449 = arith.negf %448 : vector<2x64xf32>
    %450 = math.exp %449 : vector<2x64xf32>
    %cst_121 = arith.constant 1.000000e+00 : f32
    %451 = vector.broadcast %cst_121 : f32 to vector<2x64xf32>
    %452 = arith.addf %451, %450 : vector<2x64xf32>
    %453 = arith.divf %451, %452 : vector<2x64xf32>
    %454 = arith.mulf %445, %387 : vector<2x64xf32>
    %455 = arith.mulf %439, %447 : vector<2x64xf32>
    %456 = arith.addf %454, %455 : vector<2x64xf32>
    %457 = math.tanh %456 : vector<2x64xf32>
    %458 = arith.mulf %453, %457 : vector<2x64xf32>
    %cst_122 = arith.constant dense<0.000000e+00> : vector<2x256xf32>
    %459 = tpu.matmul %416, %9, %cst_122 {dimension_numbers = #tpu.dot_dimension_numbers<[1], [0], [0], [1], [0, 0, 1, 1], [], []>} : vector<2x64xf32>, vector<64x256xf32>, vector<2x256xf32> -> vector<2x256xf32>
    %460 = arith.addf %431, %459 : vector<2x256xf32>
    %461 = vector.extract_strided_slice %460 {offsets = [0, 0], sizes = [2, 64], strides = [1, 1]} : vector<2x256xf32> to vector<2x64xf32>
    %462 = arith.negf %461 : vector<2x64xf32>
    %463 = math.exp %462 : vector<2x64xf32>
    %cst_123 = arith.constant 1.000000e+00 : f32
    %464 = vector.broadcast %cst_123 : f32 to vector<2x64xf32>
    %465 = arith.addf %464, %463 : vector<2x64xf32>
    %466 = arith.divf %464, %465 : vector<2x64xf32>
    %467 = vector.extract_strided_slice %460 {offsets = [0, 64], sizes = [2, 64], strides = [1, 1]} : vector<2x256xf32> to vector<2x64xf32>
    %468 = arith.negf %467 : vector<2x64xf32>
    %469 = math.exp %468 : vector<2x64xf32>
    %cst_124 = arith.constant 1.000000e+00 : f32
    %470 = vector.broadcast %cst_124 : f32 to vector<2x64xf32>
    %471 = arith.addf %470, %469 : vector<2x64xf32>
    %472 = arith.divf %470, %471 : vector<2x64xf32>
    %473 = vector.extract_strided_slice %460 {offsets = [0, 128], sizes = [2, 64], strides = [1, 1]} : vector<2x256xf32> to vector<2x64xf32>
    %474 = math.tanh %473 : vector<2x64xf32>
    %475 = vector.extract_strided_slice %460 {offsets = [0, 192], sizes = [2, 64], strides = [1, 1]} : vector<2x256xf32> to vector<2x64xf32>
    %476 = arith.negf %475 : vector<2x64xf32>
    %477 = math.exp %476 : vector<2x64xf32>
    %cst_125 = arith.constant 1.000000e+00 : f32
    %478 = vector.broadcast %cst_125 : f32 to vector<2x64xf32>
    %479 = arith.addf %478, %477 : vector<2x64xf32>
    %480 = arith.divf %478, %479 : vector<2x64xf32>
    %481 = arith.mulf %472, %414 : vector<2x64xf32>
    %482 = arith.mulf %466, %474 : vector<2x64xf32>
    %483 = arith.addf %481, %482 : vector<2x64xf32>
    %484 = math.tanh %483 : vector<2x64xf32>
    %485 = arith.mulf %480, %484 : vector<2x64xf32>
    %486 = arith.index_cast %c6_i32 : i32 to index
    %c0_126 = arith.constant 0 : index
    %c0_127 = arith.constant 0 : index
    %487 = vector.load %arg10[%486, %c0_126, %c0_127] : memref<8x2x64xf32, #tpu.memory_space<vmem>>, vector<1x2x64xf32>
    %488 = vector.shape_cast %487 : vector<1x2x64xf32> to vector<2x64xf32>
    %489 = vector.shape_cast %458 : vector<2x64xf32> to vector<1x2x64xf32>
    tpu.vector_store %arg10[%486, %c0_126, %c0_127], %489 {strides = array<i32>} : memref<8x2x64xf32, #tpu.memory_space<vmem>>, vector<1x2x64xf32>,
    %490 = arith.index_cast %425 : i32 to index
    %c0_128 = arith.constant 0 : index
    %c0_129 = arith.constant 0 : index
    %491 = vector.load %arg11[%490, %c0_128, %c0_129] : memref<8x2x64xf32, #tpu.memory_space<vmem>>, vector<1x2x64xf32>
    %492 = vector.shape_cast %491 : vector<1x2x64xf32> to vector<2x64xf32>
    %493 = vector.shape_cast %485 : vector<2x64xf32> to vector<1x2x64xf32>
    tpu.vector_store %arg11[%490, %c0_128, %c0_129], %493 {strides = array<i32>} : memref<8x2x64xf32, #tpu.memory_space<vmem>>, vector<1x2x64xf32>,
    %c7_i32_130 = arith.constant 7 : i32
    %c7_i32_131 = arith.constant 7 : i32
    %494 = arith.subi %c7_i32_131, %c7_i32_130 : i32
    %c2_i32_132 = arith.constant 2 : i32
    %495 = arith.muli %c7_i32_130, %c2_i32_132 : i32
    %496 = arith.index_cast %495 : i32 to index
    %c0_133 = arith.constant 0 : index
    %497 = vector.load %arg9[%496, %c0_133] : memref<16x512xf32, #tpu.memory_space<vmem>>, vector<2x256xf32>
    %c2_i32_134 = arith.constant 2 : i32
    %498 = arith.muli %494, %c2_i32_134 : i32
    %499 = arith.index_cast %498 : i32 to index
    %c256_135 = arith.constant 256 : index
    %500 = vector.load %arg9[%499, %c256_135] : memref<16x512xf32, #tpu.memory_space<vmem>>, vector<2x256xf32>
    %cst_136 = arith.constant dense<0.000000e+00> : vector<2x256xf32>
    %501 = tpu.matmul %458, %8, %cst_136 {dimension_numbers = #tpu.dot_dimension_numbers<[1], [0], [0], [1], [0, 0, 1, 1], [], []>} : vector<2x64xf32>, vector<64x256xf32>, vector<2x256xf32> -> vector<2x256xf32>
    %502 = arith.addf %497, %501 : vector<2x256xf32>
    %503 = vector.extract_strided_slice %502 {offsets = [0, 0], sizes = [2, 64], strides = [1, 1]} : vector<2x256xf32> to vector<2x64xf32>
    %504 = arith.negf %503 : vector<2x64xf32>
    %505 = math.exp %504 : vector<2x64xf32>
    %cst_137 = arith.constant 1.000000e+00 : f32
    %506 = vector.broadcast %cst_137 : f32 to vector<2x64xf32>
    %507 = arith.addf %506, %505 : vector<2x64xf32>
    %508 = arith.divf %506, %507 : vector<2x64xf32>
    %509 = vector.extract_strided_slice %502 {offsets = [0, 64], sizes = [2, 64], strides = [1, 1]} : vector<2x256xf32> to vector<2x64xf32>
    %510 = arith.negf %509 : vector<2x64xf32>
    %511 = math.exp %510 : vector<2x64xf32>
    %cst_138 = arith.constant 1.000000e+00 : f32
    %512 = vector.broadcast %cst_138 : f32 to vector<2x64xf32>
    %513 = arith.addf %512, %511 : vector<2x64xf32>
    %514 = arith.divf %512, %513 : vector<2x64xf32>
    %515 = vector.extract_strided_slice %502 {offsets = [0, 128], sizes = [2, 64], strides = [1, 1]} : vector<2x256xf32> to vector<2x64xf32>
    %516 = math.tanh %515 : vector<2x64xf32>
    %517 = vector.extract_strided_slice %502 {offsets = [0, 192], sizes = [2, 64], strides = [1, 1]} : vector<2x256xf32> to vector<2x64xf32>
    %518 = arith.negf %517 : vector<2x64xf32>
    %519 = math.exp %518 : vector<2x64xf32>
    %cst_139 = arith.constant 1.000000e+00 : f32
    %520 = vector.broadcast %cst_139 : f32 to vector<2x64xf32>
    %521 = arith.addf %520, %519 : vector<2x64xf32>
    %522 = arith.divf %520, %521 : vector<2x64xf32>
    %523 = arith.mulf %514, %456 : vector<2x64xf32>
    %524 = arith.mulf %508, %516 : vector<2x64xf32>
    %525 = arith.addf %523, %524 : vector<2x64xf32>
    %526 = math.tanh %525 : vector<2x64xf32>
    %527 = arith.mulf %522, %526 : vector<2x64xf32>
    %cst_140 = arith.constant dense<0.000000e+00> : vector<2x256xf32>
    %528 = tpu.matmul %485, %9, %cst_140 {dimension_numbers = #tpu.dot_dimension_numbers<[1], [0], [0], [1], [0, 0, 1, 1], [], []>} : vector<2x64xf32>, vector<64x256xf32>, vector<2x256xf32> -> vector<2x256xf32>
    %529 = arith.addf %500, %528 : vector<2x256xf32>
    %530 = vector.extract_strided_slice %529 {offsets = [0, 0], sizes = [2, 64], strides = [1, 1]} : vector<2x256xf32> to vector<2x64xf32>
    %531 = arith.negf %530 : vector<2x64xf32>
    %532 = math.exp %531 : vector<2x64xf32>
    %cst_141 = arith.constant 1.000000e+00 : f32
    %533 = vector.broadcast %cst_141 : f32 to vector<2x64xf32>
    %534 = arith.addf %533, %532 : vector<2x64xf32>
    %535 = arith.divf %533, %534 : vector<2x64xf32>
    %536 = vector.extract_strided_slice %529 {offsets = [0, 64], sizes = [2, 64], strides = [1, 1]} : vector<2x256xf32> to vector<2x64xf32>
    %537 = arith.negf %536 : vector<2x64xf32>
    %538 = math.exp %537 : vector<2x64xf32>
    %cst_142 = arith.constant 1.000000e+00 : f32
    %539 = vector.broadcast %cst_142 : f32 to vector<2x64xf32>
    %540 = arith.addf %539, %538 : vector<2x64xf32>
    %541 = arith.divf %539, %540 : vector<2x64xf32>
    %542 = vector.extract_strided_slice %529 {offsets = [0, 128], sizes = [2, 64], strides = [1, 1]} : vector<2x256xf32> to vector<2x64xf32>
    %543 = math.tanh %542 : vector<2x64xf32>
    %544 = vector.extract_strided_slice %529 {offsets = [0, 192], sizes = [2, 64], strides = [1, 1]} : vector<2x256xf32> to vector<2x64xf32>
    %545 = arith.negf %544 : vector<2x64xf32>
    %546 = math.exp %545 : vector<2x64xf32>
    %cst_143 = arith.constant 1.000000e+00 : f32
    %547 = vector.broadcast %cst_143 : f32 to vector<2x64xf32>
    %548 = arith.addf %547, %546 : vector<2x64xf32>
    %549 = arith.divf %547, %548 : vector<2x64xf32>
    %550 = arith.mulf %541, %483 : vector<2x64xf32>
    %551 = arith.mulf %535, %543 : vector<2x64xf32>
    %552 = arith.addf %550, %551 : vector<2x64xf32>
    %553 = math.tanh %552 : vector<2x64xf32>
    %554 = arith.mulf %549, %553 : vector<2x64xf32>
    %555 = arith.index_cast %c7_i32_130 : i32 to index
    %c0_144 = arith.constant 0 : index
    %c0_145 = arith.constant 0 : index
    %556 = vector.load %arg10[%555, %c0_144, %c0_145] : memref<8x2x64xf32, #tpu.memory_space<vmem>>, vector<1x2x64xf32>
    %557 = vector.shape_cast %556 : vector<1x2x64xf32> to vector<2x64xf32>
    %558 = vector.shape_cast %527 : vector<2x64xf32> to vector<1x2x64xf32>
    tpu.vector_store %arg10[%555, %c0_144, %c0_145], %558 {strides = array<i32>} : memref<8x2x64xf32, #tpu.memory_space<vmem>>, vector<1x2x64xf32>,
    %559 = arith.index_cast %494 : i32 to index
    %c0_146 = arith.constant 0 : index
    %c0_147 = arith.constant 0 : index
    %560 = vector.load %arg11[%559, %c0_146, %c0_147] : memref<8x2x64xf32, #tpu.memory_space<vmem>>, vector<1x2x64xf32>
    %561 = vector.shape_cast %560 : vector<1x2x64xf32> to vector<2x64xf32>
    %562 = vector.shape_cast %554 : vector<2x64xf32> to vector<1x2x64xf32>
    tpu.vector_store %arg11[%559, %c0_146, %c0_147], %562 {strides = array<i32>} : memref<8x2x64xf32, #tpu.memory_space<vmem>>, vector<1x2x64xf32>,
    %c8_i32 = arith.constant 8 : i32
    %c0_148 = arith.constant 0 : index
    %c0_149 = arith.constant 0 : index
    %c0_150 = arith.constant 0 : index
    %563 = vector.load %arg10[%c0_148, %c0_149, %c0_150] : memref<8x2x64xf32, #tpu.memory_space<vmem>>, vector<8x2x64xf32>
    %c0_151 = arith.constant 0 : index
    %c0_152 = arith.constant 0 : index
    %c0_153 = arith.constant 0 : index
    %564 = vector.load %arg11[%c0_151, %c0_152, %c0_153] : memref<8x2x64xf32, #tpu.memory_space<vmem>>, vector<8x2x64xf32>
    %c0_154 = arith.constant 0 : index
    %c0_155 = arith.constant 0 : index
    %565 = vector.load %arg2[%c0_154, %c0_155] : memref<2x128xf32, #tpu.memory_space<vmem>>, vector<2x128xf32>
    %566 = vector.extract_strided_slice %565 {offsets = [0, 0], sizes = [2, 64], strides = [1, 1]} : vector<2x128xf32> to vector<2x64xf32>
    %567 = vector.extract_strided_slice %565 {offsets = [0, 64], sizes = [2, 64], strides = [1, 1]} : vector<2x128xf32> to vector<2x64xf32>
    %568 = vector.shape_cast %566 : vector<2x64xf32> to vector<1x2x64xf32>
    %569 = vector.broadcast %568 : vector<1x2x64xf32> to vector<8x2x64xf32>
    %570 = arith.mulf %563, %569 : vector<8x2x64xf32>
    %cst_156 = arith.constant dense<0.000000e+00> : vector<8x2xf32>
    %571 = vector.multi_reduction <add>, %570, %cst_156 [2] : vector<8x2x64xf32> to vector<8x2xf32>
    %572 = vector.shape_cast %567 : vector<2x64xf32> to vector<1x2x64xf32>
    %573 = vector.broadcast %572 : vector<1x2x64xf32> to vector<8x2x64xf32>
    %574 = arith.mulf %564, %573 : vector<8x2x64xf32>
    %cst_157 = arith.constant dense<0.000000e+00> : vector<8x2xf32>
    %575 = vector.multi_reduction <add>, %574, %cst_157 [2] : vector<8x2x64xf32> to vector<8x2xf32>
    %576 = arith.addf %571, %575 : vector<8x2xf32>
    %577 = tpu.iota {dimensions = array<i32: 0>} : vector<8x2xi32>
    %c0_158 = arith.constant 0 : index
    %c0_159 = arith.constant 0 : index
    %c0_160 = arith.constant 0 : index
    %578 = vector.load %arg3[%c0_158, %c0_159, %c0_160] : memref<1x1x2xi32, #tpu.memory_space<vmem>>, vector<1x1x2xi32>
    %579 = vector.shape_cast %578 : vector<1x1x2xi32> to vector<1x2xi32>
    %580 = vector.broadcast %579 : vector<1x2xi32> to vector<8x2xi32>
    %581 = arith.cmpi slt, %577, %580 : vector<8x2xi32>
    %cst_161 = arith.constant -1.000000e+30 : f32
    %582 = vector.broadcast %cst_161 : f32 to vector<8x2xf32>
    %583 = arith.select %581, %576, %582 : vector<8x2xi1>, vector<8x2xf32>
    %cst_162 = arith.constant dense<0xFF800000> : vector<2xf32>
    %584 = vector.multi_reduction <maximumf>, %583, %cst_162 [0] : vector<8x2xf32> to vector<2xf32>
    %585 = vector.shape_cast %584 : vector<2xf32> to vector<1x2xf32>
    %586 = vector.broadcast %585 : vector<1x2xf32> to vector<8x2xf32>
    %587 = arith.subf %583, %586 : vector<8x2xf32>
    %588 = math.exp %587 : vector<8x2xf32>
    %cst_163 = arith.constant dense<0.000000e+00> : vector<2xf32>
    %589 = vector.multi_reduction <add>, %588, %cst_163 [0] : vector<8x2xf32> to vector<2xf32>
    %590 = vector.shape_cast %589 : vector<2xf32> to vector<1x2xf32>
    %591 = vector.broadcast %590 : vector<1x2xf32> to vector<8x2xf32>
    %592 = arith.divf %588, %591 : vector<8x2xf32>
    %593 = vector.shape_cast %592 : vector<8x2xf32> to vector<8x2x1xf32>
    %594 = vector.broadcast %593 : vector<8x2x1xf32> to vector<8x2x64xf32>
    %595 = arith.mulf %594, %563 : vector<8x2x64xf32>
    %cst_164 = arith.constant dense<0.000000e+00> : vector<2x64xf32>
    %596 = vector.multi_reduction <add>, %595, %cst_164 [0] : vector<8x2x64xf32> to vector<2x64xf32>
    %597 = vector.shape_cast %592 : vector<8x2xf32> to vector<8x2x1xf32>
    %598 = vector.broadcast %597 : vector<8x2x1xf32> to vector<8x2x64xf32>
    %599 = arith.mulf %598, %564 : vector<8x2x64xf32>
    %cst_165 = arith.constant dense<0.000000e+00> : vector<2x64xf32>
    %600 = vector.multi_reduction <add>, %599, %cst_165 [0] : vector<8x2x64xf32> to vector<2x64xf32>
    %601 = tpu.concatenate %596, %600 in 1 : vector<2x64xf32>, vector<2x64xf32> -> vector<2x128xf32>
    %c0_166 = arith.constant 0 : index
    %c0_167 = arith.constant 0 : index
    %c0_168 = arith.constant 0 : index
    %602 = vector.load %arg8[%c0_166, %c0_167, %c0_168] : memref<1x2x128xf32, #tpu.memory_space<vmem>>, vector<1x2x128xf32>
    %603 = vector.shape_cast %602 : vector<1x2x128xf32> to vector<2x128xf32>
    %604 = vector.shape_cast %601 : vector<2x128xf32> to vector<1x2x128xf32>
    tpu.vector_store %arg8[%c0_166, %c0_167, %c0_168], %604 {strides = array<i32>} : memref<1x2x128xf32, #tpu.memory_space<vmem>>, vector<1x2x128xf32>,
    return
  }
  func.func @transform_0(%arg0: i32) -> (i32, i32, i32) {
    %c0_i32 = arith.constant 0 : i32
    %c0_i32_0 = arith.constant 0 : i32
    %c0_i32_1 = arith.constant 0 : i32
    return %arg0, %c0_i32, %c0_i32_0 : i32, i32, i32
  }
  func.func @transform_1(%arg0: i32) -> (i32, i32) {
    %c0_i32 = arith.constant 0 : i32
    %c0_i32_0 = arith.constant 0 : i32
    %c0_i32_1 = arith.constant 0 : i32
    return %c0_i32, %c0_i32_0 : i32, i32
  }
  func.func @transform_2(%arg0: i32) -> (i32, i32, i32) {
    %c0_i32 = arith.constant 0 : i32
    %c0_i32_0 = arith.constant 0 : i32
    %c0_i32_1 = arith.constant 0 : i32
    return %arg0, %c0_i32, %c0_i32_0 : i32, i32, i32
  }
  func.func @transform_3(%arg0: i32) -> (i32, i32) {
    %c0_i32 = arith.constant 0 : i32
    %c0_i32_0 = arith.constant 0 : i32
    %c0_i32_1 = arith.constant 0 : i32
    return %c0_i32, %c0_i32_0 : i32, i32
  }
  func.func @transform_4(%arg0: i32) -> (i32, i32) {
    %c0_i32 = arith.constant 0 : i32
    %c0_i32_0 = arith.constant 0 : i32
    %c0_i32_1 = arith.constant 0 : i32
    return %c0_i32, %c0_i32_0 : i32, i32
  }
  func.func @transform_5(%arg0: i32) -> (i32, i32) {
    %c0_i32 = arith.constant 0 : i32
    %c0_i32_0 = arith.constant 0 : i32
    %c0_i32_1 = arith.constant 0 : i32
    return %c0_i32, %c0_i32_0 : i32, i32
  }
  func.func @transform_6(%arg0: i32) -> (i32, i32) {
    %c0_i32 = arith.constant 0 : i32
    %c0_i32_0 = arith.constant 0 : i32
    %c0_i32_1 = arith.constant 0 : i32
    return %c0_i32, %c0_i32_0 : i32, i32
  }
  func.func @transform_7(%arg0: i32) -> (i32, i32, i32) {
    %c0_i32 = arith.constant 0 : i32
    %c0_i32_0 = arith.constant 0 : i32
    %c0_i32_1 = arith.constant 0 : i32
    return %arg0, %c0_i32, %c0_i32_0 : i32, i32, i32
  }
}

</mosaic_0001>

<bundles_post_ra>
// kernel: tpu_custom_call.1
= control target key start
LH: loop header
LB: loop body
LE: loop exit
PB: predicated region body
PF: predicated region fallthrough
CT: control target
= control target key end

     0   :  { %s4561_s0 = inlined_call_operand.hbm [shape: f32[2,16,32], index: 0, kind: input, shape index: {}]   ;;  %s4562_s1 = inlined_call_operand.vmem [shape: f32[2,128], index: 1, kind: input, shape index: {}]   ;;  %s4563_s2 = inlined_call_operand.hbm [shape: s32[2,1,2], index: 2, kind: input, shape index: {}]   ;;  %s4564_s3 = inlined_call_operand.hbm [shape: f32[32,512], index: 3, kind: input, shape index: {}]   ;;  %s4565_s4 = inlined_call_operand.hbm [shape: f32[64,256], index: 4, kind: input, shape index: {}]   ;;  %s4566_s5 = inlined_call_operand.hbm [shape: f32[64,256], index: 5, kind: input, shape index: {}]   ;;  %s4567_s6 = inlined_call_operand.vmem [shape: f32[1,512], index: 6, kind: input, shape index: {}]   ;;  %s4568_s7 = inlined_call_operand.hbm [shape: f32[2,2,128], index: 7, kind: output, shape index: {}]  }
   0x1   :  { %4574 = sst [smem:[#allocation21_spill]] %s4561_s0 }
   0x2   :  { %4575 = sst [smem:[#allocation22_spill]] %s4564_s3 }
   0x3   :  { %4576 = sst [smem:[#allocation23_spill]] %s4565_s4 }
   0x4   :  { %12 = vsyncpa [#allocation6], 0 }
   0x5   :  { %14 = vsyncpa [#allocation6 + $0x1], 0 }
   0x6   :  { %15 = vsyncpa [#allocation9], 0 }
   0x7   :  { %17 = vsyncpa [#allocation9 + $0x1], 0 }
   0x8   :  { %18 = vsyncpa [#allocation12], 0 }
   0x9   :  { %19 = vsyncpa [#allocation7], 0 }
   0xa   :  { %21 = vsyncpa [#allocation7 + $0x1], 0  ;;  %s3771_s24 = smov 0   ;;  %s3773_s25 = smov 0  }
   0xb   :  { %s3775_s26 = smov 0   ;;  %s3777_s27 = smov 0  }
   0xc LB: > { %s3792_s28 = sadd.s32 4294967295, %s3715_s27   ;;  %s2863_s29 = sadd.s32 4294967294, %s3715_s27   ;;  %s3715_s27 = sphi %s3777_s27, %s4602_s27   ;;  %s3711_s26 = sphi %s3775_s26, %s4601_s26   ;;  %s3707_s25 = sphi %s3773_s25, %s4600_s25   ;;  %s3703_s24 = sphi %s3771_s24, %s4599_s24  }
   0xd   : > { %p47_p0 = scmp.ne.s32.totalorder %s3707_s25, %s3703_s24  ;;  %p4569_p1 = scmp.eq.s32.totalorder %s3792_s28, 0 }
   0xe   : > { %p208_p3 = scmp.eq.s32.totalorder %s2863_s29, 1  ;;  %p2864_p5 = scmp.ge.s32.totalorder %s3715_s27, 1 }
   0xf   : > { %p3801_p4 = por %p4569_p1, %p47_p0  ;;  %p215_p7 = scmp.lt.s32.totalorder %s3715_s27, 3 }
  0x10   : > { %p3806_p6 = por %p208_p3, %p47_p0  ;;  %s3717_s10 = smov [#allocation10]  }
  0x11   : > { %s4577_s30 = scalar_select %p3801_p4, 1, 0 }
  0x12   : > { %s4578_s8 = scalar_select %p3806_p6, 1, 0 }
  0x13   : > { %p3811_p8 = pnand %p2864_p5, %p215_p7  ;;  %s230_s11 = sshll.u32 %s3717_s10, 4  ;;  %s3815_s11 = int_to_ptr.vmem [resolvable:$true] %s230_s11 }
  0x14   : > { %4579 = sst [smem:[#allocation20_spill]] %s4578_s8  ;;  %s3718_s13 = smov [#allocation11]  }
  0x15   : > { %s4580_s9 = scalar_select %p3811_p8, 1, 0 }
  0x16   : > { %p3225_p9 = pneg %p3811_p8  ;;  %s243_s14 = sshll.u32 %s3718_s13, 4  ;;  %s3826_s14 = int_to_ptr.vmem [resolvable:$true] %s243_s14 }
  0x17   : > { %s4582_s3 = sld [smem:[#allocation22_spill]] }
  0x18   : > { %p3822_p11 = pnand %p3225_p9, %p4569_p1 }
  0x1a   : > { %p3836_p13 = pneg %p3822_p11 }
  0x1d   : > { %s3493_s17 = scalar_lea.hbm %s4582_s3, 2048 }
  0x1e   : > { %p3494_p12 = scmp.ne.s32.totalorder %s4582_s3, %s3493_s17  ;;  %p3500_p5 = scmp.lt.u32.totalorder %s3493_s17, %s4582_s3 }
  0x20   : > { %p3496_p0 = pnand %p3836_p13, %p3494_p12 }
  0x22   : > { %p3497_p3 = pneg %p3496_p0 }
  0x24   : > { %p3502_p7 = pnand %p3500_p5, %p3497_p3 }
  0x26   : > { %3505 = shalt.err (!%p3502_p7)
}
  0x27   : > { %s3506_s23 = scalar_lea.vmem %s3815_s11, 2048  ;;  %p3514_p2 = scmp.lt.s32.totalorder %s3815_s11, %s3815_s11 }
  0x28   : > { %p3507_p9 = scmp.ne.s32.totalorder %s3815_s11, %s3506_s23  ;;  %p3515_p6 = scmp.lt.s32.totalorder %s3506_s23, %s3506_s23 }
  0x2a   : > { %p3509_p10 = pnand %p3507_p9, %p3836_p13  ;;  %p3516_p12 = por %p3515_p6, %p3514_p2 }
  0x2c   : > { %p3510_p1 = pneg %p3509_p10 }
  0x2e   : > { %p3517_p0 = pnand %p3516_p12, %p3510_p1 }
  0x30   : > { %3520 = shalt.err (!%p3517_p0)
}
  0x31   : > { %s3719_s29 = smov 512   ;;  %s3720_s10 = smov 32  }
  0x32   : > { %3228 = dma.hbm_to_vmem [thread:$0]  (!%p3822_p11), %s4582_s3, 2048, %s3815_s11, [#allocation9], %s3719_s29, %s3719_s29, %s3720_s10  }
  0x33   : > { %s4584_s4 = sld [smem:[#allocation23_spill]] }
  0x39   : > { %s3521_s18 = scalar_lea.hbm %s4584_s4, 2048 }
  0x3a   : > { %p3522_p2 = scmp.ne.s32.totalorder %s4584_s4, %s3521_s18  ;;  %p3528_p10 = scmp.lt.u32.totalorder %s3521_s18, %s4584_s4 }
  0x3c   : > { %p3524_p1 = pnand %p3522_p2, %p3836_p13 }
  0x3e   : > { %p3525_p6 = pneg %p3524_p1 }
  0x40   : > { %p3530_p3 = pnand %p3528_p10, %p3525_p6 }
  0x42   : > { %3533 = shalt.err (!%p3530_p3)
}
  0x43   : > { %s3534_s11 = scalar_lea.vmem %s3826_s14, 2048  ;;  %p3542_p12 = scmp.lt.s32.totalorder %s3826_s14, %s3826_s14 }
  0x44   : > { %p3535_p5 = scmp.ne.s32.totalorder %s3826_s14, %s3534_s11  ;;  %p3543_p0 = scmp.lt.s32.totalorder %s3534_s11, %s3534_s11 }
  0x46   : > { %p3537_p7 = pnand %p3535_p5, %p3836_p13  ;;  %p3544_p2 = por %p3543_p0, %p3542_p12 }
  0x48   : > { %p3538_p9 = pneg %p3537_p7 }
  0x4a   : > { %p3545_p1 = pnand %p3544_p2, %p3538_p9 }
  0x4c   : > { %3548 = shalt.err (!%p3545_p1)
}
  0x4d   : > { %s3721_s29 = smov 256   ;;  %s3722_s10 = smov 16  }
  0x4e   : > { %3231 = dma.hbm_to_vmem [thread:$0]  (!%p3822_p11), %s4584_s4, 2048, %s3826_s14, [#allocation12], %s3721_s29, %s3721_s29, %s3722_s10  }
  0x4f   : > { %s3723_s16 = smov [#allocation13]   ;;  %s3881_s18 = sadd.s32 1, %s3715_s27  }
  0x50   : > { %s256_s17 = sshll.u32 %s3723_s16, 4  ;;  %s3549_s22 = scalar_lea.hbm %s4566_s5, 2048  ;;  %s257_s17 = int_to_ptr.vmem [resolvable:$true] %s256_s17 }
  0x51   : > { %p3550_p6 = scmp.ne.s32.totalorder %s4566_s5, %s3549_s22  ;;  %p3556_p5 = scmp.lt.u32.totalorder %s3549_s22, %s4566_s5 }
  0x53   : > { %p3552_p10 = pnand %p3550_p6, %p3836_p13 }
  0x55   : > { %p3553_p3 = pneg %p3552_p10 }
  0x57   : > { %p3558_p7 = pnand %p3556_p5, %p3553_p3 }
  0x59   : > { %3561 = shalt.err (!%p3558_p7)
}
  0x5a   : > { %s3562_s14 = scalar_lea.vmem %s257_s17, 2048  ;;  %p3570_p2 = scmp.lt.s32.totalorder %s257_s17, %s257_s17 }
  0x5b   : > { %p3563_p9 = scmp.ne.s32.totalorder %s257_s17, %s3562_s14  ;;  %p3571_p1 = scmp.lt.s32.totalorder %s3562_s14, %s3562_s14 }
  0x5d   : > { %p3565_p12 = pnand %p3563_p9, %p3836_p13  ;;  %p3572_p4 = por %p3571_p1, %p3570_p2 }
  0x5f   : > { %p3566_p0 = pneg %p3565_p12 }
  0x61   : > { %p3573_p8 = pnand %p3572_p4, %p3566_p0 }
  0x63   : > { %3576 = shalt.err (!%p3573_p8)
}
  0x64   : > { %3234 = dma.hbm_to_vmem [thread:$0]  (!%p3822_p11), %s4566_s5, 2048, %s257_s17, [#allocation12], %s3721_s29, %s3721_s29, %s3722_s10  }
  0x65   : > { %s31_s3 = ssub.s32 %s3715_s27, %s3881_s18  ;;  %s34_s8 = sadd.s32 1, %s3711_s26 }
  0x66   : > { %p32_p4 = scmp.eq.s32.totalorder %s31_s3, 0  ;;  %p41_p8 = scmp.ne.s32.totalorder %s3711_s26, %s3707_s25 }
  0x67   : > { %p42_p13 = scmp.eq.s32.totalorder %s3715_s27, 0  ;;  %p3249_p6 = scmp.lt.s32.totalorder %s3715_s27, 2 }
  0x68   : > { %s3909_s12 = scalar_select %p32_p4, %s3711_s26, %s34_s8  }
  0x69   : > { %p43_p10 = por %p42_p13, %p41_p8  ;;  %p4585_p3 = scmp.eq.s32.totalorder %s3792_s28, 1 }
  0x6a   : > { %s3918_s16 = sand.u32 1, %s3711_s26   ;;  %s2934_s19 = sshll.u32 %s3715_s27, 8 }
  0x6b   : > { %p3913_p5 = por %p4585_p3, %p41_p8  ;;  %s2869_s29 = sshll.u32 %s3918_s16, 4 }
  0x6c   : > { %s4587_s0 = sld [smem:[#allocation21_spill]]  ;;  %s277_s22 = scalar_lea.vmem [#allocation5], %s2869_s29 }
  0x6d   : > { %s4586_s20 = scalar_select %p3913_p5, 1, 0 }
  0x6e   : > { %s284_s23 = sshll.u32 %s277_s22, 4  ;;  %p3927_p11 = pnand %p3249_p6, %p43_p10  ;;  %s3931_s23 = int_to_ptr.vmem [resolvable:$true] %s284_s23 }
  0x6f   : > { %s274_s14 = scalar_lea.sflag [#allocation6], %s3918_s16 }
  0x70   : > { %p3579_p9 = pneg %p3927_p11 }
  0x72   : > { %s3925_s21 = scalar_lea.hbm %s4587_s0, %s2934_s19  ;;  %s3582_s8 = scalar_lea.hbm %s4587_s0, 512 }
  0x73   : > { %s3577_s13 = scalar_lea.hbm %s3925_s21, 256  ;;  %p3583_p2 = scmp.lt.u32.totalorder %s3925_s21, %s4587_s0 }
  0x74   : > { %p3578_p7 = scmp.ne.s32.totalorder %s3925_s21, %s3577_s13  ;;  %p3584_p1 = scmp.lt.u32.totalorder %s3582_s8, %s3577_s13 }
  0x75   : > { %p3586_p8 = scmp.lt.u32.totalorder %s3577_s13, %s3925_s21 }
  0x76   : > { %p3580_p12 = pnand %p3579_p9, %p3578_p7  ;;  %p3585_p4 = por %p3584_p1, %p3583_p2 }
  0x78   : > { %p3581_p0 = pneg %p3580_p12  ;;  %p3587_p13 = por %p3586_p8, %p3585_p4 }
  0x7a   : > { %p3588_p6 = pnand %p3587_p13, %p3581_p0 }
  0x7c   : > { %3591 = shalt.err (!%p3588_p6)
}
  0x7d   : > { %s3592_s10 = scalar_lea.vmem %s3931_s23, 256  ;;  %s3724_s17 = smov [#allocation5]  }
  0x7e   : > { %p3593_p10 = scmp.ne.s32.totalorder %s3931_s23, %s3592_s10  ;;  %s3597_s22 = sshll.u32 %s3724_s17, 4  ;;  %s3598_s22 = int_to_ptr.vmem [resolvable:$false] %s3597_s22 }
  0x7f   : > { %s3599_s15 = scalar_lea.vmem %s3598_s22, 512  ;;  %p3600_p12 = scmp.lt.s32.totalorder %s3931_s23, %s3598_s22 }
  0x80   : > { %p3595_p3 = pnand %p3593_p10, %p3579_p9  ;;  %p3601_p2 = scmp.lt.s32.totalorder %s3599_s15, %s3592_s10 }
  0x82   : > { %p3596_p7 = pneg %p3595_p3  ;;  %p3602_p1 = por %p3601_p2, %p3600_p12 }
  0x84   : > { %p3603_p4 = pnand %p3602_p1, %p3596_p7 }
  0x86   : > { %3606 = shalt.err (!%p3603_p4)
}
  0x87   : > { %s3725_s13 = smov 128   ;;  %s3726_s3 = smov 8  }
  0x88   : > { %3238 = dma.hbm_to_vmem [thread:$0]  (!%p3927_p11), %s3925_s21, 256, %s3931_s23, %s274_s14, %s3725_s13, %s3725_s13, %s3726_s3  }
  0x89   : > { %s294_s8 = sand.u32 1, %s3715_s27   ;;  %s2872_s19 = sshll.u32 %s3715_s27, 4 }
  0x8a   : > { %s3966_s17 = scalar_lea.hbm %s4563_s2, %s2872_s19  ;;  %s297_s22 = scalar_lea.vmem [#allocation8], %s3918_s16 }
  0x8b   : > { %s304_s15 = sshll.u32 %s297_s22, 4  ;;  %s295_s0 = scalar_lea.sflag [#allocation9], %s294_s8  ;;  %s305_s15 = int_to_ptr.vmem [resolvable:$true] %s304_s15 }
  0x8c   : > { %s3607_s4 = scalar_lea.hbm %s3966_s17, 16  ;;  %s3612_s14 = scalar_lea.hbm %s4563_s2, 32 }
  0x8d   : > { %p3608_p0 = scmp.ne.s32.totalorder %s3966_s17, %s3607_s4  ;;  %p3613_p6 = scmp.lt.u32.totalorder %s3966_s17, %s4563_s2 }
  0x8e   : > { %p3614_p10 = scmp.lt.u32.totalorder %s3612_s14, %s3607_s4  ;;  %p3616_p7 = scmp.lt.u32.totalorder %s3607_s4, %s3966_s17 }
  0x8f   : > { %p3610_p8 = pnand %p3608_p0, %p3579_p9 }
  0x90   : > { %p3615_p3 = por %p3614_p10, %p3613_p6 }
  0x91   : > { %p3611_p13 = pneg %p3610_p8 }
  0x92   : > { %p3617_p12 = por %p3616_p7, %p3615_p3 }
  0x94   : > { %p3618_p2 = pnand %p3617_p12, %p3611_p13 }
  0x96   : > { %3621 = shalt.err (!%p3618_p2)
}
  0x97   : > { %s3622_s16 = scalar_lea.vmem %s305_s15, 16  ;;  %s3727_s8 = smov [#allocation8]  }
  0x98   : > { %p3623_p1 = scmp.ne.s32.totalorder %s305_s15, %s3622_s16  ;;  %s3627_s19 = sshll.u32 %s3727_s8, 4  ;;  %s3628_s19 = int_to_ptr.vmem [resolvable:$false] %s3627_s19 }
  0x99   : > { %s3629_s29 = scalar_lea.vmem %s3628_s19, 32  ;;  %p3630_p8 = scmp.lt.s32.totalorder %s305_s15, %s3628_s19 }
  0x9a   : > { %p3625_p4 = pnand %p3623_p1, %p3579_p9  ;;  %p3631_p5 = scmp.lt.s32.totalorder %s3629_s29, %s3622_s16 }
  0x9c   : > { %p3626_p0 = pneg %p3625_p4  ;;  %p3632_p6 = por %p3631_p5, %p3630_p8 }
  0x9e   : > { %p3633_p10 = pnand %p3632_p6, %p3626_p0 }
  0xa0   : > { %3636 = shalt.err (!%p3633_p10)
}
  0xa1   : > { %3241 = dma.hbm_to_vmem [thread:$0]  (!%p3927_p11), %s3966_s17, 16, %s305_s15, %s295_s0  }
  0xa2   : > { %p4589_p13 = scmp.ne.s32.totalorder %s4580_s9, 0 }
  0xa3   : > { %s3991_s4 = sand.u32 (!%p4589_p13), 1, %s3707_s25   ;;  %p4590_p5 = scmp.ne.s32.totalorder (!%p4589_p13), %s4577_s30, 0 }
  0xa4   : > { %313 = sbr.rel (%p4589_p13) target bundleno = 4620 (0x120c), region = 48  ;;  %s2874_s10 = sshll.u32 (!%p4589_p13), %s3991_s4, 4 }
  0xa5   : > { %s316_s22 = scalar_lea.sflag (!%p4589_p13), [#allocation6], %s3991_s4  ;;  %s3995_s21 = scalar_lea.vmem (!%p4589_p13), [#allocation5], %s2874_s10 }
  0xab   : > { %3682 = dma.done.wait (%p4590_p5), %s316_s22, 256  }
  0xac   : > { %3684 = vsyncadd (%p4590_p5), %s316_s22, 4294967040  ;;  %s324_s0 = sand.u32 1, %s3792_s28   ;;  %s327_s11 = scalar_lea.vmem [#allocation8], %s3991_s4 }
  0xad   : > { %s325_s9 = scalar_lea.sflag [#allocation9], %s324_s0 }
  0xae   : > { %3686 = dma.done.wait (%p4590_p5), %s325_s9, 16  }
  0xaf   : > { %3688 = vsyncadd (%p4590_p5), %s325_s9, 4294967280  ;;  %p4591_p11 = scmp.eq.s32.totalorder %s3792_s28, 0 }
  0xb1   : > { %3690 = dma.done.wait (%p4591_p11), [#allocation9], 2048   ;;  %p4592_p9 = pmov %p4591_p11 }
  0xb3   : > { %3692 = vsyncadd (%p4592_p9), [#allocation9], 4294965248  ;;  %p4593_p3 = pmov %p4592_p9 }
  0xb5   : > { %3694 = dma.done.wait (%p4593_p3), [#allocation12], 4096   ;;  %p4594_p7 = pmov %p4593_p3 }
  0xb6   : > { %v3728_v0 = vmov 0.0   ;;  %v377_v1 = vld [vmem:[#allocation10 + $0x8] sm:$0xff]  ;;  %v379_v3 = vld [vmem:[#allocation10 + $0x18] sm:$0xff]  ;;  %v376_v6 = vld [vmem:[#allocation10] sm:$0xff]  ;;  %vm414_vm0 = vcmask 261120   ;;  %s3729_s15 = smov 64  }
  0xb7   : > { %3696 = vsyncadd (%p4594_p7), [#allocation12], 4294963200  ;;  %562 = vmatprep.mubr.f32.mxu1 %v3728_v0  ;;  %485 = vmatprep.mubr.f32.mxu0 %v3728_v0  ;;  %v381_v2 = vld [vmem:[#allocation10 + $0x28] sm:$0xff]  ;;  %v383_v5 = vld [vmem:[#allocation10 + $0x38] sm:$0xff]  ;;  %vm619_vm1 = vcmask 523264   ;;  %vm823_vm2 = vcmask 517120  }
  0xb8   : > { %v2935_v4 = vpack.c.bf16 %v381_v2, %v377_v1  ;;  %v380_v7 = vld [vmem:[#allocation10 + $0x20] sm:$0xff]  ;;  %v2943_v8 = vpack.c.bf16 %v383_v5, %v379_v3  ;;  %v378_v10 = vld [vmem:[#allocation10 + $0x10] sm:$0xff]  ;;  %v385_v12 = vld [vmem:[#allocation10 + $0x48] sm:$0xff]  ;;  %vm1056_vm3 = vcmask 519170   ;;  %vm1063_vm4 = vcmask 521220   ;;  %s2878_s13 = sshll.u32 %s3991_s4, 1 }
  0xb9   : > { %v2937_v9 = vpack.c.bf16 %v380_v7, %v376_v6  ;;  %v382_v11 = vld [vmem:[#allocation10 + $0x30] sm:$0xff]  ;;  %v389_v14 = vld [vmem:[#allocation10 + $0x68] sm:$0xff]  ;;  %v387_v15 = vld [vmem:[#allocation10 + $0x58] sm:$0xff]  ;;  %vm830_vm5 = vcmask 523270   ;;  %vm2587_vm6 = vcmask 1041409   ;;  %vm2589_vm7 = vcmask 1042434  }
  0xba   : > { %2936 = vmatprep.subr.bf16.mxu0 %v2935_v4  ;;  %v2945_v13 = vpack.c.bf16 %v382_v11, %v378_v10  ;;  %v391_v16 = vld [vmem:[#allocation10 + $0x78] sm:$0xff]  ;;  %2944 = vmatprep.subr.bf16.mxu1 %v2943_v8  ;;  %v2939_v17 = vpack.c.bf16 %v389_v14, %v385_v12  ;;  %v384_v19 = vld [vmem:[#allocation10 + $0x40] sm:$0xff]  ;;  %v386_v21 = vld [vmem:[#allocation10 + $0x50] sm:$0xff]  ;;  %v394_v12 = vlaneseq  ;;  %vm2591_vm8 = vcmask 1043459   ;;  %s2931_s3 = sshll.u32 %s3792_s28, 5  ;;  %s373_s16 = scalar_lea.vmem [#allocation14], %s2878_s13 }
  0xbb   : > { %2938 = vmatpush1.bf16.msra.mxu0 %v2937_v9  ;;  %v2947_v18 = vpack.c.bf16 %v391_v16, %v387_v15  ;;  %v388_v20 = vld [vmem:[#allocation10 + $0x60] sm:$0xff]  ;;  %v390_v23 = vld [vmem:[#allocation10 + $0x70] sm:$0xff]  ;;  %v584_v24 = vld [vmem:[#allocation11 + $0x8] sm:$0xff]  ;;  %vm2593_vm9 = vcmask 1044484   ;;  %vm2595_vm10 = vcmask 1045509   ;;  %vm2597_vm11 = vcmask 1046534   ;;  %s4516_s10 = scalar_lea.hbm %s4568_s7, %s2931_s3 }
  0xbc   : > { %2946 = vmatpush1.bf16.msra.mxu1 %v2945_v13  ;;  %v2941_v22 = vpack.c.bf16 %v388_v20, %v384_v19  ;;  %2940 = vmatprep.subr.bf16.mxu0 %v2939_v17  ;;  %v2949_v25 = vpack.c.bf16 %v390_v23, %v386_v21  ;;  %v374_v26 = vld [vmem:[%s3995_s21] sm:$0xff]  ;;  %v375_v51 = vld [vmem:[%s3995_s21 + $0x8] sm:$0xff]  ;;  %v4098_v13 = vshrl.u32 %v394_v12, 7  ;;  %vm2599_vm12 = vcmask 1047559   ;;  %s2745_s8 = sshll.u32 %s373_s16, 4  ;;  %s2732_s22 = scalar_lea.sflag [#allocation7], %s3991_s4  ;;  %s4518_s8 = int_to_ptr.vmem [resolvable:$true] %s2745_s8 }
  0xbd   : > { %2948 = vmatprep.subr.bf16.mxu1 %v2947_v18  ;;  %v586_v27 = vld [vmem:[#allocation11 + $0x18] sm:$0xff]  ;;  %v600_v28 = vld [vmem:[#allocation13 + $0x8] sm:$0xff]  ;;  %v583_v32 = vld [vmem:[#allocation11] sm:$0xff]  ;;  %vm2603_vm14 = vcmask 15360   ;;  %s3637_s21 = scalar_lea.vmem %s4518_s8, 32  ;;  %p4595_p2 = scmp.ne.s32.totalorder %s4586_s20, 0 }
  0xbe   : > { %v602_v29 = vld [vmem:[#allocation13 + $0x18] sm:$0xff]  ;;  %v4018_v30 = vpack.c.bf16 %v586_v27, %v584_v24  ;;  %v585_v33 = vld [vmem:[#allocation11 + $0x10] sm:$0xff]  ;;  %v599_v34 = vld [vmem:[#allocation13] sm:$0xff]  ;;  %v396_v14 = vsub.s32 0, %v4098_v13  ;;  %v404_v15 = vsub.s32 2, %v4098_v13  ;;  %v400_v16 = vsub.s32 1, %v4098_v13  ;;  %p3638_p12 = scmp.ne.s32.totalorder %s4518_s8, %s3637_s21 }
  0xbf   : > { %v4020_v31 = vpack.c.bf16 %v602_v29, %v600_v28  ;;  %2942 = vmatpush1.bf16.msra.mxu0 %v2941_v22  ;;  %v4022_v35 = vpack.c.bf16 %v585_v33, %v583_v32  ;;  %v601_v36 = vld [vmem:[#allocation13 + $0x10] sm:$0xff]  ;;  %v588_v37 = vld [vmem:[#allocation11 + $0x28] sm:$0xff]  ;;  %v590_v38 = vld [vmem:[#allocation11 + $0x38] sm:$0xff]  ;;  %v408_v18 = vsub.s32 3, %v4098_v13  ;;  %s3730_s28 = smov [#allocation14]  }
  0xc0   : > { %2950 = vmatpush1.bf16.msra.mxu1 %v2949_v25  ;;  %2952 = vmatprep.subr.bf16.mxu0 %v4018_v30  ;;  %v4025_v39 = vpack.c.bf16 %v601_v36, %v599_v34  ;;  %v4027_v40 = vpack.c.bf16 %v590_v38, %v588_v37  ;;  %v604_v41 = vld [vmem:[#allocation13 + $0x28] sm:$0xff]  ;;  %v606_v42 = vld [vmem:[#allocation13 + $0x38] sm:$0xff]  ;;  %v587_v43 = vld [vmem:[#allocation11 + $0x20] sm:$0xff]  ;;  %p3639_p1 = pnand %p3638_p12, %p4595_p2  ;;  %s3641_s0 = sshll.u32 %s3730_s28, 4  ;;  %s3642_s0 = int_to_ptr.vmem [resolvable:$false] %s3641_s0 }
  0xc1   : > { %2968 = vmatprep.subr.bf16.mxu1 %v4020_v31  ;;  %v4030_v44 = vpack.c.bf16 %v606_v42, %v604_v41  ;;  %v589_v45 = vld [vmem:[#allocation11 + $0x30] sm:$0xff]  ;;  %v603_v46 = vld [vmem:[#allocation13 + $0x20] sm:$0xff]  ;;  %v592_v48 = vld [vmem:[#allocation11 + $0x48] sm:$0xff]  ;;  %s3643_s9 = scalar_lea.vmem %s3642_s0, 64  ;;  %p3644_p0 = scmp.lt.s32.totalorder %s4518_s8, %s3642_s0 }
  0xc2   : > { %v605_v47 = vld [vmem:[#allocation13 + $0x30] sm:$0xff]  ;;  %2879 = vmatmul.mubr.msk.f32.vlgmr.msra.gmra.mrb[0].mxu0 %vm414_vm0, %v374_v26  ;;  %v594_v49 = vld [vmem:[#allocation11 + $0x58] sm:$0xff]  ;;  %v4035_v50 = vpack.c.bf16 %v589_v45, %v587_v43  ;;  %v608_v52 = vld [vmem:[#allocation13 + $0x48] sm:$0xff]  ;;  %p3640_p4 = pneg %p3639_p1  ;;  %p3645_p8 = scmp.lt.s32.totalorder %s3643_s9, %s3637_s21 }
  0xc3   : > { %2881 = vmatmul.mubr.msk.f32.vlgmr.msra.gmra.mrb[0].mxu1 %vm414_vm0, %v374_v26  ;;  %2954 = vmatpush1.bf16.msra.mxu0 %v4022_v35  ;;  %v610_v53 = vld [vmem:[#allocation13 + $0x58] sm:$0xff]  ;;  %v4040_v54 = vpack.c.bf16 %v605_v47, %v603_v46  ;;  %v4042_v55 = vpack.c.bf16 %v594_v49, %v592_v48  ;;  %v591_v56 = vld [vmem:[#allocation11 + $0x40] sm:$0xff]  ;;  %v593_v57 = vld [vmem:[#allocation11 + $0x50] sm:$0xff] }
  0xc4   : > { %2970 = vmatpush1.bf16.msra.mxu1 %v4025_v39  ;;  %2956 = vmatprep.subr.bf16.mxu0 %v4027_v40  ;;  %v607_v58 = vld [vmem:[#allocation13 + $0x40] sm:$0xff]  ;;  %v4046_v59 = vpack.c.bf16 %v610_v53, %v608_v52  ;;  %v609_v60 = vld [vmem:[#allocation13 + $0x50] sm:$0xff]  ;;  %v596_v61 = vld [vmem:[#allocation11 + $0x68] sm:$0xff]  ;;  %v4051_v2 = vpack.c.bf16 %v593_v57, %v591_v56  ;;  %p3646_p6 = por %p3645_p8, %p3644_p0 }
  0xc5   : > { %2972 = vmatprep.subr.bf16.mxu1 %v4030_v44  ;;  %568 = vmatprep.mubr.f32.mxu1 %v3728_v0  ;;  %v598_v62 = vld [vmem:[#allocation11 + $0x78] sm:$0xff]  ;;  %v612_v63 = vld [vmem:[#allocation13 + $0x68] sm:$0xff]  ;;  %v4055_v3 = vpack.c.bf16 %v609_v60, %v607_v58  ;;  %v595_v5 = vld [vmem:[#allocation11 + $0x60] sm:$0xff] }
  0xc6   : > { %491 = vmatprep.mubr.f32.mxu0 %v3728_v0  ;;  %v614_v1 = vld [vmem:[#allocation13 + $0x78] sm:$0xff]  ;;  %v4057_v4 = vpack.c.bf16 %v598_v62, %v596_v61  ;;  %v597_v6 = vld [vmem:[#allocation11 + $0x70] sm:$0xff]  ;;  %v611_v8 = vld [vmem:[#allocation13 + $0x60] sm:$0xff]  ;;  %p3647_p10 = pnand %p3646_p6, %p3640_p4 }
  0xc7   : > { %2958 = vmatpush1.bf16.msra.mxu0 %v4035_v50  ;;  %2882 = vmatmul.mubr.msk.f32.gmra.mrb[2].mxu1 %vm414_vm0, %v375_v51  ;;  %v4061_v7 = vpack.c.bf16 %v614_v1, %v612_v63  ;;  %v613_v9 = vld [vmem:[#allocation13 + $0x70] sm:$0xff]  ;;  %v4066_v10 = vpack.c.bf16 %v597_v6, %v595_v5  ;;  %v392_v17 = vld [vmem:[%s4567_s6] sm:$0xf] }
  0xc8   : > { %2974 = vmatpush1.bf16.msra.mxu1 %v4040_v54  ;;  %2960 = vmatprep.subr.bf16.mxu0 %v4042_v55  ;;  %v4070_v11 = vpack.c.bf16 %v613_v9, %v611_v8  ;;  %v397_v19 = vrot.slane %v392_v17, %v396_v14  ;;  %v405_v20 = vrot.slane %v392_v17, %v404_v15 }
  0xc9   : > { %2976 = vmatprep.subr.bf16.mxu1 %v4046_v59  ;;  %2880 = vmatmul.mubr.msk.f32.gmra.mrb[2].mxu0 %vm414_vm0, %v375_v51  ;;  %v401_v21 = vrot.slane %v392_v17, %v400_v16  ;;  %v409_v22 = vrot.slane %v392_v17, %v408_v18 }
  0xca   : > { %687 = vmatprep.mubr.f32.mxu0 %v3728_v0  ;;  %782 = vmatprep.mubr.f32.mxu1 %v3728_v0 }
  0xcb   : > { %2962 = vmatpush1.bf16.msra.mxu0 %v4051_v2 }
  0xcc   : > { %2978 = vmatpush1.bf16.msra.mxu1 %v4055_v3  ;;  %2964 = vmatprep.subr.bf16.mxu0 %v4057_v4 }
  0xcd   : > { %2980 = vmatprep.subr.bf16.mxu1 %v4061_v7 }
  0xcf   : > { %2966 = vmatpush1.bf16.msra.mxu0 %v4066_v10 }
  0xd0   : > { %2982 = vmatpush1.bf16.msra.mxu1 %v4070_v11  ;;  %2984 = vmatprep.subr.bf16.mxu0 %v4018_v30 }
  0xd1   : > { %3000 = vmatprep.subr.bf16.mxu1 %v4020_v31 }
  0xd2   : > { %688 = vmatmul.mubr.f32.vlgmr.msra.gmra.mrb[4].mxu0 %v3728_v0 }
  0xd3   : > { %783 = vmatmul.mubr.f32.vlgmr.msra.gmra.mrb[4].mxu1 %v3728_v0  ;;  %2986 = vmatpush1.bf16.msra.mxu0 %v4022_v35 }
  0xd4   : > { %3002 = vmatpush1.bf16.msra.mxu1 %v4025_v39  ;;  %2988 = vmatprep.subr.bf16.mxu0 %v4027_v40 }
  0xd5   : > { %3004 = vmatprep.subr.bf16.mxu1 %v4030_v44  ;;  %1011 = vmatprep.mubr.f32.mxu1 %v3728_v0 }
  0xd6   : > { %902 = vmatprep.mubr.f32.mxu0 %v3728_v0 }
  0xd7   : > { %2990 = vmatpush1.bf16.msra.mxu0 %v4035_v50 }
  0xd8   : > { %3006 = vmatpush1.bf16.msra.mxu1 %v4040_v54  ;;  %2992 = vmatprep.subr.bf16.mxu0 %v4042_v55 }
  0xd9   : > { %3008 = vmatprep.subr.bf16.mxu1 %v4046_v59 }
  0xdb   : > { %2994 = vmatpush1.bf16.msra.mxu0 %v4051_v2 }
  0xdc   : > { %3010 = vmatpush1.bf16.msra.mxu1 %v4055_v3  ;;  %2996 = vmatprep.subr.bf16.mxu0 %v4057_v4 }
  0xdd   : > { %3012 = vmatprep.subr.bf16.mxu1 %v4061_v7 }
  0xdf   : > { %2998 = vmatpush1.bf16.msra.mxu0 %v4066_v10 }
  0xe0   : > { %3014 = vmatpush1.bf16.msra.mxu1 %v4070_v11  ;;  %3016 = vmatprep.subr.bf16.mxu0 %v4018_v30 }
  0xe1   : > { %3032 = vmatprep.subr.bf16.mxu1 %v4020_v31 }
 0x195   : > { %v487_v23 = vpop.f32.mrb[0].mxu0 }
 0x196   : > { %v564_v24 = vpop.f32.mrb[0].mxu1  ;;  %v488_v25 = vadd.f32 %v487_v23, %v397_v19  ;;  %v489_v26 = vpop.f32.mrb[1].mxu0 }
 0x197   : > { %v565_v27 = vadd.f32 %v564_v24, %v405_v20  ;;  %v566_v28 = vpop.f32.mrb[1].mxu1  ;;  %v490_v29 = vadd.f32 %v489_v26, %v401_v21 }
 0x198   : > { %v567_v32 = vadd.f32 %v566_v28, %v409_v22  ;;  %575 = vst [vmem:[#allocation2] sm:$0xff] %v488_v25 }
 0x199   : > { %577 = vst [vmem:[#allocation2 + $0x10] sm:$0xff] %v565_v27  ;;  %576 = vst [vmem:[#allocation2 + $0x8] sm:$0xff] %v490_v29 }
 0x19a   : > { %578 = vst [vmem:[#allocation2 + $0x18] sm:$0xff] %v567_v32  ;;  %v570_v33 = vpop.f32.mrb[2].mxu1 }
 0x19b   : > { %v571_v34 = vadd.f32 %v570_v33, %v405_v20  ;;  %v572_v36 = vpop.f32.mrb[3].mxu1 }
 0x19c   : > { %v573_v37 = vadd.f32 %v572_v36, %v409_v22  ;;  %v493_v38 = vpop.f32.mrb[2].mxu0 }
 0x19d   : > { %581 = vst [vmem:[#allocation2 + $0x30] sm:$0xff] %v571_v34  ;;  %v494_v41 = vadd.f32 %v493_v38, %v397_v19  ;;  %v495_v42 = vpop.f32.mrb[3].mxu0 }
 0x19e   : > { %582 = vst [vmem:[#allocation2 + $0x38] sm:$0xff] %v573_v37  ;;  %v496_v43 = vadd.f32 %v495_v42, %v401_v21 }
 0x19f   : > { %579 = vst [vmem:[#allocation2 + $0x20] sm:$0xff] %v494_v41  ;;  %v615_v45 = vld [vmem:[#allocation2] sm:$0x3] }
 0x1a0   : > { %580 = vst [vmem:[#allocation2 + $0x28] sm:$0xff] %v496_v43  ;;  %v616_v60 = vld [vmem:[#allocation2 + $0x8] sm:$0x3] }
 0x1a4   : > { %v617_v48 = vld [vmem:[#allocation2 + $0x30] sm:$0xc0] }
 0x1a5   : > { %v689_v46 = vpop.f32.mrb[4].mxu0  ;;  %v618_v62 = vld [vmem:[#allocation2 + $0x38] sm:$0xc0] }
 0x1a6   : > { %v694_v47 = vadd.f32 %v689_v46, %v615_v45  ;;  %v784_v49 = vpop.f32.mrb[4].mxu1  ;;  %v691_v51 = vpop.f32.mrb[5].mxu0 }
 0x1a7   : > { %v791_v52 = vrot.slane %v784_v49, 2  ;;  %v786_v53 = vpop.f32.mrb[5].mxu1  ;;  %v695_v63 = vadd.f32 %v691_v51, %v616_v60 }
 0x1a8   : > { %v2883_v56 = vmul.f32 -1.442695, %v694_v47  ;;  %v792_v61 = vrot.slane %v786_v53, 2 }
 0x1a9   : > { %v795_v57 = vadd.f32 %v791_v52, %v617_v48  ;;  %v2884_v25 = vmul.f32 -1.442695, %v695_v63 }
 0x1aa   : > { %3297 = vpow2.f32 %v2883_v56  ;;  %v796_v6 = vadd.f32 %v792_v61, %v618_v62 }
 0x1ab   : > { %v2885_v58 = vmul.f32 -1.442695, %v795_v57  ;;  %v834_v57 = vld [vmem:[#allocation2 + $0x30] sm:$0x30] }
 0x1ac   : > { %v2886_v24 = vmul.f32 -1.442695, %v796_v6 }
 0x1ad   : > { %3299 = vpow2.f32 %v2885_v58 }
 0x1ae   : > { %3301 = vtanh.f32 %v695_v63 }
 0x1b4   : > { %v3298_v1 = vpop.eup %3297 }
 0x1b5   : > { %v699_v5 = vadd.f32 1.0, %v3298_v1  ;;  %v832_v1 = vld [vmem:[#allocation2] sm:$0xc] }
 0x1b7   : > { %v3300_v8 = vpop.eup %3299  ;;  %3303 = vrcp.f32 %v699_v5 }
 0x1b8   : > { %v800_v9 = vadd.f32 1.0, %v3300_v8  ;;  %3305 = vtanh.f32 %v796_v6  ;;  %v3302_v17 = vpop.eup %3301 }
 0x1ba   : > { %3307 = vrcp.f32 %v800_v9  ;;  %v835_v9 = vld [vmem:[#allocation2 + $0x38] sm:$0x30] }
 0x1bb   : > { %3309 = vpow2.f32 %v2886_v24 }
 0x1bc   : > { %3311 = vpow2.f32 %v2884_v25 }
 0x1c1   : > { %v3304_v19 = vpop.eup %3303 }
 0x1c2   : > { %v710_v20 = vmul.f32 %v3304_v19, %v3302_v17  ;;  %v3306_v21 = vpop.eup %3305  ;;  %v709_v36 = vmul.f32 0.0, %v3304_v19 }
 0x1c4   : > { %v3308_v22 = vpop.eup %3307 }
 0x1c5   : > { %v811_v23 = vmul.f32 %v3308_v22, %v3306_v21  ;;  %v3310_v26 = vpop.eup %3309  ;;  %v810_v29 = vmul.f32 0.0, %v3308_v22  ;;  %v833_v22 = vld [vmem:[#allocation2 + $0x8] sm:$0xc] }
 0x1c6   : > { %v807_v27 = vadd.f32 1.0, %v3310_v26  ;;  %v3312_v28 = vpop.eup %3311 }
 0x1c7   : > { %813 = vrot.lane.b32.xlu0 %v811_v23, %s3729_s15  ;;  %v706_v34 = vadd.f32 1.0, %v3312_v28 }
 0x1c8   : > { %3313 = vrcp.f32 %v807_v27 }
 0x1cb   : > { %712 = vrot.lane.b32.xlu0 %v710_v20, %s3729_s15 }
 0x1d2   : > { %v3314_v41 = vpop.eup %3313 }
 0x239   : > { %v814_v32 = vpop.permute.xlu0 %813 }
 0x23a   : > { %v4117_v33 = vadd.f32 %v814_v32, %v810_v29 }
 0x23c   : > { %3315 = vtanh.f32 %v4117_v33  ;;  %v1040_v27 = vrot.slane %v4117_v33, 2 }
 0x23d   : > { %v713_v37 = vpop.permute.xlu0 %712  ;;  %3317 = vrcp.f32 %v706_v34 }
 0x23e   : > { %v4120_v38 = vadd.f32 %v713_v37, %v709_v36 }
 0x240   : > { %3319 = vtanh.f32 %v4120_v38  ;;  %v931_v36 = vrot.slane %v4120_v38, 6 }
 0x246   : > { %v3316_v42 = vpop.eup %3315 }
 0x247   : > { %v4123_v43 = vmul.f32 %v3316_v42, %v3314_v41  ;;  %v3318_v45 = vpop.eup %3317 }
 0x249   : > { %v942_v46 = vrot.slane %v4123_v43, 6 }
 0x24a   : > { %v3320_v47 = vpop.eup %3319 }
 0x24b   : > { %943 = vrot.lane.b32.xlu1 %v942_v46, %s3729_s15  ;;  %v717_v48 = vmul.f32 %v3320_v47, %v3318_v45 }
 0x24f   : > { %820 = vrot.lane.b32.xlu1 %v717_v48, %s3729_s15 }
 0x2bd   : > { %v944_v49 = vpop.permute.xlu1 %943 }
 0x2be   : > { %2890 = vmatmul.mubr.msk.f32.vlgmr.msra.gmra.mrb[6].mxu1 %vm619_vm1, %v944_v49 }
 0x2bf   : > { %3034 = vmatpush1.bf16.msra.mxu1 %v4025_v39  ;;  %1247 = vmatprep.mubr.f32.mxu1 %v3728_v0 }
 0x2c0   : > { %3036 = vmatprep.subr.bf16.mxu1 %v4030_v44 }
 0x2c1   : > { %v821_v51 = vpop.permute.xlu1 %820 }
 0x2c2   : > { %824 = vst.msk [vmem:[#allocation3] sm:$0x3] %vm823_vm2, %v821_v51  ;;  %2887 = vmatmul.mubr.msk.f32.vlgmr.msra.gmra.mrb[6].mxu0 %vm619_vm1, %v821_v51 }
 0x2c3   : > { %3018 = vmatpush1.bf16.msra.mxu0 %v4022_v35  ;;  %3038 = vmatpush1.bf16.msra.mxu1 %v4040_v54 }
 0x2c4   : > { %3020 = vmatprep.subr.bf16.mxu0 %v4027_v40  ;;  %3040 = vmatprep.subr.bf16.mxu1 %v4046_v59 }
 0x2c5   : > { %1138 = vmatprep.mubr.f32.mxu0 %v3728_v0 }
 0x2c7   : > { %3022 = vmatpush1.bf16.msra.mxu0 %v4035_v50  ;;  %3042 = vmatpush1.bf16.msra.mxu1 %v4055_v3 }
 0x2c8   : > { %3024 = vmatprep.subr.bf16.mxu0 %v4042_v55  ;;  %3044 = vmatprep.subr.bf16.mxu1 %v4061_v7 }
 0x2cb   : > { %3026 = vmatpush1.bf16.msra.mxu0 %v4051_v2  ;;  %3046 = vmatpush1.bf16.msra.mxu1 %v4070_v11 }
 0x2cc   : > { %3028 = vmatprep.subr.bf16.mxu0 %v4057_v4  ;;  %3064 = vmatprep.subr.bf16.mxu1 %v4020_v31 }
 0x2cf   : > { %3030 = vmatpush1.bf16.msra.mxu0 %v4066_v10 }
 0x2d0   : > { %3048 = vmatprep.subr.bf16.mxu0 %v4018_v30 }
 0x391   : > { %v1013_v52 = vpop.f32.mrb[6].mxu1 }
 0x392   : > { %v1020_v53 = vrot.slane %v1013_v52, 4  ;;  %v1015_v56 = vpop.f32.mrb[7].mxu1 }
 0x393   : > { %v1021_v8 = vrot.slane %v1015_v56, 4 }
 0x394   : > { %v1024_v58 = vadd.f32 %v1020_v53, %v834_v57 }
 0x395   : > { %v904_v60 = vpop.f32.mrb[6].mxu0  ;;  %v1025_v17 = vadd.f32 %v1021_v8, %v835_v9 }
 0x396   : > { %v2891_v61 = vmul.f32 -1.442695, %v1024_v58  ;;  %v911_v62 = vrot.slane %v904_v60, 6  ;;  %v906_v63 = vpop.f32.mrb[7].mxu0 }
 0x397   : > { %v912_v19 = vrot.slane %v906_v63, 6  ;;  %v2892_v45 = vmul.f32 -1.442695, %v1025_v17 }
 0x398   : > { %3321 = vpow2.f32 %v2891_v61  ;;  %v915_v5 = vadd.f32 %v911_v62, %v832_v1 }
 0x399   : > { %v916_v23 = vadd.f32 %v912_v19, %v833_v22  ;;  %v1067_v19 = vld [vmem:[#allocation2 + $0x30] sm:$0xc] }
 0x39a   : > { %v2888_v6 = vmul.f32 -1.442695, %v915_v5 }
 0x39b   : > { %v2889_v46 = vmul.f32 -1.442695, %v916_v23 }
 0x39c   : > { %3323 = vpow2.f32 %v2888_v6 }
 0x39d   : > { %3325 = vtanh.f32 %v1025_v17 }
 0x3a2   : > { %v3322_v20 = vpop.eup %3321 }
 0x3a3   : > { %v1029_v21 = vadd.f32 1.0, %v3322_v20 }
 0x3a5   : > { %3327 = vrcp.f32 %v1029_v21 }
 0x3a6   : > { %v3324_v24 = vpop.eup %3323  ;;  %3329 = vtanh.f32 %v916_v23 }
 0x3a7   : > { %v920_v25 = vadd.f32 1.0, %v3324_v24  ;;  %v3326_v26 = vpop.eup %3325 }
 0x3a9   : > { %3331 = vrcp.f32 %v920_v25  ;;  %v1065_v25 = vld [vmem:[#allocation2] sm:$0x30] }
 0x3aa   : > { %3333 = vpow2.f32 %v2892_v45 }
 0x3ab   : > { %3335 = vpow2.f32 %v2889_v46 }
 0x3af   : > { %v3328_v28 = vpop.eup %3327 }
 0x3b0   : > { %v1043_v29 = vmul.f32 %v3328_v28, %v3326_v26  ;;  %v1042_v32 = vmul.f32 %v3328_v28, %v1040_v27  ;;  %v3330_v34 = vpop.eup %3329 }
 0x3b2   : > { %1045 = vrot.lane.b32.xlu0 %v1043_v29, %s3729_s15  ;;  %v1068_v29 = vld [vmem:[#allocation2 + $0x38] sm:$0xc] }
 0x3b3   : > { %v3332_v37 = vpop.eup %3331 }
 0x3b4   : > { %v934_v41 = vmul.f32 %v3332_v37, %v3330_v34  ;;  %v933_v42 = vmul.f32 %v3332_v37, %v931_v36  ;;  %v3334_v47 = vpop.eup %3333 }
 0x3b5   : > { %v1036_v48 = vadd.f32 1.0, %v3334_v47  ;;  %v3336_v33 = vpop.eup %3335 }
 0x3b6   : > { %936 = vrot.lane.b32.xlu1 %v934_v41, %s3729_s15  ;;  %v927_v52 = vadd.f32 1.0, %v3336_v33  ;;  %v1066_v41 = vld [vmem:[#allocation2 + $0x8] sm:$0x30] }
 0x3b7   : > { %3337 = vrcp.f32 %v1036_v48 }
 0x3c1   : > { %v3338_v56 = vpop.eup %3337 }
 0x424   : > { %v1046_v49 = vpop.permute.xlu0 %1045 }
 0x425   : > { %v4153_v51 = vadd.f32 %v1046_v49, %v1042_v32 }
 0x427   : > { %3339 = vtanh.f32 %v4153_v51  ;;  %v1276_v48 = vrot.slane %v4153_v51, 2 }
 0x428   : > { %v937_v38 = vpop.permute.xlu1 %936  ;;  %3341 = vrcp.f32 %v927_v52 }
 0x429   : > { %v4156_v53 = vadd.f32 %v937_v38, %v933_v42 }
 0x42b   : > { %3343 = vtanh.f32 %v4156_v53 }
 0x431   : > { %v3340_v57 = vpop.eup %3339 }
 0x432   : > { %v4159_v58 = vmul.f32 %v3340_v57, %v3338_v56  ;;  %v3342_v60 = vpop.eup %3341  ;;  %v1167_v56 = vrot.slane %v4156_v53, 6 }
 0x434   : > { %v1178_v61 = vrot.slane %v4159_v58, 4 }
 0x435   : > { %v3344_v62 = vpop.eup %3343 }
 0x436   : > { %1179 = vrot.lane.b32.xlu0 %v1178_v61, %s3729_s15  ;;  %v4163_v63 = vmul.f32 %v3344_v62, %v3342_v60 }
 0x438   : > { %v1069_v1 = vrot.slane %v4163_v63, 2 }
 0x43a   : > { %1070 = vrot.lane.b32.xlu1 %v1069_v1, %s3729_s15 }
 0x4a8   : > { %v1180_v5 = vpop.permute.xlu0 %1179 }
 0x4a9   : > { %2896 = vmatmul.mubr.msk.f32.vlgmr.msra.gmra.mrb[8].mxu1 %vm619_vm1, %v1180_v5 }
 0x4aa   : > { %3066 = vmatpush1.bf16.msra.mxu1 %v4025_v39  ;;  %1481 = vmatprep.mubr.f32.mxu1 %v3728_v0 }
 0x4ab   : > { %3068 = vmatprep.subr.bf16.mxu1 %v4030_v44 }
 0x4ac   : > { %v1071_v6 = vpop.permute.xlu1 %1070 }
 0x4ad   : > { %2893 = vmatmul.mubr.msk.f32.vlgmr.msra.gmra.mrb[8].mxu0 %vm619_vm1, %v1071_v6 }
 0x4ae   : > { %3050 = vmatpush1.bf16.msra.mxu0 %v4022_v35  ;;  %3070 = vmatpush1.bf16.msra.mxu1 %v4040_v54 }
 0x4af   : > { %3052 = vmatprep.subr.bf16.mxu0 %v4027_v40  ;;  %3072 = vmatprep.subr.bf16.mxu1 %v4046_v59 }
 0x4b0   : > { %1372 = vmatprep.mubr.f32.mxu0 %v3728_v0 }
 0x4b2   : > { %3054 = vmatpush1.bf16.msra.mxu0 %v4035_v50  ;;  %3074 = vmatpush1.bf16.msra.mxu1 %v4055_v3 }
 0x4b3   : > { %3056 = vmatprep.subr.bf16.mxu0 %v4042_v55  ;;  %3076 = vmatprep.subr.bf16.mxu1 %v4061_v7 }
 0x4b6   : > { %3058 = vmatpush1.bf16.msra.mxu0 %v4051_v2  ;;  %3078 = vmatpush1.bf16.msra.mxu1 %v4070_v11 }
 0x4b7   : > { %3060 = vmatprep.subr.bf16.mxu0 %v4057_v4  ;;  %3096 = vmatprep.subr.bf16.mxu1 %v4020_v31 }
 0x4ba   : > { %3062 = vmatpush1.bf16.msra.mxu0 %v4066_v10 }
 0x4bb   : > { %3080 = vmatprep.subr.bf16.mxu0 %v4018_v30 }
 0x57c   : > { %v1249_v8 = vpop.f32.mrb[8].mxu1 }
 0x57d   : > { %v1256_v9 = vrot.slane %v1249_v8, 6  ;;  %v1251_v17 = vpop.f32.mrb[9].mxu1 }
 0x57e   : > { %v1257_v28 = vrot.slane %v1251_v17, 6 }
 0x57f   : > { %v1260_v20 = vadd.f32 %v1256_v9, %v1067_v19 }
 0x580   : > { %v1140_v21 = vpop.f32.mrb[8].mxu0  ;;  %v1261_v32 = vadd.f32 %v1257_v28, %v1068_v29 }
 0x581   : > { %v2897_v22 = vmul.f32 -1.442695, %v1260_v20  ;;  %v1147_v23 = vrot.slane %v1140_v21, 4  ;;  %v1142_v24 = vpop.f32.mrb[9].mxu0 }
 0x582   : > { %v1148_v34 = vrot.slane %v1142_v24, 4  ;;  %v2898_v62 = vmul.f32 -1.442695, %v1261_v32 }
 0x583   : > { %3345 = vpow2.f32 %v2897_v22  ;;  %v1151_v26 = vadd.f32 %v1147_v23, %v1065_v25 }
 0x584   : > { %v1152_v42 = vadd.f32 %v1148_v34, %v1066_v41 }
 0x585   : > { %v2894_v27 = vmul.f32 -1.442695, %v1151_v26 }
 0x586   : > { %v2895_v1 = vmul.f32 -1.442695, %v1152_v42 }
 0x587   : > { %3347 = vpow2.f32 %v2894_v27 }
 0x588   : > { %3349 = vtanh.f32 %v1261_v32  ;;  %v1301_v32 = vld [vmem:[#allocation2 + $0x30] sm:$0x3] }
 0x58d   : > { %v3346_v36 = vpop.eup %3345 }
 0x58e   : > { %v1265_v37 = vadd.f32 1.0, %v3346_v36 }
 0x590   : > { %3351 = vrcp.f32 %v1265_v37 }
 0x591   : > { %v3348_v45 = vpop.eup %3347  ;;  %3353 = vtanh.f32 %v1152_v42 }
 0x592   : > { %v1156_v46 = vadd.f32 1.0, %v3348_v45  ;;  %v3350_v47 = vpop.eup %3349 }
 0x594   : > { %3355 = vrcp.f32 %v1156_v46 }
 0x595   : > { %3357 = vpow2.f32 %v2898_v62 }
 0x596   : > { %3359 = vpow2.f32 %v2895_v1 }
 0x59a   : > { %v3352_v33 = vpop.eup %3351 }
 0x59b   : > { %v1279_v49 = vmul.f32 %v3352_v33, %v3350_v47  ;;  %v1278_v52 = vmul.f32 %v3352_v33, %v1276_v48  ;;  %v3354_v38 = vpop.eup %3353  ;;  %v1299_v47 = vld [vmem:[#allocation2] sm:$0xc0] }
 0x59d   : > { %1281 = vrot.lane.b32.xlu0 %v1279_v49, %s3729_s15  ;;  %v1302_v49 = vld [vmem:[#allocation2 + $0x38] sm:$0x3] }
 0x59e   : > { %v3356_v57 = vpop.eup %3355 }
 0x59f   : > { %v1170_v60 = vmul.f32 %v3356_v57, %v3354_v38  ;;  %v1169_v61 = vmul.f32 %v3356_v57, %v1167_v56  ;;  %v3358_v5 = vpop.eup %3357 }
 0x5a0   : > { %v1272_v6 = vadd.f32 1.0, %v3358_v5  ;;  %v3360_v51 = vpop.eup %3359 }
 0x5a1   : > { %1172 = vrot.lane.b32.xlu1 %v1170_v60, %s3729_s15  ;;  %v1163_v17 = vadd.f32 1.0, %v3360_v51  ;;  %v1300_v60 = vld [vmem:[#allocation2 + $0x8] sm:$0xc0] }
 0x5a2   : > { %3361 = vrcp.f32 %v1272_v6 }
 0x5ac   : > { %v3362_v20 = vpop.eup %3361 }
 0x60f   : > { %v1282_v8 = vpop.permute.xlu0 %1281 }
 0x610   : > { %v4191_v9 = vadd.f32 %v1282_v8, %v1278_v52 }
 0x612   : > { %3363 = vtanh.f32 %v4191_v9  ;;  %v1504_v6 = vrot.slane %v4191_v9, 2 }
 0x613   : > { %v1173_v53 = vpop.permute.xlu1 %1172  ;;  %3365 = vrcp.f32 %v1163_v17 }
 0x614   : > { %v4194_v19 = vadd.f32 %v1173_v53, %v1169_v61 }
 0x616   : > { %3367 = vtanh.f32 %v4194_v19 }
 0x61c   : > { %v3364_v21 = vpop.eup %3363 }
 0x61d   : > { %v4197_v22 = vmul.f32 %v3364_v21, %v3362_v20  ;;  %v3366_v23 = vpop.eup %3365  ;;  %v1401_v20 = vrot.slane %v4194_v19, 6 }
 0x61f   : > { %v1412_v24 = vrot.slane %v4197_v22, 2 }
 0x620   : > { %v3368_v25 = vpop.eup %3367 }
 0x621   : > { %1413 = vrot.lane.b32.xlu0 %v1412_v24, %s3729_s15  ;;  %v4201_v26 = vmul.f32 %v3368_v25, %v3366_v23 }
 0x623   : > { %v1303_v27 = vrot.slane %v4201_v26, 4 }
 0x625   : > { %1304 = vrot.lane.b32.xlu1 %v1303_v27, %s3729_s15 }
 0x693   : > { %v1414_v28 = vpop.permute.xlu0 %1413 }
 0x694   : > { %2902 = vmatmul.mubr.msk.f32.vlgmr.msra.gmra.mrb[10].mxu1 %vm619_vm1, %v1414_v28 }
 0x695   : > { %3098 = vmatpush1.bf16.msra.mxu1 %v4025_v39  ;;  %1700 = vmatprep.mubr.f32.mxu1 %v3728_v0 }
 0x696   : > { %3100 = vmatprep.subr.bf16.mxu1 %v4030_v44 }
 0x697   : > { %v1305_v29 = vpop.permute.xlu1 %1304 }
 0x698   : > { %2899 = vmatmul.mubr.msk.f32.vlgmr.msra.gmra.mrb[10].mxu0 %vm619_vm1, %v1305_v29 }
 0x699   : > { %3102 = vmatpush1.bf16.msra.mxu1 %v4040_v54  ;;  %3082 = vmatpush1.bf16.msra.mxu0 %v4022_v35 }
 0x69a   : > { %3104 = vmatprep.subr.bf16.mxu1 %v4046_v59  ;;  %3084 = vmatprep.subr.bf16.mxu0 %v4027_v40 }
 0x69b   : > { %1600 = vmatprep.mubr.f32.mxu0 %v3728_v0 }
 0x69d   : > { %3106 = vmatpush1.bf16.msra.mxu1 %v4055_v3  ;;  %3086 = vmatpush1.bf16.msra.mxu0 %v4035_v50 }
 0x69e   : > { %3108 = vmatprep.subr.bf16.mxu1 %v4061_v7  ;;  %3088 = vmatprep.subr.bf16.mxu0 %v4042_v55 }
 0x6a1   : > { %3110 = vmatpush1.bf16.msra.mxu1 %v4070_v11  ;;  %3090 = vmatpush1.bf16.msra.mxu0 %v4051_v2 }
 0x6a2   : > { %3092 = vmatprep.subr.bf16.mxu0 %v4057_v4  ;;  %3128 = vmatprep.subr.bf16.mxu1 %v4020_v31 }
 0x6a5   : > { %3094 = vmatpush1.bf16.msra.mxu0 %v4066_v10 }
 0x6a6   : > { %3112 = vmatprep.subr.bf16.mxu0 %v4018_v30 }
 0x767   : > { %v1483_v34 = vpop.f32.mrb[10].mxu1 }
 0x768   : > { %v1488_v36 = vadd.f32 %v1483_v34, %v1301_v32  ;;  %v1485_v37 = vpop.f32.mrb[11].mxu1 }
 0x769   : > { %v1489_v52 = vadd.f32 %v1485_v37, %v1302_v49 }
 0x76a   : > { %v2903_v41 = vmul.f32 -1.442695, %v1488_v36 }
 0x76b   : > { %v1374_v42 = vpop.f32.mrb[10].mxu0  ;;  %v2904_v25 = vmul.f32 -1.442695, %v1489_v52 }
 0x76c   : > { %3369 = vpow2.f32 %v2903_v41  ;;  %v1381_v45 = vrot.slane %v1374_v42, 2  ;;  %v1376_v46 = vpop.f32.mrb[11].mxu0 }
 0x76d   : > { %v1382_v56 = vrot.slane %v1376_v46, 2 }
 0x76e   : > { %v1385_v48 = vadd.f32 %v1381_v45, %v1299_v47 }
 0x76f   : > { %v1386_v61 = vadd.f32 %v1382_v56, %v1300_v60  ;;  %v1529_v60 = vld [vmem:[#allocation2 + $0x10] sm:$0xc0] }
 0x770   : > { %v2900_v33 = vmul.f32 -1.442695, %v1385_v48 }
 0x771   : > { %v2901_v27 = vmul.f32 -1.442695, %v1386_v61 }
 0x772   : > { %3371 = vpow2.f32 %v2900_v33 }
 0x773   : > { %3373 = vtanh.f32 %v1489_v52 }
 0x776   : > { %v3370_v38 = vpop.eup %3369 }
 0x777   : > { %v1493_v57 = vadd.f32 1.0, %v3370_v38 }
 0x779   : > { %3375 = vrcp.f32 %v1493_v57 }
 0x77a   : > { %3377 = vtanh.f32 %v1386_v61 }
 0x77c   : > { %v3372_v62 = vpop.eup %3371 }
 0x77d   : > { %v1390_v1 = vadd.f32 1.0, %v3372_v62  ;;  %v3374_v5 = vpop.eup %3373 }
 0x77f   : > { %3379 = vrcp.f32 %v1390_v1  ;;  %v1527_v1 = vld [vmem:[#allocation2 + $0x20] sm:$0x3] }
 0x780   : > { %3381 = vpow2.f32 %v2904_v25 }
 0x781   : > { %3383 = vpow2.f32 %v2901_v27 }
 0x783   : > { %v3376_v51 = vpop.eup %3375 }
 0x784   : > { %v1507_v8 = vmul.f32 %v3376_v51, %v3374_v5  ;;  %v1506_v17 = vmul.f32 %v3376_v51, %v1504_v6  ;;  %v3378_v53 = vpop.eup %3377 }
 0x786   : > { %1509 = vrot.lane.b32.xlu0 %v1507_v8, %s3729_s15 }
 0x789   : > { %v3380_v21 = vpop.eup %3379 }
 0x78a   : > { %v1404_v23 = vmul.f32 %v3380_v21, %v3378_v53  ;;  %v1403_v24 = vmul.f32 %v3380_v21, %v1401_v20  ;;  %v3382_v28 = vpop.eup %3381  ;;  %v1530_v53 = vld [vmem:[#allocation2 + $0x18] sm:$0xc0] }
 0x78b   : > { %v1500_v29 = vadd.f32 1.0, %v3382_v28  ;;  %v3384_v32 = vpop.eup %3383 }
 0x78c   : > { %1406 = vrot.lane.b32.xlu1 %v1404_v23, %s3729_s15  ;;  %v1397_v36 = vadd.f32 1.0, %v3384_v32 }
 0x78d   : > { %3385 = vrcp.f32 %v1500_v29 }
 0x797   : > { %v3386_v41 = vpop.eup %3385 }
 0x7f8   : > { %v1510_v9 = vpop.permute.xlu0 %1509 }
 0x7f9   : > { %v4229_v34 = vadd.f32 %v1510_v9, %v1506_v17 }
 0x7fb   : > { %3387 = vtanh.f32 %v4229_v34  ;;  %v1729_v9 = vrot.slane %v4229_v34, 2 }
 0x7fc   : > { %3389 = vrcp.f32 %v1397_v36 }
 0x7fe   : > { %v1407_v19 = vpop.permute.xlu1 %1406 }
 0x7ff   : > { %v4232_v37 = vadd.f32 %v1407_v19, %v1403_v24  ;;  %v1528_v24 = vld [vmem:[#allocation2 + $0x28] sm:$0x3] }
 0x801   : > { %3391 = vtanh.f32 %v4232_v37 }
 0x805   : > { %v3388_v42 = vpop.eup %3387 }
 0x806   : > { %v1514_v45 = vmul.f32 %v3388_v42, %v3386_v41  ;;  %v3390_v46 = vpop.eup %3389  ;;  %v1623_v42 = vrot.slane %v4232_v37, 6 }
 0x808   : > { %1522 = vrot.lane.b32.xlu0 %v1514_v45, %s3729_s15 }
 0x80b   : > { %v3392_v47 = vpop.eup %3391 }
 0x80c   : > { %v4236_v48 = vmul.f32 %v3392_v47, %v3390_v46 }
 0x80e   : > { %v1531_v33 = vrot.slane %v4236_v48, 6 }
 0x810   : > { %1532 = vrot.lane.b32.xlu1 %v1531_v33, %s3729_s15 }
 0x87a   : > { %v1523_v49 = vpop.permute.xlu0 %1522 }
 0x87b   : > { %1526 = vst.msk [vmem:[#allocation4 + $0x8] sm:$0x3] %vm823_vm2, %v1523_v49  ;;  %2908 = vmatmul.mubr.msk.f32.vlgmr.msra.gmra.mrb[12].mxu1 %vm619_vm1, %v1523_v49 }
 0x87c   : > { %3130 = vmatpush1.bf16.msra.mxu1 %v4025_v39  ;;  %1931 = vmatprep.mubr.f32.mxu1 %v3728_v0 }
 0x87d   : > { %3132 = vmatprep.subr.bf16.mxu1 %v4030_v44 }
 0x880   : > { %3134 = vmatpush1.bf16.msra.mxu1 %v4040_v54 }
 0x881   : > { %3136 = vmatprep.subr.bf16.mxu1 %v4046_v59 }
 0x882   : > { %v1533_v52 = vpop.permute.xlu1 %1532 }
 0x883   : > { %2905 = vmatmul.mubr.msk.f32.vlgmr.msra.gmra.mrb[12].mxu0 %vm619_vm1, %v1533_v52 }
 0x884   : > { %3114 = vmatpush1.bf16.msra.mxu0 %v4022_v35  ;;  %3138 = vmatpush1.bf16.msra.mxu1 %v4055_v3 }
 0x885   : > { %3116 = vmatprep.subr.bf16.mxu0 %v4027_v40  ;;  %3140 = vmatprep.subr.bf16.mxu1 %v4061_v7 }
 0x886   : > { %1822 = vmatprep.mubr.f32.mxu0 %v3728_v0 }
 0x888   : > { %3118 = vmatpush1.bf16.msra.mxu0 %v4035_v50  ;;  %3142 = vmatpush1.bf16.msra.mxu1 %v4070_v11 }
 0x889   : > { %3120 = vmatprep.subr.bf16.mxu0 %v4042_v55  ;;  %3160 = vmatprep.subr.bf16.mxu1 %v4020_v31 }
 0x88c   : > { %3122 = vmatpush1.bf16.msra.mxu0 %v4051_v2 }
 0x88d   : > { %3124 = vmatprep.subr.bf16.mxu0 %v4057_v4 }
 0x890   : > { %3126 = vmatpush1.bf16.msra.mxu0 %v4066_v10 }
 0x891   : > { %3144 = vmatprep.subr.bf16.mxu0 %v4018_v30 }
 0x94e   : > { %v1702_v38 = vpop.f32.mrb[12].mxu1 }
 0x94f   : > { %v1709_v56 = vrot.slane %v1702_v38, 2  ;;  %v1704_v57 = vpop.f32.mrb[13].mxu1 }
 0x950   : > { %v1710_v8 = vrot.slane %v1704_v57, 2 }
 0x951   : > { %v1713_v61 = vadd.f32 %v1709_v56, %v1529_v60 }
 0x952   : > { %v1714_v20 = vadd.f32 %v1710_v8, %v1530_v53 }
 0x953   : > { %v2909_v62 = vmul.f32 -1.442695, %v1713_v61 }
 0x954   : > { %v2910_v33 = vmul.f32 -1.442695, %v1714_v20 }
 0x955   : > { %3393 = vpow2.f32 %v2909_v62 }
 0x956   : > { %v1602_v5 = vpop.f32.mrb[12].mxu0 }
 0x957   : > { %v1607_v6 = vadd.f32 %v1602_v5, %v1527_v1  ;;  %v1604_v51 = vpop.f32.mrb[13].mxu0 }
 0x958   : > { %v1608_v25 = vadd.f32 %v1604_v51, %v1528_v24 }
 0x959   : > { %v2906_v17 = vmul.f32 -1.442695, %v1607_v6 }
 0x95a   : > { %v2907_v49 = vmul.f32 -1.442695, %v1608_v25 }
 0x95b   : > { %3395 = vpow2.f32 %v2906_v17 }
 0x95c   : > { %3397 = vtanh.f32 %v1714_v20 }
 0x95f   : > { %v3394_v21 = vpop.eup %3393 }
 0x960   : > { %v1718_v23 = vadd.f32 1.0, %v3394_v21 }
 0x962   : > { %3399 = vrcp.f32 %v1718_v23 }
 0x963   : > { %3401 = vtanh.f32 %v1608_v25  ;;  %v1754_v25 = vld [vmem:[#allocation2 + $0x10] sm:$0x30] }
 0x965   : > { %v3396_v27 = vpop.eup %3395 }
 0x966   : > { %v1612_v28 = vadd.f32 1.0, %v3396_v27  ;;  %v3398_v29 = vpop.eup %3397 }
 0x968   : > { %3403 = vrcp.f32 %v1612_v28 }
 0x969   : > { %3405 = vpow2.f32 %v2910_v33  ;;  %v1753_v33 = vld [vmem:[#allocation2 + $0x28] sm:$0xc] }
 0x96a   : > { %3407 = vpow2.f32 %v2907_v49 }
 0x96c   : > { %v3400_v32 = vpop.eup %3399 }
 0x96d   : > { %v1732_v36 = vmul.f32 %v3400_v32, %v3398_v29  ;;  %v1731_v19 = vmul.f32 %v3400_v32, %v1729_v9  ;;  %v3402_v41 = vpop.eup %3401 }
 0x96f   : > { %1734 = vrot.lane.b32.xlu0 %v1732_v36, %s3729_s15  ;;  %v1752_v36 = vld [vmem:[#allocation2 + $0x20] sm:$0xc] }
 0x972   : > { %v3404_v45 = vpop.eup %3403 }
 0x973   : > { %v1626_v46 = vmul.f32 %v3404_v45, %v3402_v41  ;;  %v1625_v47 = vmul.f32 %v3404_v45, %v1623_v42  ;;  %v3406_v52 = vpop.eup %3405 }
 0x974   : > { %v1725_v38 = vadd.f32 1.0, %v3406_v52  ;;  %v3408_v56 = vpop.eup %3407 }
 0x975   : > { %1628 = vrot.lane.b32.xlu1 %v1626_v46, %s3729_s15  ;;  %v1619_v60 = vadd.f32 1.0, %v3408_v56 }
 0x976   : > { %3409 = vrcp.f32 %v1725_v38 }
 0x980   : > { %v3410_v62 = vpop.eup %3409 }
 0x9e1   : > { %v1735_v34 = vpop.permute.xlu0 %1734 }
 0x9e2   : > { %v4265_v57 = vadd.f32 %v1735_v34, %v1731_v19 }
 0x9e4   : > { %3411 = vtanh.f32 %v4265_v57  ;;  %v1960_v56 = vrot.slane %v4265_v57, 2 }
 0x9e5   : > { %3413 = vrcp.f32 %v1619_v60 }
 0x9e7   : > { %v1629_v37 = vpop.permute.xlu1 %1628 }
 0x9e8   : > { %v4268_v61 = vadd.f32 %v1629_v37, %v1625_v47 }
 0x9ea   : > { %3415 = vtanh.f32 %v4268_v61 }
 0x9ee   : > { %v3412_v1 = vpop.eup %3411 }
 0x9ef   : > { %v4271_v5 = vmul.f32 %v3412_v1, %v3410_v62  ;;  %v3414_v51 = vpop.eup %3413 }
 0x9f1   : > { %v1862_v6 = vrot.slane %v4271_v5, 6 }
 0x9f3   : > { %1863 = vrot.lane.b32.xlu0 %v1862_v6, %s3729_s15  ;;  %v1851_v6 = vrot.slane %v4268_v61, 6 }
 0x9f4   : > { %v3416_v8 = vpop.eup %3415 }
 0x9f5   : > { %v1633_v17 = vmul.f32 %v3416_v8, %v3414_v51 }
 0x9f7   : > { %1741 = vrot.lane.b32.xlu1 %v1633_v17, %s3729_s15 }
 0xa65   : > { %v1864_v53 = vpop.permute.xlu0 %1863 }
 0xa66   : > { %2914 = vmatmul.mubr.msk.f32.vlgmr.msra.gmra.mrb[14].mxu1 %vm619_vm1, %v1864_v53 }
 0xa67   : > { %3162 = vmatpush1.bf16.msra.mxu1 %v4025_v39  ;;  %2165 = vmatprep.mubr.f32.mxu1 %v3728_v0 }
 0xa68   : > { %3164 = vmatprep.subr.bf16.mxu1 %v4030_v44 }
 0xa69   : > { %v1742_v20 = vpop.permute.xlu1 %1741 }
 0xa6a   : > { %1745 = vst.msk [vmem:[#allocation3 + $0x8] sm:$0x3] %vm823_vm2, %v1742_v20  ;;  %2911 = vmatmul.mubr.msk.f32.vlgmr.msra.gmra.mrb[14].mxu0 %vm619_vm1, %v1742_v20 }
 0xa6b   : > { %3146 = vmatpush1.bf16.msra.mxu0 %v4022_v35  ;;  %3166 = vmatpush1.bf16.msra.mxu1 %v4040_v54 }
 0xa6c   : > { %3148 = vmatprep.subr.bf16.mxu0 %v4027_v40  ;;  %3168 = vmatprep.subr.bf16.mxu1 %v4046_v59 }
 0xa6d   : > { %2056 = vmatprep.mubr.f32.mxu0 %v3728_v0 }
 0xa6f   : > { %3150 = vmatpush1.bf16.msra.mxu0 %v4035_v50  ;;  %3170 = vmatpush1.bf16.msra.mxu1 %v4055_v3 }
 0xa70   : > { %3152 = vmatprep.subr.bf16.mxu0 %v4042_v55  ;;  %3172 = vmatprep.subr.bf16.mxu1 %v4061_v7 }
 0xa73   : > { %3154 = vmatpush1.bf16.msra.mxu0 %v4051_v2  ;;  %3174 = vmatpush1.bf16.msra.mxu1 %v4070_v11 }
 0xa74   : > { %3156 = vmatprep.subr.bf16.mxu0 %v4057_v4  ;;  %3192 = vmatprep.subr.bf16.mxu1 %v4020_v31  ;;  %v1755_v31 = vld [vmem:[#allocation2 + $0x18] sm:$0x30] }
 0xa77   : > { %3158 = vmatpush1.bf16.msra.mxu0 %v4066_v10 }
 0xa78   : > { %3176 = vmatprep.subr.bf16.mxu0 %v4018_v30 }
 0xb39   : > { %v1933_v21 = vpop.f32.mrb[14].mxu1 }
 0xb3a   : > { %v1940_v23 = vrot.slane %v1933_v21, 4  ;;  %v1935_v24 = vpop.f32.mrb[15].mxu1 }
 0xb3b   : > { %v1941_v42 = vrot.slane %v1935_v24, 4 }
 0xb3c   : > { %v1944_v27 = vadd.f32 %v1940_v23, %v1754_v25 }
 0xb3d   : > { %v1824_v28 = vpop.f32.mrb[14].mxu0  ;;  %v1945_v45 = vadd.f32 %v1941_v42, %v1755_v31 }
 0xb3e   : > { %v2915_v29 = vmul.f32 -1.442695, %v1944_v27  ;;  %v1831_v9 = vrot.slane %v1824_v28, 6  ;;  %v1826_v32 = vpop.f32.mrb[15].mxu0 }
 0xb3f   : > { %v1832_v46 = vrot.slane %v1826_v32, 6  ;;  %v2916_v53 = vmul.f32 -1.442695, %v1945_v45 }
 0xb40   : > { %3417 = vpow2.f32 %v2915_v29  ;;  %v1835_v19 = vadd.f32 %v1831_v9, %v1752_v36 }
 0xb41   : > { %v1836_v49 = vadd.f32 %v1832_v46, %v1753_v33 }
 0xb42   : > { %v2912_v41 = vmul.f32 -1.442695, %v1835_v19 }
 0xb43   : > { %v2913_v20 = vmul.f32 -1.442695, %v1836_v49 }
 0xb44   : > { %3419 = vpow2.f32 %v2912_v41 }
 0xb45   : > { %3421 = vtanh.f32 %v1945_v45 }
 0xb4a   : > { %v3418_v47 = vpop.eup %3417 }
 0xb4b   : > { %v1949_v30 = vadd.f32 1.0, %v3418_v47 }
 0xb4d   : > { %3423 = vrcp.f32 %v1949_v30 }
 0xb4e   : > { %v3420_v52 = vpop.eup %3419  ;;  %3425 = vtanh.f32 %v1836_v49  ;;  %v1984_v49 = vld [vmem:[#allocation2 + $0x28] sm:$0x30] }
 0xb4f   : > { %v1840_v38 = vadd.f32 1.0, %v3420_v52  ;;  %v3422_v34 = vpop.eup %3421 }
 0xb51   : > { %3427 = vrcp.f32 %v1840_v38 }
 0xb52   : > { %3429 = vpow2.f32 %v2916_v53 }
 0xb53   : > { %3431 = vpow2.f32 %v2913_v20 }
 0xb57   : > { %v3424_v60 = vpop.eup %3423 }
 0xb58   : > { %v1963_v37 = vmul.f32 %v3424_v60, %v3422_v34  ;;  %v1962_v62 = vmul.f32 %v3424_v60, %v1960_v56  ;;  %v3426_v1 = vpop.eup %3425 }
 0xb5a   : > { %1965 = vrot.lane.b32.xlu0 %v1963_v37, %s3729_s15 }
 0xb5b   : > { %v3428_v51 = vpop.eup %3427 }
 0xb5c   : > { %v1854_v8 = vmul.f32 %v3428_v51, %v3426_v1  ;;  %v1853_v17 = vmul.f32 %v3428_v51, %v1851_v6  ;;  %v3430_v21 = vpop.eup %3429 }
 0xb5d   : > { %v1956_v23 = vadd.f32 1.0, %v3430_v21  ;;  %v3432_v57 = vpop.eup %3431 }
 0xb5e   : > { %1856 = vrot.lane.b32.xlu1 %v1854_v8, %s3729_s15  ;;  %v1847_v27 = vadd.f32 1.0, %v3432_v57 }
 0xb5f   : > { %3433 = vrcp.f32 %v1956_v23 }
 0xb69   : > { %v3434_v29 = vpop.eup %3433 }
 0xbcc   : > { %v1966_v24 = vpop.permute.xlu0 %1965 }
 0xbcd   : > { %v4301_v25 = vadd.f32 %v1966_v24, %v1962_v62 }
 0xbcf   : > { %3435 = vtanh.f32 %v4301_v25  ;;  %v2194_v60 = vrot.slane %v4301_v25, 2 }
 0xbd0   : > { %v1857_v61 = vpop.permute.xlu1 %1856  ;;  %3437 = vrcp.f32 %v1847_v27 }
 0xbd1   : > { %v4304_v28 = vadd.f32 %v1857_v61, %v1853_v17 }
 0xbd3   : > { %3439 = vtanh.f32 %v4304_v28  ;;  %v2085_v51 = vrot.slane %v4304_v28, 6 }
 0xbd9   : > { %v3436_v9 = vpop.eup %3435 }
 0xbda   : > { %v4307_v32 = vmul.f32 %v3436_v9, %v3434_v29  ;;  %v3438_v36 = vpop.eup %3437 }
 0xbdc   : > { %v2096_v19 = vrot.slane %v4307_v32, 4 }
 0xbdd   : > { %v3440_v41 = vpop.eup %3439 }
 0xbde   : > { %2097 = vrot.lane.b32.xlu0 %v2096_v19, %s3729_s15  ;;  %v4311_v42 = vmul.f32 %v3440_v41, %v3438_v36 }
 0xbe0   : > { %v1987_v31 = vrot.slane %v4311_v42, 2 }
 0xbe2   : > { %1988 = vrot.lane.b32.xlu1 %v1987_v31, %s3729_s15 }
 0xc50   : > { %v2098_v45 = vpop.permute.xlu0 %2097 }
 0xc51   : > { %2920 = vmatmul.mubr.msk.f32.vlgmr.msra.gmra.mrb[16].mxu1 %vm619_vm1, %v2098_v45 }
 0xc52   : > { %3194 = vmatpush1.bf16.msra.mxu1 %v4025_v39  ;;  %2399 = vmatprep.mubr.f32.mxu1 %v3728_v0 }
 0xc53   : > { %3196 = vmatprep.subr.bf16.mxu1 %v4030_v44 }
 0xc54   : > { %v1989_v46 = vpop.permute.xlu1 %1988 }
 0xc55   : > { %2917 = vmatmul.mubr.msk.f32.vlgmr.msra.gmra.mrb[16].mxu0 %vm619_vm1, %v1989_v46 }
 0xc56   : > { %3178 = vmatpush1.bf16.msra.mxu0 %v4022_v35  ;;  %3198 = vmatpush1.bf16.msra.mxu1 %v4040_v54 }
 0xc57   : > { %3180 = vmatprep.subr.bf16.mxu0 %v4027_v40  ;;  %3200 = vmatprep.subr.bf16.mxu1 %v4046_v59 }
 0xc58   : > { %2290 = vmatprep.mubr.f32.mxu0 %v3728_v0  ;;  %v1985_v0 = vld [vmem:[#allocation2 + $0x10] sm:$0xc] }
 0xc5a   : > { %3182 = vmatpush1.bf16.msra.mxu0 %v4035_v50  ;;  %3202 = vmatpush1.bf16.msra.mxu1 %v4055_v3 }
 0xc5b   : > { %3184 = vmatprep.subr.bf16.mxu0 %v4042_v55  ;;  %3204 = vmatprep.subr.bf16.mxu1 %v4061_v7  ;;  %v1983_v55 = vld [vmem:[#allocation2 + $0x20] sm:$0x30] }
 0xc5e   : > { %3186 = vmatpush1.bf16.msra.mxu0 %v4051_v2  ;;  %3206 = vmatpush1.bf16.msra.mxu1 %v4070_v11  ;;  %v1986_v11 = vld [vmem:[#allocation2 + $0x18] sm:$0xc] }
 0xc5f   : > { %3188 = vmatprep.subr.bf16.mxu0 %v4057_v4 }
 0xc62   : > { %3190 = vmatpush1.bf16.msra.mxu0 %v4066_v10 }
 0xd24   : > { %v2167_v35 = vpop.f32.mrb[16].mxu1 }
 0xd25   : > { %v2174_v39 = vrot.slane %v2167_v35, 6  ;;  %v2169_v40 = vpop.f32.mrb[17].mxu1 }
 0xd26   : > { %v2175_v2 = vrot.slane %v2169_v40, 6 }
 0xd27   : > { %v2178_v44 = vadd.f32 %v2174_v39, %v1985_v0  ;;  %v2219_v0 = vld [vmem:[#allocation2 + $0x10] sm:$0x3] }
 0xd28   : > { %v2058_v50 = vpop.f32.mrb[16].mxu0  ;;  %v2179_v30 = vadd.f32 %v2175_v2, %v1986_v11 }
 0xd29   : > { %v2921_v54 = vmul.f32 -1.442695, %v2178_v44  ;;  %v2065_v59 = vrot.slane %v2058_v50, 4  ;;  %v2060_v3 = vpop.f32.mrb[17].mxu0 }
 0xd2a   : > { %v2066_v4 = vrot.slane %v2060_v3, 4  ;;  %v2922_v20 = vmul.f32 -1.442695, %v2179_v30 }
 0xd2b   : > { %3441 = vpow2.f32 %v2921_v54  ;;  %v2069_v7 = vadd.f32 %v2065_v59, %v1983_v55 }
 0xd2c   : > { %v2070_v52 = vadd.f32 %v2066_v4, %v1984_v49 }
 0xd2d   : > { %v2918_v47 = vmul.f32 -1.442695, %v2069_v7 }
 0xd2e   : > { %v2919_v21 = vmul.f32 -1.442695, %v2070_v52 }
 0xd2f   : > { %3443 = vpow2.f32 %v2918_v47  ;;  %v2217_v47 = vld [vmem:[#allocation2 + $0x20] sm:$0xc0] }
 0xd30   : > { %3445 = vtanh.f32 %v2179_v30  ;;  %v2220_v30 = vld [vmem:[#allocation2 + $0x18] sm:$0x3] }
 0xd35   : > { %v3442_v33 = vpop.eup %3441 }
 0xd36   : > { %v2183_v10 = vadd.f32 1.0, %v3442_v33 }
 0xd38   : > { %3447 = vrcp.f32 %v2183_v10 }
 0xd39   : > { %v3444_v38 = vpop.eup %3443  ;;  %3449 = vtanh.f32 %v2070_v52  ;;  %v2218_v52 = vld [vmem:[#allocation2 + $0x28] sm:$0xc0] }
 0xd3a   : > { %v2074_v34 = vadd.f32 1.0, %v3444_v38  ;;  %v3446_v56 = vpop.eup %3445 }
 0xd3c   : > { %3451 = vrcp.f32 %v2074_v34 }
 0xd3d   : > { %3453 = vpow2.f32 %v2922_v20 }
 0xd3e   : > { %3455 = vpow2.f32 %v2919_v21 }
 0xd42   : > { %v3448_v37 = vpop.eup %3447 }
 0xd43   : > { %v2197_v62 = vmul.f32 %v3448_v37, %v3446_v56  ;;  %v2196_v1 = vmul.f32 %v3448_v37, %v2194_v60  ;;  %v3450_v6 = vpop.eup %3449 }
 0xd45   : > { %2199 = vrot.lane.b32.xlu0 %v2197_v62, %s3729_s15 }
 0xd46   : > { %v3452_v8 = vpop.eup %3451 }
 0xd47   : > { %v2088_v17 = vmul.f32 %v3452_v8, %v3450_v6  ;;  %v2087_v53 = vmul.f32 %v3452_v8, %v2085_v51  ;;  %v3454_v23 = vpop.eup %3453 }
 0xd48   : > { %v2190_v57 = vadd.f32 1.0, %v3454_v23  ;;  %v3456_v24 = vpop.eup %3455 }
 0xd49   : > { %2090 = vrot.lane.b32.xlu1 %v2088_v17, %s3729_s15  ;;  %v2081_v61 = vadd.f32 1.0, %v3456_v24 }
 0xd4a   : > { %3457 = vrcp.f32 %v2190_v57 }
 0xd54   : > { %v3458_v9 = vpop.eup %3457 }
 0xdb7   : > { %v2200_v25 = vpop.permute.xlu0 %2199 }
 0xdb8   : > { %v2202_v27 = vadd.f32 %v2200_v25, %v2196_v1 }
 0xdba   : > { %3459 = vtanh.f32 %v2202_v27  ;;  %v2422_v37 = vrot.slane %v2202_v27, 2 }
 0xdbb   : > { %v2091_v28 = vpop.permute.xlu1 %2090  ;;  %3461 = vrcp.f32 %v2081_v61 }
 0xdbc   : > { %v2093_v29 = vadd.f32 %v2091_v28, %v2087_v53 }
 0xdbe   : > { %3463 = vtanh.f32 %v2093_v29  ;;  %v2319_v8 = vrot.slane %v2093_v29, 6 }
 0xdc4   : > { %v3460_v36 = vpop.eup %3459 }
 0xdc5   : > { %v2204_v19 = vmul.f32 %v3460_v36, %v3458_v9  ;;  %v3462_v41 = vpop.eup %3461 }
 0xdc7   : > { %v2330_v31 = vrot.slane %v2204_v19, 2 }
 0xdc8   : > { %v3464_v45 = vpop.eup %3463 }
 0xdc9   : > { %2331 = vrot.lane.b32.xlu0 %v2330_v31, %s3729_s15  ;;  %v4338_v46 = vmul.f32 %v3464_v45, %v3462_v41 }
 0xdcb   : > { %v2221_v35 = vrot.slane %v4338_v46, 4 }
 0xdcd   : > { %2222 = vrot.lane.b32.xlu1 %v2221_v35, %s3729_s15 }
 0xe3b   : > { %v2332_v39 = vpop.permute.xlu0 %2331 }
 0xe3c   : > { %2926 = vmatmul.mubr.msk.f32.vlgmr.msra.gmra.mrb[18].mxu1 %vm619_vm1, %v2332_v39 }
 0xe3f   : > { %v2223_v40 = vpop.permute.xlu1 %2222 }
 0xe40   : > { %2923 = vmatmul.mubr.msk.f32.vlgmr.msra.gmra.mrb[18].mxu0 %vm619_vm1, %v2223_v40 }
 0xf0f   : > { %v2401_v44 = vpop.f32.mrb[18].mxu1 }
 0xf10   : > { %v2406_v50 = vadd.f32 %v2401_v44, %v2219_v0  ;;  %v2403_v54 = vpop.f32.mrb[19].mxu1 }
 0xf11   : > { %v2407_v4 = vadd.f32 %v2403_v54, %v2220_v30 }
 0xf12   : > { %v2927_v59 = vmul.f32 -1.442695, %v2406_v50 }
 0xf13   : > { %v2292_v3 = vpop.f32.mrb[18].mxu0 }
 0xf14   : > { %3465 = vpow2.f32 %v2927_v59  ;;  %v2299_v55 = vrot.slane %v2292_v3, 2  ;;  %v2294_v7 = vpop.f32.mrb[19].mxu0 }
 0xf15   : > { %v2300_v10 = vrot.slane %v2294_v7, 2 }
 0xf16   : > { %v2303_v2 = vadd.f32 %v2299_v55, %v2217_v47  ;;  %v4396_v55 = vld [vmem:[#allocation3 + $0x8] sm:$0x3] }
 0xf17   : > { %v2304_v38 = vadd.f32 %v2300_v10, %v2218_v52  ;;  %v4411_v10 = vld [vmem:[#allocation3] sm:$0x3] }
 0xf18   : > { %v2924_v11 = vmul.f32 -1.442695, %v2303_v2 }
 0xf1a   : > { %3467 = vpow2.f32 %v2924_v11 }
 0xf1b   : > { %3469 = vtanh.f32 %v2407_v4 }
 0xf1e   : > { %v3466_v33 = vpop.eup %3465 }
 0xf1f   : > { %v2411_v49 = vadd.f32 1.0, %v3466_v33 }
 0xf21   : > { %3471 = vrcp.f32 %v2411_v49 }
 0xf22   : > { %3473 = vtanh.f32 %v2304_v38 }
 0xf24   : > { %v3468_v34 = vpop.eup %3467 }
 0xf25   : > { %v2308_v56 = vadd.f32 1.0, %v3468_v34  ;;  %v3470_v60 = vpop.eup %3469 }
 0xf27   : > { %3475 = vrcp.f32 %v2308_v56 }
 0xf2b   : > { %v3472_v62 = vpop.eup %3471 }
 0xf2c   : > { %v2425_v1 = vmul.f32 %v3472_v62, %v3470_v60  ;;  %v2424_v6 = vmul.f32 %v3472_v62, %v2422_v37  ;;  %v3474_v51 = vpop.eup %3473 }
 0xf2e   : > { %2427 = vrot.lane.b32.xlu0 %v2425_v1, %s3729_s15 }
 0xf31   : > { %v3476_v17 = vpop.eup %3475 }
 0xf32   : > { %1052 = vrot.lane.b32.xlu0 %v4163_v63, %s3729_s15  ;;  %v2322_v53 = vmul.f32 %v3476_v17, %v3474_v51  ;;  %v2321_v20 = vmul.f32 %v3476_v17, %v2319_v8  ;;  %v4368_v63 = vld [vmem:[%s4562_s1] sm:$0x3]  ;;  %v4427_v8 = vld [vmem:[#allocation4 + $0x8] sm:$0x3] }
 0xf33   : > { %v2465_v47 = vmul.f32 %v4368_v63, %v4396_v55  ;;  %v2461_v49 = vmul.f32 %v4368_v63, %v4411_v10 }
 0xf34   : > { %2324 = vrot.lane.b32.xlu1 %v2322_v53, %s3729_s15 }
 0xf35   : > { %v2481_v30 = vsel %vm823_vm2, %v2465_v47, 0.0  ;;  %v2469_v34 = vsel %vm823_vm2, %v2461_v49, 0.0 }
 0xf36   : > { %1978 = vrot.lane.b32.xlu0 %v4307_v32, %s3729_s15 }
 0xf38   : > { %2212 = vrot.lane.b32.xlu1 %v2204_v19, %s3729_s15 }
 0xf3a   : > { %1747 = vrot.lane.b32.xlu0 %v4271_v5, %s3729_s15 }
 0xf3c   : > { %1288 = vrot.lane.b32.xlu1 %v4201_v26, %s3729_s15  ;;  %v2928_v26 = vmul.f32 -1.442695, %v2407_v4 }
 0xf3e   : > { %1972 = vrot.lane.b32.xlu0 %v4311_v42, %s3729_s15  ;;  %3477 = vpow2.f32 %v2928_v26 }
 0xf40   : > { %1516 = vrot.lane.b32.xlu1 %v4236_v48, %s3729_s15  ;;  %v2925_v48 = vmul.f32 -1.442695, %v2304_v38 }
 0xf42   : > { %3479 = vpow2.f32 %v2925_v48 }
 0xf44   : > { %1294 = vrot.lane.b32.xlu1 %v4197_v22, %s3729_s15 }
 0xf48   : > { %1059 = vrot.lane.b32.xlu1 %v4159_v58, %s3729_s15  ;;  %v3478_v5 = vpop.eup %3477 }
 0xf49   : > { %v2418_v22 = vadd.f32 1.0, %v3478_v5 }
 0xf4b   : > { %3481 = vrcp.f32 %v2418_v22 }
 0xf4c   : > { %826 = vrot.lane.b32.xlu1 %v4123_v43, %s3729_s15  ;;  %v3480_v42 = vpop.eup %3479 }
 0xf4d   : > { %v2315_v43 = vadd.f32 1.0, %v3480_v42 }
 0xf50   : > { %2494 = vrot.lane.b32.xlu1 %v4368_v63, %s3729_s15 }
 0xf55   : > { %v3482_v27 = vpop.eup %3481 }
 0xfa0   : > { %v2428_v32 = vpop.permute.xlu0 %2427 }
 0xfa1   : > { %v2430_v58 = vadd.f32 %v2428_v32, %v2424_v6 }
 0xfa3   : > { %3483 = vtanh.f32 %v2430_v58 }
 0xfa4   : > { %v1053_v21 = vpop.permute.xlu0 %1052  ;;  %3485 = vrcp.f32 %v2315_v43 }
 0xfa5   : > { %1057 = vst.msk [vmem:[#allocation3] sm:$0xc] %vm1056_vm3, %v1053_v21 }
 0xfa6   : > { %v2325_v23 = vpop.permute.xlu1 %2324 }
 0xfa7   : > { %v2327_v57 = vadd.f32 %v2325_v23, %v2321_v20 }
 0xfa8   : > { %v1979_v24 = vpop.permute.xlu0 %1978 }
 0xfa9   : > { %3487 = vtanh.f32 %v2327_v57  ;;  %1982 = vst.msk [vmem:[#allocation4] sm:$0x30] %vm1063_vm4, %v1979_v24 }
 0xfaa   : > { %v2213_v25 = vpop.permute.xlu1 %2212 }
 0xfab   : > { %2216 = vst.msk [vmem:[#allocation4] sm:$0xc] %vm1056_vm3, %v2213_v25 }
 0xfac   : > { %v1748_v61 = vpop.permute.xlu0 %1747  ;;  %v4375_v28 = vld [vmem:[#allocation3 + $0x2] sm:$0x3] }
 0xfad   : > { %v3484_v29 = vpop.eup %3483  ;;  %1751 = vst.msk [vmem:[#allocation4] sm:$0xc0] %vm830_vm5, %v1748_v61  ;;  %v2462_v9 = vmul.f32 %v4368_v63, %v4375_v28 }
 0xfae   : > { %v1289_v36 = vpop.permute.xlu1 %1288  ;;  %v2432_v19 = vmul.f32 %v3484_v29, %v3482_v27  ;;  %v3486_v45 = vpop.eup %3485 }
 0xfaf   : > { %1292 = vst.msk [vmem:[#allocation3] sm:$0x30] %vm1063_vm4, %v1289_v36  ;;  %v2472_v41 = vsel %vm823_vm2, %v2462_v9, 0.0 }
 0xfb0   : > { %2440 = vrot.lane.b32.xlu0 %v2432_v19, %s3729_s15  ;;  %v1973_v31 = vpop.permute.xlu0 %1972  ;;  %2473 = vadd.xlane.f32.xlu1 %v2472_v41  ;;  %v4419_v60 = vld [vmem:[#allocation4 + $0x4] sm:$0x3] }
 0xfb1   : > { %1976 = vst.msk [vmem:[#allocation3 + $0x8] sm:$0xc] %vm1056_vm3, %v1973_v31 }
 0xfb2   : > { %v1517_v35 = vpop.permute.xlu1 %1516  ;;  %v4415_v38 = vld [vmem:[#allocation4 + $0x2] sm:$0x3] }
 0xfb3   : > { %v3488_v39 = vpop.eup %3487  ;;  %1520 = vst.msk [vmem:[#allocation3] sm:$0xc0] %vm830_vm5, %v1517_v35 }
 0xfb4   : > { %2206 = vrot.lane.b32.xlu0 %v4338_v46, %s3729_s15  ;;  %v2329_v40 = vmul.f32 %v3488_v39, %v3486_v45  ;;  %v4423_v1 = vld [vmem:[#allocation4 + $0x6] sm:$0x3] }
 0xfb6   : > { %v1295_v0 = vpop.permute.xlu1 %1294  ;;  %v4387_v44 = vld [vmem:[#allocation3 + $0x4] sm:$0x3] }
 0xfb7   : > { %1298 = vst.msk [vmem:[#allocation4 + $0x8] sm:$0xc] %vm1056_vm3, %v1295_v0  ;;  %v2463_v50 = vmul.f32 %v4368_v63, %v4387_v44 }
 0xfb8   : > { %2434 = vrot.lane.b32.xlu0 %v2329_v40, %s3729_s15  ;;  %v4404_v11 = vld [vmem:[#allocation3 + $0xa] sm:$0x3] }
 0xfb9   : > { %v2475_v54 = vsel %vm823_vm2, %v2463_v50, 0.0  ;;  %v2466_v4 = vmul.f32 %v4368_v63, %v4404_v11 }
 0xfba   : > { %2476 = vadd.xlane.f32.xlu1 %v2475_v54  ;;  %v1060_v59 = vpop.permute.xlu1 %1059  ;;  %v4394_v3 = vld [vmem:[#allocation3 + $0x6] sm:$0x3] }
 0xfbb   : > { %1064 = vst.msk [vmem:[#allocation4 + $0x8] sm:$0x30] %vm1063_vm4, %v1060_v59  ;;  %v2464_v46 = vmul.f32 %v4368_v63, %v4394_v3  ;;  %v2484_v33 = vsel %vm823_vm2, %v2466_v4, 0.0 }
 0xfbd   : > { %v2478_v7 = vsel %vm823_vm2, %v2464_v46, 0.0 }
 0xfbe   : > { %2479 = vadd.xlane.f32.xlu1 %v2478_v7  ;;  %v827_v2 = vpop.permute.xlu1 %826  ;;  %v4431_v20 = vld [vmem:[#allocation4 + $0xa] sm:$0x3]  ;;  %v2554_v7 = vand.u32 127, %v394_v12 }
 0xfbf   : > { %831 = vst.msk [vmem:[#allocation4 + $0x8] sm:$0xc0] %vm830_vm5, %v827_v2 }
 0xfc2   : > { %2482 = vadd.xlane.f32.xlu1 %v2481_v30  ;;  %v2495_v52 = vpop.permute.xlu1 %2494  ;;  %v4440_v43 = vld [vmem:[#allocation4 + $0xc] sm:$0x3] }
 0xfc3   : > { %v2498_v56 = vmul.f32 %v2495_v52, %v4415_v38  ;;  %v2499_v62 = vmul.f32 %v2495_v52, %v4419_v60  ;;  %v2500_v51 = vmul.f32 %v2495_v52, %v4423_v1  ;;  %v2501_v53 = vmul.f32 %v2495_v52, %v4427_v8 }
 0xfc4   : > { %v2502_v48 = vmul.f32 %v2495_v52, %v4431_v20  ;;  %v2503_v57 = vmul.f32 %v2495_v52, %v4440_v43 }
 0xfc5   : > { %v2508_v37 = vsel %vm823_vm2, %v2498_v56, 0.0  ;;  %v2511_v6 = vsel %vm823_vm2, %v2499_v62, 0.0  ;;  %v2514_v17 = vsel %vm823_vm2, %v2500_v51, 0.0  ;;  %v2517_v26 = vsel %vm823_vm2, %v2501_v53, 0.0 }
 0xfc6   : > { %2485 = vadd.xlane.f32.xlu1 %v2484_v33  ;;  %v2520_v5 = vsel %vm823_vm2, %v2502_v48, 0.0  ;;  %v4448_v25 = vld [vmem:[#allocation4 + $0xe] sm:$0x3]  ;;  %v2523_v29 = vsel %vm823_vm2, %v2503_v57, 0.0  ;;  %v2929_v57 = vld [vmem:[%s327_s11] ss:$0 sm:$0xff] }
 0xfc7   : > { %v2504_v9 = vmul.f32 %v2495_v52, %v4448_v25  ;;  %vm2544_vm13 = vcmp.lt.s32.totalorder %v4098_v13, %v2929_v57 }
 0xfc9   : > { %v2526_v31 = vsel %vm823_vm2, %v2504_v9, 0.0 }
 0xfd7   : > { %2470 = vadd.xlane.f32.xlu0 %v2469_v34 }
 0xfdb   : > { %2509 = vadd.xlane.f32.xlu0 %v2508_v37 }
 0xfdf   : > { %2512 = vadd.xlane.f32.xlu0 %v2511_v6 }
 0xfe3   : > { %2515 = vadd.xlane.f32.xlu0 %v2514_v17 }
 0xfe7   : > { %2518 = vadd.xlane.f32.xlu0 %v2517_v26 }
 0xfeb   : > { %2521 = vadd.xlane.f32.xlu0 %v2520_v5 }
0x1022   : > { %v2441_v22 = vpop.permute.xlu0 %2440 }
0x1023   : > { %2443 = vst.msk [vmem:[#allocation4] sm:$0x3] %vm823_vm2, %v2441_v22 }
0x1026   : > { %v2207_v32 = vpop.permute.xlu0 %2206 }
0x1027   : > { %2210 = vst.msk [vmem:[#allocation3 + $0x8] sm:$0x30] %vm1063_vm4, %v2207_v32 }
0x102a   : > { %v2435_v42 = vpop.permute.xlu0 %2434  ;;  %v4438_v58 = vld [vmem:[#allocation4] sm:$0x3] }
0x102b   : > { %2438 = vst.msk [vmem:[#allocation3 + $0x8] sm:$0xc0] %vm830_vm5, %v2435_v42  ;;  %v2497_v21 = vmul.f32 %v2495_v52, %v4438_v58 }
0x102d   : > { %v2505_v23 = vsel %vm823_vm2, %v2497_v21, 0.0 }
0x102e   : > { %2506 = vadd.xlane.f32.xlu0 %v2505_v23  ;;  %v4446_v24 = vld [vmem:[#allocation3 + $0xc] sm:$0x3] }
0x102f   : > { %v2467_v27 = vmul.f32 %v4368_v63, %v4446_v24 }
0x1031   : > { %v2487_v61 = vsel %vm823_vm2, %v2467_v27, 0.0 }
0x1032   : > { %2488 = vadd.xlane.f32.xlu1 %v2487_v61  ;;  %2524 = vadd.xlane.f32.xlu0 %v2523_v29  ;;  %v4455_v36 = vld [vmem:[#allocation3 + $0xe] sm:$0x3] }
0x1033   : > { %v2468_v19 = vmul.f32 %v4368_v63, %v4455_v36  ;;  %v2557_v63 = vsub.s32 %v2554_v7, %v4098_v13 }
0x1035   : > { %v2490_v41 = vsel %vm823_vm2, %v2468_v19, 0.0 }
0x1036   : > { %2491 = vadd.xlane.f32.xlu1 %v2490_v41  ;;  %2527 = vadd.xlane.f32.xlu0 %v2526_v31 }
0x103d   : > { %v2474_v39 = vpop.xlane.xlu1 %2473 }
0x1047   : > { %v2477_v0 = vpop.xlane.xlu1 %2476 }
0x104b   : > { %v2480_v54 = vpop.xlane.xlu1 %2479 }
0x104f   : > { %v2483_v46 = vpop.xlane.xlu1 %2482 }
0x1053   : > { %v2486_v30 = vpop.xlane.xlu1 %2485 }
0x1064   : > { %v2471_v45 = vpop.xlane.xlu0 %2470 }
0x1068   : > { %v2510_v35 = vpop.xlane.xlu0 %2509 }
0x1069   : > { %v2530_v2 = vadd.f32 %v2510_v35, %v2474_v39 }
0x106b   : > { %v2562_v56 = vrot.slane %v2530_v2, %v2557_v63 }
0x106c   : > { %v2513_v40 = vpop.xlane.xlu0 %2512 }
0x106d   : > { %v2531_v4 = vadd.f32 %v2513_v40, %v2477_v0 }
0x106f   : > { %v2566_v6 = vrot.slane %v2531_v4, %v2557_v63 }
0x1070   : > { %v2516_v50 = vpop.xlane.xlu0 %2515 }
0x1071   : > { %v2532_v49 = vadd.f32 %v2516_v50, %v2480_v54 }
0x1073   : > { %v2570_v17 = vrot.slane %v2532_v49, %v2557_v63 }
0x1074   : > { %v2519_v59 = vpop.xlane.xlu0 %2518 }
0x1075   : > { %v2533_v34 = vadd.f32 %v2519_v59, %v2483_v46 }
0x1077   : > { %v2574_v48 = vrot.slane %v2533_v34, %v2557_v63 }
0x1078   : > { %v2522_v47 = vpop.xlane.xlu0 %2521 }
0x1079   : > { %v2534_v37 = vadd.f32 %v2522_v47, %v2486_v30 }
0x107b   : > { %v2578_v22 = vrot.slane %v2534_v37, %v2557_v63 }
0x10bb   : > { %v2507_v33 = vpop.xlane.xlu0 %2506 }
0x10bc   : > { %v2529_v52 = vadd.f32 %v2507_v33, %v2471_v45 }
0x10be   : > { %v2558_v62 = vrot.slane %v2529_v52, %v2557_v63 }
0x10bf   : > { %v2489_v51 = vpop.xlane.xlu1 %2488  ;;  %v2525_v12 = vpop.xlane.xlu0 %2524 }
0x10c0   : > { %v2588_v53 = vsel %vm2587_vm6, %v2562_v56, %v2558_v62  ;;  %v2535_v26 = vadd.f32 %v2525_v12, %v2489_v51  ;;  %v2653_v62 = vsub.s32 4, %v4098_v13  ;;  %v2667_v12 = vsub.s32 6, %v4098_v13 }
0x10c1   : > { %v2590_v5 = vsel %vm2589_vm7, %v2566_v6, %v2588_v53 }
0x10c2   : > { %v2592_v32 = vsel %vm2591_vm8, %v2570_v17, %v2590_v5  ;;  %v2582_v21 = vrot.slane %v2535_v26, %v2557_v63  ;;  %v2674_v26 = vsub.s32 7, %v4098_v13 }
0x10c3   : > { %v2594_v42 = vsel %vm2593_vm9, %v2574_v48, %v2592_v32  ;;  %v2492_v23 = vpop.xlane.xlu1 %2491  ;;  %v2528_v27 = vpop.xlane.xlu0 %2527 }
0x10c4   : > { %v2596_v61 = vsel %vm2595_vm10, %v2578_v22, %v2594_v42  ;;  %v2536_v29 = vadd.f32 %v2528_v27, %v2492_v23 }
0x10c5   : > { %v2598_v19 = vsel %vm2597_vm11, %v2582_v21, %v2596_v61 }
0x10c6   : > { %v2586_v9 = vrot.slane %v2536_v29, %v2557_v63 }
0x10c8   : > { %v2600_v41 = vsel %vm2599_vm12, %v2586_v9, %v2598_v19 }
0x10c9   : > { %v2602_v31 = vsel %vm2544_vm13, %v2600_v41, -1e+30 }
0x10ca   : > { %v2604_v45 = vsel %vm2603_vm14, %v2602_v31, -inf }
0x10cb   : > { %v2605_v35 = vrot.slane %v2604_v45, 4 }
0x10cd   : > { %v2606_v39 = vmax.f32 %v2604_v45, %v2605_v35 }
0x10cf   : > { %v2607_v40 = vrot.slane %v2606_v39, 2 }
0x10d1   : > { %v2608_v0 = vmax.f32 %v2606_v39, %v2607_v40 }
0x10d3   : > { %v2609_v50 = vrot.slane %v2608_v0, 1 }
0x10d5   : > { %v2610_v54 = vmax.f32 %v2608_v0, %v2609_v50 }
0x10d7   : > { %v2611_v59 = vsub.f32 %v2602_v31, %v2610_v54 }
0x10d9   : > { %v2612_v46 = vmul.f32 1.442695, %v2611_v59 }
0x10db   : > { %3489 = vpow2.f32 %v2612_v46 }
0x10e5   : > { %v3490_v7 = vpop.eup %3489 }
0x10e6   : > { %v2614_v47 = vsel %vm2603_vm14, %v3490_v7, 0.0 }
0x10e7   : > { %v2615_v2 = vrot.slane %v2614_v47, 4 }
0x10e9   : > { %v2616_v30 = vadd.f32 %v2615_v2, %v2614_v47 }
0x10eb   : > { %v2617_v4 = vrot.slane %v2616_v30, 2 }
0x10ed   : > { %v2618_v63 = vadd.f32 %v2617_v4, %v2616_v30 }
0x10ef   : > { %v2619_v33 = vrot.slane %v2618_v63, 1 }
0x10f1   : > { %v2620_v49 = vadd.f32 %v2619_v33, %v2618_v63 }
0x10f3   : > { %3491 = vrcp.f32 %v2620_v49 }
0x10fd   : > { %v3492_v52 = vpop.eup %3491 }
0x10fe   : > { %v2622_v34 = vmul.f32 %v3492_v52, %v3490_v7 }
0x1100   : > { %v2633_v56 = vrot.slane %v2622_v34, %v400_v16  ;;  %v2626_v37 = vrot.slane %v2622_v34, %v396_v14  ;;  %v2654_v6 = vrot.slane %v2622_v34, %v2653_v62  ;;  %v2640_v51 = vrot.slane %v2622_v34, %v404_v15 }
0x1101   : > { %v2668_v17 = vrot.slane %v2622_v34, %v2667_v12  ;;  %v2647_v53 = vrot.slane %v2622_v34, %v408_v18  ;;  %v2660_v16 = vsub.s32 5, %v4098_v13  ;;  %v2675_v48 = vrot.slane %v2622_v34, %v2674_v26 }
0x1102   : > { %2635 = vbcast.lane.b32.xlu0 %v2633_v56, 256  ;;  %2628 = vbcast.lane.b32.xlu1 %v2626_v37, 256 }
0x1103   : > { %v2661_v14 = vrot.slane %v2622_v34, %v2660_v16 }
0x1106   : > { %2656 = vbcast.lane.b32.xlu0 %v2654_v6, 256  ;;  %2642 = vbcast.lane.b32.xlu1 %v2640_v51, 256 }
0x110a   : > { %2670 = vbcast.lane.b32.xlu0 %v2668_v17, 256  ;;  %2649 = vbcast.lane.b32.xlu1 %v2647_v53, 256 }
0x110e   : > { %2663 = vbcast.lane.b32.xlu1 %v2661_v14, 256 }
0x1112   : > { %2677 = vbcast.lane.b32.xlu1 %v2675_v48, 256 }
0x1174   : > { %v2636_v5 = vpop.permute.xlu0 %2635  ;;  %v2629_v15 = vpop.permute.xlu1 %2628 }
0x1175   : > { %v2680_v22 = vmul.f32 %v2636_v5, %v4375_v28  ;;  %v2703_v32 = vmul.f32 %v2636_v5, %v4415_v38  ;;  %v2679_v42 = vmul.f32 %v2629_v15, %v4411_v10  ;;  %v2702_v18 = vmul.f32 %v2629_v15, %v4438_v58 }
0x1177   : > { %v2688_v21 = vsel %vm823_vm2, %v2680_v22, 0.0  ;;  %v2687_v23 = vsel %vm823_vm2, %v2679_v42, 0.0  ;;  %v2711_v61 = vsel %vm823_vm2, %v2703_v32, 0.0  ;;  %v2710_v29 = vsel %vm823_vm2, %v2702_v18, 0.0 }
0x1178   : > { %v2689_v57 = vadd.f32 %v2688_v21, %v2687_v23  ;;  %v2657_v27 = vpop.permute.xlu0 %2656  ;;  %v2643_v13 = vpop.permute.xlu1 %2642  ;;  %v2712_v58 = vadd.f32 %v2711_v61, %v2710_v29 }
0x1179   : > { %v2681_v9 = vmul.f32 %v2643_v13, %v4387_v44  ;;  %v2704_v28 = vmul.f32 %v2643_v13, %v4419_v60  ;;  %v2683_v19 = vmul.f32 %v2657_v27, %v4396_v55  ;;  %v2706_v41 = vmul.f32 %v2657_v27, %v4427_v8 }
0x117b   : > { %v2690_v38 = vsel %vm823_vm2, %v2681_v9, 0.0  ;;  %v2713_v10 = vsel %vm823_vm2, %v2704_v28, 0.0  ;;  %v2694_v50 = vsel %vm823_vm2, %v2683_v19, 0.0  ;;  %v2717_v54 = vsel %vm823_vm2, %v2706_v41, 0.0 }
0x117c   : > { %v2691_v31 = vadd.f32 %v2690_v38, %v2689_v57  ;;  %v2650_v45 = vpop.permute.xlu1 %2649  ;;  %v2714_v40 = vadd.f32 %v2713_v10, %v2712_v58  ;;  %v2671_v0 = vpop.permute.xlu0 %2670 }
0x117d   : > { %v2682_v35 = vmul.f32 %v2650_v45, %v4394_v3  ;;  %v2705_v39 = vmul.f32 %v2650_v45, %v4423_v1  ;;  %v2685_v8 = vmul.f32 %v2671_v0, %v4446_v24  ;;  %v2708_v7 = vmul.f32 %v2671_v0, %v4440_v43 }
0x117f   : > { %v2692_v44 = vsel %vm823_vm2, %v2682_v35, 0.0  ;;  %v2715_v60 = vsel %vm823_vm2, %v2705_v39, 0.0  ;;  %v2698_v52 = vsel %vm823_vm2, %v2685_v8, 0.0  ;;  %v2721_v24 = vsel %vm823_vm2, %v2708_v7, 0.0 }
0x1180   : > { %v2693_v59 = vadd.f32 %v2692_v44, %v2691_v31  ;;  %v2716_v55 = vadd.f32 %v2715_v60, %v2714_v40  ;;  %v2664_v46 = vpop.permute.xlu1 %2663 }
0x1181   : > { %v2684_v3 = vmul.f32 %v2664_v46, %v4404_v11  ;;  %v2707_v1 = vmul.f32 %v2664_v46, %v4431_v20 }
0x1182   : > { %v2695_v47 = vadd.f32 %v2694_v50, %v2693_v59  ;;  %v2718_v2 = vadd.f32 %v2717_v54, %v2716_v55 }
0x1183   : > { %v2696_v30 = vsel %vm823_vm2, %v2684_v3, 0.0  ;;  %v2719_v4 = vsel %vm823_vm2, %v2707_v1, 0.0 }
0x1184   : > { %v2697_v63 = vadd.f32 %v2696_v30, %v2695_v47  ;;  %v2720_v33 = vadd.f32 %v2719_v4, %v2718_v2  ;;  %v2678_v49 = vpop.permute.xlu1 %2677 }
0x1185   : > { %v2686_v43 = vmul.f32 %v2678_v49, %v4455_v36  ;;  %v2709_v11 = vmul.f32 %v2678_v49, %v4448_v25 }
0x1186   : > { %v2699_v20 = vadd.f32 %v2698_v52, %v2697_v63  ;;  %v2722_v34 = vadd.f32 %v2721_v24, %v2720_v33 }
0x1187   : > { %v2700_v56 = vsel %vm823_vm2, %v2686_v43, 0.0  ;;  %v2723_v37 = vsel %vm823_vm2, %v2709_v11, 0.0 }
0x1188   : > { %v2701_v62 = vadd.f32 %v2700_v56, %v2699_v20  ;;  %v2724_v6 = vadd.f32 %v2723_v37, %v2722_v34 }
0x118a   : > { %2726 = vrot.lane.b32.xlu0 %v2724_v6, %s3729_s15 }
0x11fc   : > { %v2727_v51 = vpop.permute.xlu0 %2726 }
0x11fd   : > { %v2729_v25 = vsel %vm619_vm1, %v2701_v62, %v2727_v51 }
0x11fe   : > { %2730 = vst [vmem:[%s373_s16] sm:$0x3] %v2729_v25 }
0x11ff   : > { %3650 = shalt.err (!%p3647_p10)
}
0x1200   : > { %s3651_s4 = scalar_lea.hbm %s4516_s10, 32  ;;  %s3655_s17 = scalar_lea.hbm %s4568_s7, 64 }
0x1201   : > { %p3652_p13 = scmp.ne.s32.totalorder %s4516_s10, %s3651_s4  ;;  %p3656_p9 = scmp.lt.u32.totalorder %s4516_s10, %s4568_s7 }
0x1202   : > { %p3657_p3 = scmp.lt.u32.totalorder %s3655_s17, %s3651_s4  ;;  %p3659_p12 = scmp.lt.u32.totalorder %s3651_s4, %s4516_s10 }
0x1203   : > { %p3653_p5 = pnand %p3652_p13, %p4595_p2 }
0x1204   : > { %p3658_p7 = por %p3657_p3, %p3656_p9 }
0x1205   : > { %p3654_p11 = pneg %p3653_p5 }
0x1206   : > { %p3660_p1 = por %p3659_p12, %p3658_p7 }
0x1208   : > { %p3661_p4 = pnand %p3660_p1, %p3654_p11 }
0x120a   : > { %3664 = shalt.err (!%p3661_p4)
}
0x120b   : > { %3223 = dma.vmem_to_hbm [thread:$0]  (%p4595_p2), %s4518_s8, 32, %s4516_s10, %s2732_s22  }
0x120c PF: > { %s4596_s14 = sld [smem:[#allocation20_spill]]  ;;  %s2757_s13 = sand.u32 1, %s3703_s24  }
0x120d   : > { %p4598_p8 = scmp.ge.s32.totalorder %s3715_s27, 2  ;;  %s2758_s3 = scalar_lea.sflag [#allocation7], %s2757_s13 }
0x1212   : > { %p4597_p0 = scmp.ne.s32.totalorder %s4596_s14, 0 }
0x1214   : > { %p3243_p6 = pnand %p4598_p8, %p4597_p0 }
0x1216   : > { %3698 = dma.done.wait (!%p3243_p6), %s2758_s3, 32  }
0x1217   : > { %3700 = vsyncadd (!%p3243_p6), %s2758_s3, 4294967264  ;;  %p24_p10 = scmp.ge.s32.totalorder %s3881_s18, 4   ;;  %s4599_s24 = smov %s3707_s25 }
0x1218   : > { %s4600_s25 = smov %s3711_s26  ;;  %s4601_s26 = smov %s3909_s12 }
0x1219   : > { %s4602_s27 = smov %s3881_s18  ;;  %26 = sbr.rel (!%p24_p10) target bundleno = 12 (0xc), region = 132 }
0x1220   :  { %2763 = vsyncpa [#allocation6], 1 }
0x1221   :  { %2765 = vsyncpa [#allocation6 + $0x1], 1 }
0x1222   :  { %2766 = vsyncpa [#allocation9], 1 }
0x1223   :  { %2768 = vsyncpa [#allocation9 + $0x1], 1 }
0x1224   :  { %2769 = vsyncpa [#allocation12], 1 }
0x1225   :  { %2770 = vsyncpa [#allocation7], 1 }
0x1226   :  { %2772 = vsyncpa [#allocation7 + $0x1], 1 }

</bundles_post_ra>
